<compile_context>
chip_gen: v7x
topology: tpu7x:2x2x1
jax: 0.10.0
libtpu: 0.0.40
codegen_flags: <defaults>
</compile_context>

<pallas_src>
import functools

import jax
import jax.numpy as jnp
from jax.experimental import pallas as pl
from jax.experimental.pallas import tpu as pltpu


# ----------------------------------------------------------------------------
# Fused whole-network kernel (one grid step == TB batch samples)
# ----------------------------------------------------------------------------
def _qnet_kernel(p1_ref, w1_ref, sh1_ref, w2_ref, sh2_ref, w3_ref, sh3_ref,
                 wh_ref, bh_ref, out_ref, *, TB, PH_pad, OH2, OW2, OH3, OW3):
    C1, C2, C3, K = 16, 32, 32, 5
    R1 = 4 * PH_pad                       # rows per sample in the conv1 GEMM

    # ---- conv1 + bn1 + relu: ONE GEMM for all TB samples & 4 parity planes.
    # p1_ref[0]            : (TB*R1, PW*F1)   rows ordered (sample, plane, row)
    # w1_ref (block-diag)  : (PW*F1, PW*C1)
    # y1[s*R1 + p*PH_pad + i, j*C1 + c] == A1[2i+ph, 2j+pw, c],  p = 2*ph + pw
    y1 = jnp.dot(p1_ref[0], w1_ref[...], preferred_element_type=jnp.float32)
    y1 = jnp.maximum(y1 + sh1_ref[...], 0.0)               # (TB*R1, PW*C1) f32

    tap_rows = OW2 * C1
    head_rows = []
    for s in range(TB):
        # ---- conv2 + bn2 + relu: 25 tap-GEMMs, block-diagonal weights ------
        # acc2[oh2, ow2*C2 + c2] accumulates the conv2 pre-activation.
        acc2 = jnp.zeros((OH2, OW2 * C2), jnp.float32)
        for t in range(K * K):
            kh, kw = t // K, t % K
            p = (kh % 2) * 2 + (kw % 2)
            ah, aw = kh // 2, kw // 2
            base = s * R1 + p * PH_pad + ah
            lhs = y1[base:base + OH2,
                     aw * C1:(aw + OW2) * C1].astype(jnp.bfloat16)
            rhs = w2_ref[t * tap_rows:(t + 1) * tap_rows, :]   # (OW2*C1, OW2*C2)
            acc2 = acc2 + jnp.dot(lhs, rhs, preferred_element_type=jnp.float32)
        a2 = jnp.maximum(acc2 + sh2_ref[...], 0.0)             # (OH2, OW2*C2)

        # ---- conv3 + bn3 + relu --------------------------------------------
        h3_cols = []
        for oh3 in range(OH3):
            for ow3 in range(OW3):
                acc3 = jnp.zeros((1, C3), jnp.float32)
                for kh in range(K):
                    lhs = a2[2 * oh3 + kh:2 * oh3 + kh + 1,
                             2 * ow3 * C2:(2 * ow3 + K) * C2].astype(jnp.bfloat16)
                    rhs = w3_ref[kh * K * C2:(kh + 1) * K * C2, :]  # (K*C2, C3)
                    acc3 = acc3 + jnp.dot(lhs, rhs,
                                          preferred_element_type=jnp.float32)
                h3_cols.append(jnp.maximum(acc3 + sh3_ref[...], 0.0))
        row = h3_cols[0] if len(h3_cols) == 1 else jnp.concatenate(h3_cols, axis=1)
        head_rows.append(row)                                   # (1, S3*C3)

    # ---- linear head: one batched GEMM, lane-dense (A padded to 128) -------
    hall = head_rows[0] if TB == 1 else jnp.concatenate(head_rows, axis=0)
    q = jnp.dot(hall.astype(jnp.bfloat16), wh_ref[...],
                preferred_element_type=jnp.float32)             # (TB, A_pad)
    out_ref[...] = q + bh_ref[...]


# ----------------------------------------------------------------------------
# Host-side helpers (run once per call under jit, all fused by XLA)
# ----------------------------------------------------------------------------
def _conv_out(size, k=5, s=2):
    return (size - (k - 1) - 1) // s + 1


def _fold_bn(conv_w, conv_b, gamma, beta, mean, var, eps=1e-5):
    s = gamma / jnp.sqrt(var + eps)
    return conv_w * s[:, None, None, None], (conv_b - mean) * s + beta


def _im2col_nchw(x, k, stride):
    """[B,C,H,W] -> patches [B,OH,OW,C*k*k], feature order (c, kh, kw)."""
    B, C, H, W = x.shape
    OH = (H - k) // stride + 1
    OW = (W - k) // stride + 1
    cols = []
    for kh in range(k):
        for kw in range(k):
            cols.append(x[:, :, kh:kh + stride * OH:stride,
                          kw:kw + stride * OW:stride])
    p = jnp.stack(cols, axis=2)                  # [B, C, k*k, OH, OW]
    p = p.reshape(B, C * k * k, OH, OW)
    return p.transpose(0, 2, 3, 1)               # [B, OH, OW, C*k*k]


# ----------------------------------------------------------------------------
# Forward pass (mirrors Q_net.forward, eval-mode BatchNorm)
# ----------------------------------------------------------------------------
def qnet_forward(params, x):
    B, C0, H, W = x.shape
    K = 5
    C1, C2, C3 = 16, 32, 32
    OH1, OW1 = _conv_out(H), _conv_out(W)
    OH2, OW2 = _conv_out(OH1), _conv_out(OW1)
    OH3, OW3 = _conv_out(OH2), _conv_out(OW2)
    assert OH3 >= 1 and OW3 >= 1, "input spatial size too small for Q_net"
    F1 = C0 * K * K
    PH, PW = (OH1 + 1) // 2, (OW1 + 1) // 2          # parity-plane extents
    PH_pad = ((PH + 7) // 8) * 8                     # sublane-aligned plane rows
    R1 = 4 * PH_pad                                  # conv1 GEMM rows / sample

    # batch tiling: TB samples per grid step
    TB = 8 if B >= 8 else B
    B_pad = ((B + TB - 1) // TB) * TB
    G = B_pad // TB

    # ---- fold BN (eval) into conv weights; build kernel-ready weight slabs
    w1, sh1 = _fold_bn(*params["conv1"], *params["bn1"])
    w2, sh2 = _fold_bn(*params["conv2"], *params["bn2"])
    w3, sh3 = _fold_bn(*params["conv3"], *params["bn3"])

    # conv1: block-diagonal over the PW output columns of a parity plane.
    w1f = w1.reshape(C1, F1).T                                       # (F1, C1)
    w1bd = jnp.kron(jnp.eye(PW, dtype=jnp.float32), w1f).astype(jnp.bfloat16)
    sh1t = jnp.tile(sh1, PW).reshape(1, PW * C1).astype(jnp.float32)

    # conv2: per-tap (C1, C2) blocks, block-diagonal over the OW2 out columns.
    blk2 = w2.transpose(2, 3, 1, 0).reshape(K * K, C1, C2)           # (tap,c1,c2)
    w2bd = jnp.einsum("ow,tcd->tocwd", jnp.eye(OW2, dtype=jnp.float32), blk2)
    w2bd = w2bd.reshape(K * K * OW2 * C1, OW2 * C2).astype(jnp.bfloat16)
    sh2t = jnp.tile(sh2, OW2).reshape(1, OW2 * C2).astype(jnp.float32)

    # conv3: rows ordered (kh3, kw3, c2) to match the a2 layout.
    w3s = w3.transpose(2, 3, 1, 0).reshape(K * K * C2, C3).astype(jnp.bfloat16)
    sh3t = sh3.reshape(1, C3).astype(jnp.float32)

    # head: rows ordered (oh3, ow3, c3); lane-padded to a multiple of 128.
    head_w, head_b = params["head"]                                  # (A, C3*S3)
    A = head_w.shape[0]
    S3 = OH3 * OW3
    A_pad = ((A + 127) // 128) * 128
    wh = head_w.reshape(A, C3, OH3, OW3).transpose(2, 3, 1, 0).reshape(S3 * C3, A)
    wh = jnp.pad(wh, ((0, 0), (0, A_pad - A))).astype(jnp.bfloat16)
    bh = jnp.pad(head_b, (0, A_pad - A)).reshape(1, A_pad).astype(jnp.float32)

    # ---- conv1 patches (only HBM-resident layer input), sorted into the
    #      stride-2 parity-plane row order consumed by the kernel, padded so
    #      each plane starts at an 8-row (sublane) boundary, and grouped TB
    #      samples per grid block.
    patches = _im2col_nchw(x, K, 2)                                  # (B,OH1,OW1,F1)
    patches = jnp.pad(patches,
                      ((0, B_pad - B), (0, 2 * PH - OH1),
                       (0, 2 * PW - OW1), (0, 0)))
    p1 = patches.reshape(B_pad, PH, 2, PW, 2, F1).transpose(0, 2, 4, 1, 3, 5)
    p1 = p1.reshape(B_pad, 4, PH, PW * F1)
    p1 = jnp.pad(p1, ((0, 0), (0, 0), (0, PH_pad - PH), (0, 0)))
    p1 = p1.reshape(G, TB * R1, PW * F1).astype(jnp.bfloat16)

    kernel = functools.partial(_qnet_kernel, TB=TB, PH_pad=PH_pad,
                               OH2=OH2, OW2=OW2, OH3=OH3, OW3=OW3)
    out = pl.pallas_call(
        kernel,
        out_shape=jax.ShapeDtypeStruct((B_pad, A_pad), jnp.float32),
        grid=(G,),
        in_specs=[
            pl.BlockSpec((1, TB * R1, PW * F1), lambda b: (b, 0, 0)),
            pl.BlockSpec(w1bd.shape, lambda b: (0, 0)),
            pl.BlockSpec(sh1t.shape, lambda b: (0, 0)),
            pl.BlockSpec(w2bd.shape, lambda b: (0, 0)),
            pl.BlockSpec(sh2t.shape, lambda b: (0, 0)),
            pl.BlockSpec(w3s.shape, lambda b: (0, 0)),
            pl.BlockSpec(sh3t.shape, lambda b: (0, 0)),
            pl.BlockSpec(wh.shape, lambda b: (0, 0)),
            pl.BlockSpec(bh.shape, lambda b: (0, 0)),
        ],
        out_specs=pl.BlockSpec((TB, A_pad), lambda b: (b, 0)),
        compiler_params=pltpu.CompilerParams(
            dimension_semantics=("parallel",)),
    )(p1, w1bd, sh1t, w2bd, sh2t, w3s, sh3t, wh, bh)
    return out[:B, :A]


# ----------------------------------------------------------------------------
# Pure-JAX reference (for correctness check only; not the kernel path)
# ----------------------------------------------------------------------------
def qnet_reference(params, x, eps=1e-5):
    def conv_bn_relu(h, conv, bn):
        w, b = conv
        g, bt, m, v = bn
        y = jax.lax.conv_general_dilated(
            h, w, window_strides=(2, 2), padding="VALID",
            dimension_numbers=("NCHW", "OIHW", "NCHW"))
        y = y + b[None, :, None, None]
        s = g / jnp.sqrt(v + eps)
        y = (y - m[None, :, None, None]) * s[None, :, None, None] \
            + bt[None, :, None, None]
        return jnp.maximum(y, 0.0)

    h = conv_bn_relu(x, params["conv1"], params["bn1"])
    h = conv_bn_relu(h, params["conv2"], params["bn2"])
    h = conv_bn_relu(h, params["conv3"], params["bn3"])
    hw, hb = params["head"]
    return h.reshape(x.shape[0], -1) @ hw.T + hb


# ----------------------------------------------------------------------------
# Deterministic parameter init (PyTorch-default-like uniform fans)
# ----------------------------------------------------------------------------
def _conv_init(key, oc, ic, ks):
    fan_in = ic * ks * ks
    bound = 1.0 / jnp.sqrt(jnp.float32(fan_in))
    wk, bk = jax.random.split(key)
    W = jax.random.uniform(wk, (oc, ic, ks, ks), jnp.float32, -bound, bound)
    b = jax.random.uniform(bk, (oc,), jnp.float32, -bound, bound)
    return W, b


def _linear_init(key, out_f, in_f):
    bound = 1.0 / jnp.sqrt(jnp.float32(in_f))
    wk, bk = jax.random.split(key)
    W = jax.random.uniform(wk, (out_f, in_f), jnp.float32, -bound, bound)
    b = jax.random.uniform(bk, (out_f,), jnp.float32, -bound, bound)
    return W, b


def _bn_init(key, ch):
    # Non-trivial running stats so the BN fold is actually exercised.
    k1, k2, k3, k4 = jax.random.split(key, 4)
    gamma = jax.random.uniform(k1, (ch,), jnp.float32, 0.5, 1.5)
    beta = 0.1 * jax.random.normal(k2, (ch,), jnp.float32)
    mean = 0.1 * jax.random.normal(k3, (ch,), jnp.float32)
    var = jax.random.uniform(k4, (ch,), jnp.float32, 0.5, 1.5)
    return gamma, beta, mean, var


def init_qnet_params(key, state_space, action_space):
    c, h, w = state_space
    k1, k2, k3, k4, k5, k6, k7 = jax.random.split(key, 7)
    conv1 = _conv_init(k1, 16, c, 5)
    conv2 = _conv_init(k2, 32, 16, 5)
    conv3 = _conv_init(k3, 32, 32, 5)
    convw = _conv_out(_conv_out(_conv_out(w)))
    convh = _conv_out(_conv_out(_conv_out(h)))
    head = _linear_init(k4, action_space, convw * convh * 32)
    return dict(conv1=conv1, bn1=_bn_init(k5, 16),
                conv2=conv2, bn2=_bn_init(k6, 32),
                conv3=conv3, bn3=_bn_init(k7, 32),
                head=head)


if __name__ == "__main__":
    state_space = (4, 32, 32)   # (C, H, W): 32 -> 14 -> 5 -> 1 spatial
    action_space = 6
    batch = 2

    key = jax.random.PRNGKey(0)
    pkey, xkey = jax.random.split(key)
    params = init_qnet_params(pkey, state_space, action_space)
    x = jax.random.normal(xkey, (batch,) + state_space, jnp.float32)

    fwd = jax.jit(qnet_forward)
    out = jax.block_until_ready(fwd(params, x))
    assert out.shape == (batch, action_space), out.shape

    ref = jax.block_until_ready(qnet_reference(params, x))
    # bf16 MXU inputs -> allow a few % deviation vs the f32 reference.
    assert bool(jnp.all(jnp.isfinite(out)))
    assert bool(jnp.allclose(out, ref, rtol=5e-2, atol=5e-2)), (
        float(jnp.max(jnp.abs(out - ref))))
    print("KERNEL_OK")
</pallas_src>

<mosaic_0001>
module attributes {stable_mosaic.version = 11 : i64} {
  func.func @_qnet_kernel(%arg0: i32, %arg1: memref<1x64x700xbf16, #tpu.memory_space<vmem>>, %arg2: memref<700x112xbf16, #tpu.memory_space<vmem>>, %arg3: memref<1x112xf32, #tpu.memory_space<vmem>>, %arg4: memref<2000x160xbf16, #tpu.memory_space<vmem>>, %arg5: memref<1x160xf32, #tpu.memory_space<vmem>>, %arg6: memref<800x32xbf16, #tpu.memory_space<vmem>>, %arg7: memref<1x32xf32, #tpu.memory_space<vmem>>, %arg8: memref<32x128xbf16, #tpu.memory_space<vmem>>, %arg9: memref<1x128xf32, #tpu.memory_space<vmem>>, %arg10: memref<2x128xf32, #tpu.memory_space<vmem>>) attributes {dimension_semantics = [#tpu.dimension_semantics<parallel>], iteration_bounds = array<i64: 1>, scalar_prefetch = 0 : i64, scratch_operands = 0 : i64, tpu.core_type = #tpu.core_type<tc>, window_params = [{transform_indices = @transform_0, window_bounds = array<i64: 1, 64, 700>}, {pipeline_mode = #tpu.pipeline_mode<synchronous>, transform_indices = @transform_1, window_bounds = array<i64: 700, 112>}, {pipeline_mode = #tpu.pipeline_mode<synchronous>, transform_indices = @transform_2, window_bounds = array<i64: 1, 112>}, {pipeline_mode = #tpu.pipeline_mode<synchronous>, transform_indices = @transform_3, window_bounds = array<i64: 2000, 160>}, {pipeline_mode = #tpu.pipeline_mode<synchronous>, transform_indices = @transform_4, window_bounds = array<i64: 1, 160>}, {pipeline_mode = #tpu.pipeline_mode<synchronous>, transform_indices = @transform_5, window_bounds = array<i64: 800, 32>}, {pipeline_mode = #tpu.pipeline_mode<synchronous>, transform_indices = @transform_6, window_bounds = array<i64: 1, 32>}, {pipeline_mode = #tpu.pipeline_mode<synchronous>, transform_indices = @transform_7, window_bounds = array<i64: 32, 128>}, {pipeline_mode = #tpu.pipeline_mode<synchronous>, transform_indices = @transform_8, window_bounds = array<i64: 1, 128>}, {transform_indices = @transform_9, window_bounds = array<i64: 2, 128>}]} {
    %c0 = arith.constant 0 : index
    %c0_0 = arith.constant 0 : index
    %c0_1 = arith.constant 0 : index
    %0 = vector.load %arg1[%c0, %c0_0, %c0_1] : memref<1x64x700xbf16, #tpu.memory_space<vmem>>, vector<1x64x700xbf16>
    %1 = vector.shape_cast %0 : vector<1x64x700xbf16> to vector<64x700xbf16>
    %c0_2 = arith.constant 0 : index
    %c0_3 = arith.constant 0 : index
    %2 = vector.load %arg2[%c0_2, %c0_3] : memref<700x112xbf16, #tpu.memory_space<vmem>>, vector<700x112xbf16>
    %cst = arith.constant dense<0.000000e+00> : vector<64x112xf32>
    %3 = tpu.matmul %1, %2, %cst {dimension_numbers = #tpu.dot_dimension_numbers<[1], [0], [0], [1], [0, 0, 1, 1], [], []>} : vector<64x700xbf16>, vector<700x112xbf16>, vector<64x112xf32> -> vector<64x112xf32>
    %c0_4 = arith.constant 0 : index
    %c0_5 = arith.constant 0 : index
    %4 = vector.load %arg3[%c0_4, %c0_5] : memref<1x112xf32, #tpu.memory_space<vmem>>, vector<1x112xf32>
    %5 = vector.broadcast %4 : vector<1x112xf32> to vector<64x112xf32>
    %6 = arith.addf %3, %5 : vector<64x112xf32>
    %cst_6 = arith.constant 0.000000e+00 : f32
    %7 = vector.broadcast %cst_6 : f32 to vector<64x112xf32>
    %8 = arith.maximumf %6, %7 : vector<64x112xf32>
    %cst_7 = arith.constant 0.000000e+00 : f32
    %9 = vector.broadcast %cst_7 : f32 to vector<5x160xf32>
    %10 = vector.extract_strided_slice %8 {offsets = [0, 0], sizes = [5, 80], strides = [1, 1]} : vector<64x112xf32> to vector<5x80xf32>
    %11 = arith.truncf %10 : vector<5x80xf32> to vector<5x80xbf16>
    %c0_8 = arith.constant 0 : index
    %c0_9 = arith.constant 0 : index
    %12 = vector.load %arg4[%c0_8, %c0_9] : memref<2000x160xbf16, #tpu.memory_space<vmem>>, vector<80x160xbf16>
    %cst_10 = arith.constant dense<0.000000e+00> : vector<5x160xf32>
    %13 = tpu.matmul %11, %12, %cst_10 {dimension_numbers = #tpu.dot_dimension_numbers<[1], [0], [0], [1], [0, 0, 1, 1], [], []>} : vector<5x80xbf16>, vector<80x160xbf16>, vector<5x160xf32> -> vector<5x160xf32>
    %14 = arith.addf %9, %13 : vector<5x160xf32>
    %15 = vector.extract_strided_slice %8 {offsets = [8, 0], sizes = [5, 80], strides = [1, 1]} : vector<64x112xf32> to vector<5x80xf32>
    %16 = arith.truncf %15 : vector<5x80xf32> to vector<5x80xbf16>
    %c80 = arith.constant 80 : index
    %c0_11 = arith.constant 0 : index
    %17 = vector.load %arg4[%c80, %c0_11] : memref<2000x160xbf16, #tpu.memory_space<vmem>>, vector<80x160xbf16>
    %cst_12 = arith.constant dense<0.000000e+00> : vector<5x160xf32>
    %18 = tpu.matmul %16, %17, %cst_12 {dimension_numbers = #tpu.dot_dimension_numbers<[1], [0], [0], [1], [0, 0, 1, 1], [], []>} : vector<5x80xbf16>, vector<80x160xbf16>, vector<5x160xf32> -> vector<5x160xf32>
    %19 = arith.addf %14, %18 : vector<5x160xf32>
    %20 = vector.extract_strided_slice %8 {offsets = [0, 16], sizes = [5, 80], strides = [1, 1]} : vector<64x112xf32> to vector<5x80xf32>
    %21 = arith.truncf %20 : vector<5x80xf32> to vector<5x80xbf16>
    %c160 = arith.constant 160 : index
    %c0_13 = arith.constant 0 : index
    %22 = vector.load %arg4[%c160, %c0_13] : memref<2000x160xbf16, #tpu.memory_space<vmem>>, vector<80x160xbf16>
    %cst_14 = arith.constant dense<0.000000e+00> : vector<5x160xf32>
    %23 = tpu.matmul %21, %22, %cst_14 {dimension_numbers = #tpu.dot_dimension_numbers<[1], [0], [0], [1], [0, 0, 1, 1], [], []>} : vector<5x80xbf16>, vector<80x160xbf16>, vector<5x160xf32> -> vector<5x160xf32>
    %24 = arith.addf %19, %23 : vector<5x160xf32>
    %25 = vector.extract_strided_slice %8 {offsets = [8, 16], sizes = [5, 80], strides = [1, 1]} : vector<64x112xf32> to vector<5x80xf32>
    %26 = arith.truncf %25 : vector<5x80xf32> to vector<5x80xbf16>
    %c240 = arith.constant 240 : index
    %c0_15 = arith.constant 0 : index
    %27 = vector.load %arg4[%c240, %c0_15] : memref<2000x160xbf16, #tpu.memory_space<vmem>>, vector<80x160xbf16>
    %cst_16 = arith.constant dense<0.000000e+00> : vector<5x160xf32>
    %28 = tpu.matmul %26, %27, %cst_16 {dimension_numbers = #tpu.dot_dimension_numbers<[1], [0], [0], [1], [0, 0, 1, 1], [], []>} : vector<5x80xbf16>, vector<80x160xbf16>, vector<5x160xf32> -> vector<5x160xf32>
    %29 = arith.addf %24, %28 : vector<5x160xf32>
    %30 = vector.extract_strided_slice %8 {offsets = [0, 32], sizes = [5, 80], strides = [1, 1]} : vector<64x112xf32> to vector<5x80xf32>
    %31 = arith.truncf %30 : vector<5x80xf32> to vector<5x80xbf16>
    %c320 = arith.constant 320 : index
    %c0_17 = arith.constant 0 : index
    %32 = vector.load %arg4[%c320, %c0_17] : memref<2000x160xbf16, #tpu.memory_space<vmem>>, vector<80x160xbf16>
    %cst_18 = arith.constant dense<0.000000e+00> : vector<5x160xf32>
    %33 = tpu.matmul %31, %32, %cst_18 {dimension_numbers = #tpu.dot_dimension_numbers<[1], [0], [0], [1], [0, 0, 1, 1], [], []>} : vector<5x80xbf16>, vector<80x160xbf16>, vector<5x160xf32> -> vector<5x160xf32>
    %34 = arith.addf %29, %33 : vector<5x160xf32>
    %35 = vector.extract_strided_slice %8 {offsets = [16, 0], sizes = [5, 80], strides = [1, 1]} : vector<64x112xf32> to vector<5x80xf32>
    %36 = arith.truncf %35 : vector<5x80xf32> to vector<5x80xbf16>
    %c400 = arith.constant 400 : index
    %c0_19 = arith.constant 0 : index
    %37 = vector.load %arg4[%c400, %c0_19] : memref<2000x160xbf16, #tpu.memory_space<vmem>>, vector<80x160xbf16>
    %cst_20 = arith.constant dense<0.000000e+00> : vector<5x160xf32>
    %38 = tpu.matmul %36, %37, %cst_20 {dimension_numbers = #tpu.dot_dimension_numbers<[1], [0], [0], [1], [0, 0, 1, 1], [], []>} : vector<5x80xbf16>, vector<80x160xbf16>, vector<5x160xf32> -> vector<5x160xf32>
    %39 = arith.addf %34, %38 : vector<5x160xf32>
    %40 = vector.extract_strided_slice %8 {offsets = [24, 0], sizes = [5, 80], strides = [1, 1]} : vector<64x112xf32> to vector<5x80xf32>
    %41 = arith.truncf %40 : vector<5x80xf32> to vector<5x80xbf16>
    %c480 = arith.constant 480 : index
    %c0_21 = arith.constant 0 : index
    %42 = vector.load %arg4[%c480, %c0_21] : memref<2000x160xbf16, #tpu.memory_space<vmem>>, vector<80x160xbf16>
    %cst_22 = arith.constant dense<0.000000e+00> : vector<5x160xf32>
    %43 = tpu.matmul %41, %42, %cst_22 {dimension_numbers = #tpu.dot_dimension_numbers<[1], [0], [0], [1], [0, 0, 1, 1], [], []>} : vector<5x80xbf16>, vector<80x160xbf16>, vector<5x160xf32> -> vector<5x160xf32>
    %44 = arith.addf %39, %43 : vector<5x160xf32>
    %45 = vector.extract_strided_slice %8 {offsets = [16, 16], sizes = [5, 80], strides = [1, 1]} : vector<64x112xf32> to vector<5x80xf32>
    %46 = arith.truncf %45 : vector<5x80xf32> to vector<5x80xbf16>
    %c560 = arith.constant 560 : index
    %c0_23 = arith.constant 0 : index
    %47 = vector.load %arg4[%c560, %c0_23] : memref<2000x160xbf16, #tpu.memory_space<vmem>>, vector<80x160xbf16>
    %cst_24 = arith.constant dense<0.000000e+00> : vector<5x160xf32>
    %48 = tpu.matmul %46, %47, %cst_24 {dimension_numbers = #tpu.dot_dimension_numbers<[1], [0], [0], [1], [0, 0, 1, 1], [], []>} : vector<5x80xbf16>, vector<80x160xbf16>, vector<5x160xf32> -> vector<5x160xf32>
    %49 = arith.addf %44, %48 : vector<5x160xf32>
    %50 = vector.extract_strided_slice %8 {offsets = [24, 16], sizes = [5, 80], strides = [1, 1]} : vector<64x112xf32> to vector<5x80xf32>
    %51 = arith.truncf %50 : vector<5x80xf32> to vector<5x80xbf16>
    %c640 = arith.constant 640 : index
    %c0_25 = arith.constant 0 : index
    %52 = vector.load %arg4[%c640, %c0_25] : memref<2000x160xbf16, #tpu.memory_space<vmem>>, vector<80x160xbf16>
    %cst_26 = arith.constant dense<0.000000e+00> : vector<5x160xf32>
    %53 = tpu.matmul %51, %52, %cst_26 {dimension_numbers = #tpu.dot_dimension_numbers<[1], [0], [0], [1], [0, 0, 1, 1], [], []>} : vector<5x80xbf16>, vector<80x160xbf16>, vector<5x160xf32> -> vector<5x160xf32>
    %54 = arith.addf %49, %53 : vector<5x160xf32>
    %55 = vector.extract_strided_slice %8 {offsets = [16, 32], sizes = [5, 80], strides = [1, 1]} : vector<64x112xf32> to vector<5x80xf32>
    %56 = arith.truncf %55 : vector<5x80xf32> to vector<5x80xbf16>
    %c720 = arith.constant 720 : index
    %c0_27 = arith.constant 0 : index
    %57 = vector.load %arg4[%c720, %c0_27] : memref<2000x160xbf16, #tpu.memory_space<vmem>>, vector<80x160xbf16>
    %cst_28 = arith.constant dense<0.000000e+00> : vector<5x160xf32>
    %58 = tpu.matmul %56, %57, %cst_28 {dimension_numbers = #tpu.dot_dimension_numbers<[1], [0], [0], [1], [0, 0, 1, 1], [], []>} : vector<5x80xbf16>, vector<80x160xbf16>, vector<5x160xf32> -> vector<5x160xf32>
    %59 = arith.addf %54, %58 : vector<5x160xf32>
    %60 = vector.extract_strided_slice %8 {offsets = [1, 0], sizes = [5, 80], strides = [1, 1]} : vector<64x112xf32> to vector<5x80xf32>
    %61 = arith.truncf %60 : vector<5x80xf32> to vector<5x80xbf16>
    %c800 = arith.constant 800 : index
    %c0_29 = arith.constant 0 : index
    %62 = vector.load %arg4[%c800, %c0_29] : memref<2000x160xbf16, #tpu.memory_space<vmem>>, vector<80x160xbf16>
    %cst_30 = arith.constant dense<0.000000e+00> : vector<5x160xf32>
    %63 = tpu.matmul %61, %62, %cst_30 {dimension_numbers = #tpu.dot_dimension_numbers<[1], [0], [0], [1], [0, 0, 1, 1], [], []>} : vector<5x80xbf16>, vector<80x160xbf16>, vector<5x160xf32> -> vector<5x160xf32>
    %64 = arith.addf %59, %63 : vector<5x160xf32>
    %65 = vector.extract_strided_slice %8 {offsets = [9, 0], sizes = [5, 80], strides = [1, 1]} : vector<64x112xf32> to vector<5x80xf32>
    %66 = arith.truncf %65 : vector<5x80xf32> to vector<5x80xbf16>
    %c880 = arith.constant 880 : index
    %c0_31 = arith.constant 0 : index
    %67 = vector.load %arg4[%c880, %c0_31] : memref<2000x160xbf16, #tpu.memory_space<vmem>>, vector<80x160xbf16>
    %cst_32 = arith.constant dense<0.000000e+00> : vector<5x160xf32>
    %68 = tpu.matmul %66, %67, %cst_32 {dimension_numbers = #tpu.dot_dimension_numbers<[1], [0], [0], [1], [0, 0, 1, 1], [], []>} : vector<5x80xbf16>, vector<80x160xbf16>, vector<5x160xf32> -> vector<5x160xf32>
    %69 = arith.addf %64, %68 : vector<5x160xf32>
    %70 = vector.extract_strided_slice %8 {offsets = [1, 16], sizes = [5, 80], strides = [1, 1]} : vector<64x112xf32> to vector<5x80xf32>
    %71 = arith.truncf %70 : vector<5x80xf32> to vector<5x80xbf16>
    %c960 = arith.constant 960 : index
    %c0_33 = arith.constant 0 : index
    %72 = vector.load %arg4[%c960, %c0_33] : memref<2000x160xbf16, #tpu.memory_space<vmem>>, vector<80x160xbf16>
    %cst_34 = arith.constant dense<0.000000e+00> : vector<5x160xf32>
    %73 = tpu.matmul %71, %72, %cst_34 {dimension_numbers = #tpu.dot_dimension_numbers<[1], [0], [0], [1], [0, 0, 1, 1], [], []>} : vector<5x80xbf16>, vector<80x160xbf16>, vector<5x160xf32> -> vector<5x160xf32>
    %74 = arith.addf %69, %73 : vector<5x160xf32>
    %75 = vector.extract_strided_slice %8 {offsets = [9, 16], sizes = [5, 80], strides = [1, 1]} : vector<64x112xf32> to vector<5x80xf32>
    %76 = arith.truncf %75 : vector<5x80xf32> to vector<5x80xbf16>
    %c1040 = arith.constant 1040 : index
    %c0_35 = arith.constant 0 : index
    %77 = vector.load %arg4[%c1040, %c0_35] : memref<2000x160xbf16, #tpu.memory_space<vmem>>, vector<80x160xbf16>
    %cst_36 = arith.constant dense<0.000000e+00> : vector<5x160xf32>
    %78 = tpu.matmul %76, %77, %cst_36 {dimension_numbers = #tpu.dot_dimension_numbers<[1], [0], [0], [1], [0, 0, 1, 1], [], []>} : vector<5x80xbf16>, vector<80x160xbf16>, vector<5x160xf32> -> vector<5x160xf32>
    %79 = arith.addf %74, %78 : vector<5x160xf32>
    %80 = vector.extract_strided_slice %8 {offsets = [1, 32], sizes = [5, 80], strides = [1, 1]} : vector<64x112xf32> to vector<5x80xf32>
    %81 = arith.truncf %80 : vector<5x80xf32> to vector<5x80xbf16>
    %c1120 = arith.constant 1120 : index
    %c0_37 = arith.constant 0 : index
    %82 = vector.load %arg4[%c1120, %c0_37] : memref<2000x160xbf16, #tpu.memory_space<vmem>>, vector<80x160xbf16>
    %cst_38 = arith.constant dense<0.000000e+00> : vector<5x160xf32>
    %83 = tpu.matmul %81, %82, %cst_38 {dimension_numbers = #tpu.dot_dimension_numbers<[1], [0], [0], [1], [0, 0, 1, 1], [], []>} : vector<5x80xbf16>, vector<80x160xbf16>, vector<5x160xf32> -> vector<5x160xf32>
    %84 = arith.addf %79, %83 : vector<5x160xf32>
    %85 = vector.extract_strided_slice %8 {offsets = [17, 0], sizes = [5, 80], strides = [1, 1]} : vector<64x112xf32> to vector<5x80xf32>
    %86 = arith.truncf %85 : vector<5x80xf32> to vector<5x80xbf16>
    %c1200 = arith.constant 1200 : index
    %c0_39 = arith.constant 0 : index
    %87 = vector.load %arg4[%c1200, %c0_39] : memref<2000x160xbf16, #tpu.memory_space<vmem>>, vector<80x160xbf16>
    %cst_40 = arith.constant dense<0.000000e+00> : vector<5x160xf32>
    %88 = tpu.matmul %86, %87, %cst_40 {dimension_numbers = #tpu.dot_dimension_numbers<[1], [0], [0], [1], [0, 0, 1, 1], [], []>} : vector<5x80xbf16>, vector<80x160xbf16>, vector<5x160xf32> -> vector<5x160xf32>
    %89 = arith.addf %84, %88 : vector<5x160xf32>
    %90 = vector.extract_strided_slice %8 {offsets = [25, 0], sizes = [5, 80], strides = [1, 1]} : vector<64x112xf32> to vector<5x80xf32>
    %91 = arith.truncf %90 : vector<5x80xf32> to vector<5x80xbf16>
    %c1280 = arith.constant 1280 : index
    %c0_41 = arith.constant 0 : index
    %92 = vector.load %arg4[%c1280, %c0_41] : memref<2000x160xbf16, #tpu.memory_space<vmem>>, vector<80x160xbf16>
    %cst_42 = arith.constant dense<0.000000e+00> : vector<5x160xf32>
    %93 = tpu.matmul %91, %92, %cst_42 {dimension_numbers = #tpu.dot_dimension_numbers<[1], [0], [0], [1], [0, 0, 1, 1], [], []>} : vector<5x80xbf16>, vector<80x160xbf16>, vector<5x160xf32> -> vector<5x160xf32>
    %94 = arith.addf %89, %93 : vector<5x160xf32>
    %95 = vector.extract_strided_slice %8 {offsets = [17, 16], sizes = [5, 80], strides = [1, 1]} : vector<64x112xf32> to vector<5x80xf32>
    %96 = arith.truncf %95 : vector<5x80xf32> to vector<5x80xbf16>
    %c1360 = arith.constant 1360 : index
    %c0_43 = arith.constant 0 : index
    %97 = vector.load %arg4[%c1360, %c0_43] : memref<2000x160xbf16, #tpu.memory_space<vmem>>, vector<80x160xbf16>
    %cst_44 = arith.constant dense<0.000000e+00> : vector<5x160xf32>
    %98 = tpu.matmul %96, %97, %cst_44 {dimension_numbers = #tpu.dot_dimension_numbers<[1], [0], [0], [1], [0, 0, 1, 1], [], []>} : vector<5x80xbf16>, vector<80x160xbf16>, vector<5x160xf32> -> vector<5x160xf32>
    %99 = arith.addf %94, %98 : vector<5x160xf32>
    %100 = vector.extract_strided_slice %8 {offsets = [25, 16], sizes = [5, 80], strides = [1, 1]} : vector<64x112xf32> to vector<5x80xf32>
    %101 = arith.truncf %100 : vector<5x80xf32> to vector<5x80xbf16>
    %c1440 = arith.constant 1440 : index
    %c0_45 = arith.constant 0 : index
    %102 = vector.load %arg4[%c1440, %c0_45] : memref<2000x160xbf16, #tpu.memory_space<vmem>>, vector<80x160xbf16>
    %cst_46 = arith.constant dense<0.000000e+00> : vector<5x160xf32>
    %103 = tpu.matmul %101, %102, %cst_46 {dimension_numbers = #tpu.dot_dimension_numbers<[1], [0], [0], [1], [0, 0, 1, 1], [], []>} : vector<5x80xbf16>, vector<80x160xbf16>, vector<5x160xf32> -> vector<5x160xf32>
    %104 = arith.addf %99, %103 : vector<5x160xf32>
    %105 = vector.extract_strided_slice %8 {offsets = [17, 32], sizes = [5, 80], strides = [1, 1]} : vector<64x112xf32> to vector<5x80xf32>
    %106 = arith.truncf %105 : vector<5x80xf32> to vector<5x80xbf16>
    %c1520 = arith.constant 1520 : index
    %c0_47 = arith.constant 0 : index
    %107 = vector.load %arg4[%c1520, %c0_47] : memref<2000x160xbf16, #tpu.memory_space<vmem>>, vector<80x160xbf16>
    %cst_48 = arith.constant dense<0.000000e+00> : vector<5x160xf32>
    %108 = tpu.matmul %106, %107, %cst_48 {dimension_numbers = #tpu.dot_dimension_numbers<[1], [0], [0], [1], [0, 0, 1, 1], [], []>} : vector<5x80xbf16>, vector<80x160xbf16>, vector<5x160xf32> -> vector<5x160xf32>
    %109 = arith.addf %104, %108 : vector<5x160xf32>
    %110 = vector.extract_strided_slice %8 {offsets = [2, 0], sizes = [5, 80], strides = [1, 1]} : vector<64x112xf32> to vector<5x80xf32>
    %111 = arith.truncf %110 : vector<5x80xf32> to vector<5x80xbf16>
    %c1600 = arith.constant 1600 : index
    %c0_49 = arith.constant 0 : index
    %112 = vector.load %arg4[%c1600, %c0_49] : memref<2000x160xbf16, #tpu.memory_space<vmem>>, vector<80x160xbf16>
    %cst_50 = arith.constant dense<0.000000e+00> : vector<5x160xf32>
    %113 = tpu.matmul %111, %112, %cst_50 {dimension_numbers = #tpu.dot_dimension_numbers<[1], [0], [0], [1], [0, 0, 1, 1], [], []>} : vector<5x80xbf16>, vector<80x160xbf16>, vector<5x160xf32> -> vector<5x160xf32>
    %114 = arith.addf %109, %113 : vector<5x160xf32>
    %115 = vector.extract_strided_slice %8 {offsets = [10, 0], sizes = [5, 80], strides = [1, 1]} : vector<64x112xf32> to vector<5x80xf32>
    %116 = arith.truncf %115 : vector<5x80xf32> to vector<5x80xbf16>
    %c1680 = arith.constant 1680 : index
    %c0_51 = arith.constant 0 : index
    %117 = vector.load %arg4[%c1680, %c0_51] : memref<2000x160xbf16, #tpu.memory_space<vmem>>, vector<80x160xbf16>
    %cst_52 = arith.constant dense<0.000000e+00> : vector<5x160xf32>
    %118 = tpu.matmul %116, %117, %cst_52 {dimension_numbers = #tpu.dot_dimension_numbers<[1], [0], [0], [1], [0, 0, 1, 1], [], []>} : vector<5x80xbf16>, vector<80x160xbf16>, vector<5x160xf32> -> vector<5x160xf32>
    %119 = arith.addf %114, %118 : vector<5x160xf32>
    %120 = vector.extract_strided_slice %8 {offsets = [2, 16], sizes = [5, 80], strides = [1, 1]} : vector<64x112xf32> to vector<5x80xf32>
    %121 = arith.truncf %120 : vector<5x80xf32> to vector<5x80xbf16>
    %c1760 = arith.constant 1760 : index
    %c0_53 = arith.constant 0 : index
    %122 = vector.load %arg4[%c1760, %c0_53] : memref<2000x160xbf16, #tpu.memory_space<vmem>>, vector<80x160xbf16>
    %cst_54 = arith.constant dense<0.000000e+00> : vector<5x160xf32>
    %123 = tpu.matmul %121, %122, %cst_54 {dimension_numbers = #tpu.dot_dimension_numbers<[1], [0], [0], [1], [0, 0, 1, 1], [], []>} : vector<5x80xbf16>, vector<80x160xbf16>, vector<5x160xf32> -> vector<5x160xf32>
    %124 = arith.addf %119, %123 : vector<5x160xf32>
    %125 = vector.extract_strided_slice %8 {offsets = [10, 16], sizes = [5, 80], strides = [1, 1]} : vector<64x112xf32> to vector<5x80xf32>
    %126 = arith.truncf %125 : vector<5x80xf32> to vector<5x80xbf16>
    %c1840 = arith.constant 1840 : index
    %c0_55 = arith.constant 0 : index
    %127 = vector.load %arg4[%c1840, %c0_55] : memref<2000x160xbf16, #tpu.memory_space<vmem>>, vector<80x160xbf16>
    %cst_56 = arith.constant dense<0.000000e+00> : vector<5x160xf32>
    %128 = tpu.matmul %126, %127, %cst_56 {dimension_numbers = #tpu.dot_dimension_numbers<[1], [0], [0], [1], [0, 0, 1, 1], [], []>} : vector<5x80xbf16>, vector<80x160xbf16>, vector<5x160xf32> -> vector<5x160xf32>
    %129 = arith.addf %124, %128 : vector<5x160xf32>
    %130 = vector.extract_strided_slice %8 {offsets = [2, 32], sizes = [5, 80], strides = [1, 1]} : vector<64x112xf32> to vector<5x80xf32>
    %131 = arith.truncf %130 : vector<5x80xf32> to vector<5x80xbf16>
    %c1920 = arith.constant 1920 : index
    %c0_57 = arith.constant 0 : index
    %132 = vector.load %arg4[%c1920, %c0_57] : memref<2000x160xbf16, #tpu.memory_space<vmem>>, vector<80x160xbf16>
    %cst_58 = arith.constant dense<0.000000e+00> : vector<5x160xf32>
    %133 = tpu.matmul %131, %132, %cst_58 {dimension_numbers = #tpu.dot_dimension_numbers<[1], [0], [0], [1], [0, 0, 1, 1], [], []>} : vector<5x80xbf16>, vector<80x160xbf16>, vector<5x160xf32> -> vector<5x160xf32>
    %134 = arith.addf %129, %133 : vector<5x160xf32>
    %c0_59 = arith.constant 0 : index
    %c0_60 = arith.constant 0 : index
    %135 = vector.load %arg5[%c0_59, %c0_60] : memref<1x160xf32, #tpu.memory_space<vmem>>, vector<1x160xf32>
    %136 = vector.broadcast %135 : vector<1x160xf32> to vector<5x160xf32>
    %137 = arith.addf %134, %136 : vector<5x160xf32>
    %cst_61 = arith.constant 0.000000e+00 : f32
    %138 = vector.broadcast %cst_61 : f32 to vector<5x160xf32>
    %139 = arith.maximumf %137, %138 : vector<5x160xf32>
    %cst_62 = arith.constant 0.000000e+00 : f32
    %140 = vector.broadcast %cst_62 : f32 to vector<1x32xf32>
    %141 = vector.extract_strided_slice %139 {offsets = [0, 0], sizes = [1, 160], strides = [1, 1]} : vector<5x160xf32> to vector<1x160xf32>
    %142 = arith.truncf %141 : vector<1x160xf32> to vector<1x160xbf16>
    %c0_63 = arith.constant 0 : index
    %c0_64 = arith.constant 0 : index
    %143 = vector.load %arg6[%c0_63, %c0_64] : memref<800x32xbf16, #tpu.memory_space<vmem>>, vector<160x32xbf16>
    %cst_65 = arith.constant dense<0.000000e+00> : vector<1x32xf32>
    %144 = tpu.matmul %142, %143, %cst_65 {dimension_numbers = #tpu.dot_dimension_numbers<[1], [0], [0], [1], [0, 0, 1, 1], [], []>} : vector<1x160xbf16>, vector<160x32xbf16>, vector<1x32xf32> -> vector<1x32xf32>
    %145 = arith.addf %140, %144 : vector<1x32xf32>
    %146 = vector.extract_strided_slice %139 {offsets = [1, 0], sizes = [1, 160], strides = [1, 1]} : vector<5x160xf32> to vector<1x160xf32>
    %147 = arith.truncf %146 : vector<1x160xf32> to vector<1x160xbf16>
    %c160_66 = arith.constant 160 : index
    %c0_67 = arith.constant 0 : index
    %148 = vector.load %arg6[%c160_66, %c0_67] : memref<800x32xbf16, #tpu.memory_space<vmem>>, vector<160x32xbf16>
    %cst_68 = arith.constant dense<0.000000e+00> : vector<1x32xf32>
    %149 = tpu.matmul %147, %148, %cst_68 {dimension_numbers = #tpu.dot_dimension_numbers<[1], [0], [0], [1], [0, 0, 1, 1], [], []>} : vector<1x160xbf16>, vector<160x32xbf16>, vector<1x32xf32> -> vector<1x32xf32>
    %150 = arith.addf %145, %149 : vector<1x32xf32>
    %151 = vector.extract_strided_slice %139 {offsets = [2, 0], sizes = [1, 160], strides = [1, 1]} : vector<5x160xf32> to vector<1x160xf32>
    %152 = arith.truncf %151 : vector<1x160xf32> to vector<1x160xbf16>
    %c320_69 = arith.constant 320 : index
    %c0_70 = arith.constant 0 : index
    %153 = vector.load %arg6[%c320_69, %c0_70] : memref<800x32xbf16, #tpu.memory_space<vmem>>, vector<160x32xbf16>
    %cst_71 = arith.constant dense<0.000000e+00> : vector<1x32xf32>
    %154 = tpu.matmul %152, %153, %cst_71 {dimension_numbers = #tpu.dot_dimension_numbers<[1], [0], [0], [1], [0, 0, 1, 1], [], []>} : vector<1x160xbf16>, vector<160x32xbf16>, vector<1x32xf32> -> vector<1x32xf32>
    %155 = arith.addf %150, %154 : vector<1x32xf32>
    %156 = vector.extract_strided_slice %139 {offsets = [3, 0], sizes = [1, 160], strides = [1, 1]} : vector<5x160xf32> to vector<1x160xf32>
    %157 = arith.truncf %156 : vector<1x160xf32> to vector<1x160xbf16>
    %c480_72 = arith.constant 480 : index
    %c0_73 = arith.constant 0 : index
    %158 = vector.load %arg6[%c480_72, %c0_73] : memref<800x32xbf16, #tpu.memory_space<vmem>>, vector<160x32xbf16>
    %cst_74 = arith.constant dense<0.000000e+00> : vector<1x32xf32>
    %159 = tpu.matmul %157, %158, %cst_74 {dimension_numbers = #tpu.dot_dimension_numbers<[1], [0], [0], [1], [0, 0, 1, 1], [], []>} : vector<1x160xbf16>, vector<160x32xbf16>, vector<1x32xf32> -> vector<1x32xf32>
    %160 = arith.addf %155, %159 : vector<1x32xf32>
    %161 = vector.extract_strided_slice %139 {offsets = [4, 0], sizes = [1, 160], strides = [1, 1]} : vector<5x160xf32> to vector<1x160xf32>
    %162 = arith.truncf %161 : vector<1x160xf32> to vector<1x160xbf16>
    %c640_75 = arith.constant 640 : index
    %c0_76 = arith.constant 0 : index
    %163 = vector.load %arg6[%c640_75, %c0_76] : memref<800x32xbf16, #tpu.memory_space<vmem>>, vector<160x32xbf16>
    %cst_77 = arith.constant dense<0.000000e+00> : vector<1x32xf32>
    %164 = tpu.matmul %162, %163, %cst_77 {dimension_numbers = #tpu.dot_dimension_numbers<[1], [0], [0], [1], [0, 0, 1, 1], [], []>} : vector<1x160xbf16>, vector<160x32xbf16>, vector<1x32xf32> -> vector<1x32xf32>
    %165 = arith.addf %160, %164 : vector<1x32xf32>
    %c0_78 = arith.constant 0 : index
    %c0_79 = arith.constant 0 : index
    %166 = vector.load %arg7[%c0_78, %c0_79] : memref<1x32xf32, #tpu.memory_space<vmem>>, vector<1x32xf32>
    %167 = arith.addf %165, %166 : vector<1x32xf32>
    %cst_80 = arith.constant 0.000000e+00 : f32
    %168 = vector.broadcast %cst_80 : f32 to vector<1x32xf32>
    %169 = arith.maximumf %167, %168 : vector<1x32xf32>
    %cst_81 = arith.constant 0.000000e+00 : f32
    %170 = vector.broadcast %cst_81 : f32 to vector<5x160xf32>
    %171 = vector.extract_strided_slice %8 {offsets = [32, 0], sizes = [5, 80], strides = [1, 1]} : vector<64x112xf32> to vector<5x80xf32>
    %172 = arith.truncf %171 : vector<5x80xf32> to vector<5x80xbf16>
    %c0_82 = arith.constant 0 : index
    %c0_83 = arith.constant 0 : index
    %173 = vector.load %arg4[%c0_82, %c0_83] : memref<2000x160xbf16, #tpu.memory_space<vmem>>, vector<80x160xbf16>
    %cst_84 = arith.constant dense<0.000000e+00> : vector<5x160xf32>
    %174 = tpu.matmul %172, %173, %cst_84 {dimension_numbers = #tpu.dot_dimension_numbers<[1], [0], [0], [1], [0, 0, 1, 1], [], []>} : vector<5x80xbf16>, vector<80x160xbf16>, vector<5x160xf32> -> vector<5x160xf32>
    %175 = arith.addf %170, %174 : vector<5x160xf32>
    %176 = vector.extract_strided_slice %8 {offsets = [40, 0], sizes = [5, 80], strides = [1, 1]} : vector<64x112xf32> to vector<5x80xf32>
    %177 = arith.truncf %176 : vector<5x80xf32> to vector<5x80xbf16>
    %c80_85 = arith.constant 80 : index
    %c0_86 = arith.constant 0 : index
    %178 = vector.load %arg4[%c80_85, %c0_86] : memref<2000x160xbf16, #tpu.memory_space<vmem>>, vector<80x160xbf16>
    %cst_87 = arith.constant dense<0.000000e+00> : vector<5x160xf32>
    %179 = tpu.matmul %177, %178, %cst_87 {dimension_numbers = #tpu.dot_dimension_numbers<[1], [0], [0], [1], [0, 0, 1, 1], [], []>} : vector<5x80xbf16>, vector<80x160xbf16>, vector<5x160xf32> -> vector<5x160xf32>
    %180 = arith.addf %175, %179 : vector<5x160xf32>
    %181 = vector.extract_strided_slice %8 {offsets = [32, 16], sizes = [5, 80], strides = [1, 1]} : vector<64x112xf32> to vector<5x80xf32>
    %182 = arith.truncf %181 : vector<5x80xf32> to vector<5x80xbf16>
    %c160_88 = arith.constant 160 : index
    %c0_89 = arith.constant 0 : index
    %183 = vector.load %arg4[%c160_88, %c0_89] : memref<2000x160xbf16, #tpu.memory_space<vmem>>, vector<80x160xbf16>
    %cst_90 = arith.constant dense<0.000000e+00> : vector<5x160xf32>
    %184 = tpu.matmul %182, %183, %cst_90 {dimension_numbers = #tpu.dot_dimension_numbers<[1], [0], [0], [1], [0, 0, 1, 1], [], []>} : vector<5x80xbf16>, vector<80x160xbf16>, vector<5x160xf32> -> vector<5x160xf32>
    %185 = arith.addf %180, %184 : vector<5x160xf32>
    %186 = vector.extract_strided_slice %8 {offsets = [40, 16], sizes = [5, 80], strides = [1, 1]} : vector<64x112xf32> to vector<5x80xf32>
    %187 = arith.truncf %186 : vector<5x80xf32> to vector<5x80xbf16>
    %c240_91 = arith.constant 240 : index
    %c0_92 = arith.constant 0 : index
    %188 = vector.load %arg4[%c240_91, %c0_92] : memref<2000x160xbf16, #tpu.memory_space<vmem>>, vector<80x160xbf16>
    %cst_93 = arith.constant dense<0.000000e+00> : vector<5x160xf32>
    %189 = tpu.matmul %187, %188, %cst_93 {dimension_numbers = #tpu.dot_dimension_numbers<[1], [0], [0], [1], [0, 0, 1, 1], [], []>} : vector<5x80xbf16>, vector<80x160xbf16>, vector<5x160xf32> -> vector<5x160xf32>
    %190 = arith.addf %185, %189 : vector<5x160xf32>
    %191 = vector.extract_strided_slice %8 {offsets = [32, 32], sizes = [5, 80], strides = [1, 1]} : vector<64x112xf32> to vector<5x80xf32>
    %192 = arith.truncf %191 : vector<5x80xf32> to vector<5x80xbf16>
    %c320_94 = arith.constant 320 : index
    %c0_95 = arith.constant 0 : index
    %193 = vector.load %arg4[%c320_94, %c0_95] : memref<2000x160xbf16, #tpu.memory_space<vmem>>, vector<80x160xbf16>
    %cst_96 = arith.constant dense<0.000000e+00> : vector<5x160xf32>
    %194 = tpu.matmul %192, %193, %cst_96 {dimension_numbers = #tpu.dot_dimension_numbers<[1], [0], [0], [1], [0, 0, 1, 1], [], []>} : vector<5x80xbf16>, vector<80x160xbf16>, vector<5x160xf32> -> vector<5x160xf32>
    %195 = arith.addf %190, %194 : vector<5x160xf32>
    %196 = vector.extract_strided_slice %8 {offsets = [48, 0], sizes = [5, 80], strides = [1, 1]} : vector<64x112xf32> to vector<5x80xf32>
    %197 = arith.truncf %196 : vector<5x80xf32> to vector<5x80xbf16>
    %c400_97 = arith.constant 400 : index
    %c0_98 = arith.constant 0 : index
    %198 = vector.load %arg4[%c400_97, %c0_98] : memref<2000x160xbf16, #tpu.memory_space<vmem>>, vector<80x160xbf16>
    %cst_99 = arith.constant dense<0.000000e+00> : vector<5x160xf32>
    %199 = tpu.matmul %197, %198, %cst_99 {dimension_numbers = #tpu.dot_dimension_numbers<[1], [0], [0], [1], [0, 0, 1, 1], [], []>} : vector<5x80xbf16>, vector<80x160xbf16>, vector<5x160xf32> -> vector<5x160xf32>
    %200 = arith.addf %195, %199 : vector<5x160xf32>
    %201 = vector.extract_strided_slice %8 {offsets = [56, 0], sizes = [5, 80], strides = [1, 1]} : vector<64x112xf32> to vector<5x80xf32>
    %202 = arith.truncf %201 : vector<5x80xf32> to vector<5x80xbf16>
    %c480_100 = arith.constant 480 : index
    %c0_101 = arith.constant 0 : index
    %203 = vector.load %arg4[%c480_100, %c0_101] : memref<2000x160xbf16, #tpu.memory_space<vmem>>, vector<80x160xbf16>
    %cst_102 = arith.constant dense<0.000000e+00> : vector<5x160xf32>
    %204 = tpu.matmul %202, %203, %cst_102 {dimension_numbers = #tpu.dot_dimension_numbers<[1], [0], [0], [1], [0, 0, 1, 1], [], []>} : vector<5x80xbf16>, vector<80x160xbf16>, vector<5x160xf32> -> vector<5x160xf32>
    %205 = arith.addf %200, %204 : vector<5x160xf32>
    %206 = vector.extract_strided_slice %8 {offsets = [48, 16], sizes = [5, 80], strides = [1, 1]} : vector<64x112xf32> to vector<5x80xf32>
    %207 = arith.truncf %206 : vector<5x80xf32> to vector<5x80xbf16>
    %c560_103 = arith.constant 560 : index
    %c0_104 = arith.constant 0 : index
    %208 = vector.load %arg4[%c560_103, %c0_104] : memref<2000x160xbf16, #tpu.memory_space<vmem>>, vector<80x160xbf16>
    %cst_105 = arith.constant dense<0.000000e+00> : vector<5x160xf32>
    %209 = tpu.matmul %207, %208, %cst_105 {dimension_numbers = #tpu.dot_dimension_numbers<[1], [0], [0], [1], [0, 0, 1, 1], [], []>} : vector<5x80xbf16>, vector<80x160xbf16>, vector<5x160xf32> -> vector<5x160xf32>
    %210 = arith.addf %205, %209 : vector<5x160xf32>
    %211 = vector.extract_strided_slice %8 {offsets = [56, 16], sizes = [5, 80], strides = [1, 1]} : vector<64x112xf32> to vector<5x80xf32>
    %212 = arith.truncf %211 : vector<5x80xf32> to vector<5x80xbf16>
    %c640_106 = arith.constant 640 : index
    %c0_107 = arith.constant 0 : index
    %213 = vector.load %arg4[%c640_106, %c0_107] : memref<2000x160xbf16, #tpu.memory_space<vmem>>, vector<80x160xbf16>
    %cst_108 = arith.constant dense<0.000000e+00> : vector<5x160xf32>
    %214 = tpu.matmul %212, %213, %cst_108 {dimension_numbers = #tpu.dot_dimension_numbers<[1], [0], [0], [1], [0, 0, 1, 1], [], []>} : vector<5x80xbf16>, vector<80x160xbf16>, vector<5x160xf32> -> vector<5x160xf32>
    %215 = arith.addf %210, %214 : vector<5x160xf32>
    %216 = vector.extract_strided_slice %8 {offsets = [48, 32], sizes = [5, 80], strides = [1, 1]} : vector<64x112xf32> to vector<5x80xf32>
    %217 = arith.truncf %216 : vector<5x80xf32> to vector<5x80xbf16>
    %c720_109 = arith.constant 720 : index
    %c0_110 = arith.constant 0 : index
    %218 = vector.load %arg4[%c720_109, %c0_110] : memref<2000x160xbf16, #tpu.memory_space<vmem>>, vector<80x160xbf16>
    %cst_111 = arith.constant dense<0.000000e+00> : vector<5x160xf32>
    %219 = tpu.matmul %217, %218, %cst_111 {dimension_numbers = #tpu.dot_dimension_numbers<[1], [0], [0], [1], [0, 0, 1, 1], [], []>} : vector<5x80xbf16>, vector<80x160xbf16>, vector<5x160xf32> -> vector<5x160xf32>
    %220 = arith.addf %215, %219 : vector<5x160xf32>
    %221 = vector.extract_strided_slice %8 {offsets = [33, 0], sizes = [5, 80], strides = [1, 1]} : vector<64x112xf32> to vector<5x80xf32>
    %222 = arith.truncf %221 : vector<5x80xf32> to vector<5x80xbf16>
    %c800_112 = arith.constant 800 : index
    %c0_113 = arith.constant 0 : index
    %223 = vector.load %arg4[%c800_112, %c0_113] : memref<2000x160xbf16, #tpu.memory_space<vmem>>, vector<80x160xbf16>
    %cst_114 = arith.constant dense<0.000000e+00> : vector<5x160xf32>
    %224 = tpu.matmul %222, %223, %cst_114 {dimension_numbers = #tpu.dot_dimension_numbers<[1], [0], [0], [1], [0, 0, 1, 1], [], []>} : vector<5x80xbf16>, vector<80x160xbf16>, vector<5x160xf32> -> vector<5x160xf32>
    %225 = arith.addf %220, %224 : vector<5x160xf32>
    %226 = vector.extract_strided_slice %8 {offsets = [41, 0], sizes = [5, 80], strides = [1, 1]} : vector<64x112xf32> to vector<5x80xf32>
    %227 = arith.truncf %226 : vector<5x80xf32> to vector<5x80xbf16>
    %c880_115 = arith.constant 880 : index
    %c0_116 = arith.constant 0 : index
    %228 = vector.load %arg4[%c880_115, %c0_116] : memref<2000x160xbf16, #tpu.memory_space<vmem>>, vector<80x160xbf16>
    %cst_117 = arith.constant dense<0.000000e+00> : vector<5x160xf32>
    %229 = tpu.matmul %227, %228, %cst_117 {dimension_numbers = #tpu.dot_dimension_numbers<[1], [0], [0], [1], [0, 0, 1, 1], [], []>} : vector<5x80xbf16>, vector<80x160xbf16>, vector<5x160xf32> -> vector<5x160xf32>
    %230 = arith.addf %225, %229 : vector<5x160xf32>
    %231 = vector.extract_strided_slice %8 {offsets = [33, 16], sizes = [5, 80], strides = [1, 1]} : vector<64x112xf32> to vector<5x80xf32>
    %232 = arith.truncf %231 : vector<5x80xf32> to vector<5x80xbf16>
    %c960_118 = arith.constant 960 : index
    %c0_119 = arith.constant 0 : index
    %233 = vector.load %arg4[%c960_118, %c0_119] : memref<2000x160xbf16, #tpu.memory_space<vmem>>, vector<80x160xbf16>
    %cst_120 = arith.constant dense<0.000000e+00> : vector<5x160xf32>
    %234 = tpu.matmul %232, %233, %cst_120 {dimension_numbers = #tpu.dot_dimension_numbers<[1], [0], [0], [1], [0, 0, 1, 1], [], []>} : vector<5x80xbf16>, vector<80x160xbf16>, vector<5x160xf32> -> vector<5x160xf32>
    %235 = arith.addf %230, %234 : vector<5x160xf32>
    %236 = vector.extract_strided_slice %8 {offsets = [41, 16], sizes = [5, 80], strides = [1, 1]} : vector<64x112xf32> to vector<5x80xf32>
    %237 = arith.truncf %236 : vector<5x80xf32> to vector<5x80xbf16>
    %c1040_121 = arith.constant 1040 : index
    %c0_122 = arith.constant 0 : index
    %238 = vector.load %arg4[%c1040_121, %c0_122] : memref<2000x160xbf16, #tpu.memory_space<vmem>>, vector<80x160xbf16>
    %cst_123 = arith.constant dense<0.000000e+00> : vector<5x160xf32>
    %239 = tpu.matmul %237, %238, %cst_123 {dimension_numbers = #tpu.dot_dimension_numbers<[1], [0], [0], [1], [0, 0, 1, 1], [], []>} : vector<5x80xbf16>, vector<80x160xbf16>, vector<5x160xf32> -> vector<5x160xf32>
    %240 = arith.addf %235, %239 : vector<5x160xf32>
    %241 = vector.extract_strided_slice %8 {offsets = [33, 32], sizes = [5, 80], strides = [1, 1]} : vector<64x112xf32> to vector<5x80xf32>
    %242 = arith.truncf %241 : vector<5x80xf32> to vector<5x80xbf16>
    %c1120_124 = arith.constant 1120 : index
    %c0_125 = arith.constant 0 : index
    %243 = vector.load %arg4[%c1120_124, %c0_125] : memref<2000x160xbf16, #tpu.memory_space<vmem>>, vector<80x160xbf16>
    %cst_126 = arith.constant dense<0.000000e+00> : vector<5x160xf32>
    %244 = tpu.matmul %242, %243, %cst_126 {dimension_numbers = #tpu.dot_dimension_numbers<[1], [0], [0], [1], [0, 0, 1, 1], [], []>} : vector<5x80xbf16>, vector<80x160xbf16>, vector<5x160xf32> -> vector<5x160xf32>
    %245 = arith.addf %240, %244 : vector<5x160xf32>
    %246 = vector.extract_strided_slice %8 {offsets = [49, 0], sizes = [5, 80], strides = [1, 1]} : vector<64x112xf32> to vector<5x80xf32>
    %247 = arith.truncf %246 : vector<5x80xf32> to vector<5x80xbf16>
    %c1200_127 = arith.constant 1200 : index
    %c0_128 = arith.constant 0 : index
    %248 = vector.load %arg4[%c1200_127, %c0_128] : memref<2000x160xbf16, #tpu.memory_space<vmem>>, vector<80x160xbf16>
    %cst_129 = arith.constant dense<0.000000e+00> : vector<5x160xf32>
    %249 = tpu.matmul %247, %248, %cst_129 {dimension_numbers = #tpu.dot_dimension_numbers<[1], [0], [0], [1], [0, 0, 1, 1], [], []>} : vector<5x80xbf16>, vector<80x160xbf16>, vector<5x160xf32> -> vector<5x160xf32>
    %250 = arith.addf %245, %249 : vector<5x160xf32>
    %251 = vector.extract_strided_slice %8 {offsets = [57, 0], sizes = [5, 80], strides = [1, 1]} : vector<64x112xf32> to vector<5x80xf32>
    %252 = arith.truncf %251 : vector<5x80xf32> to vector<5x80xbf16>
    %c1280_130 = arith.constant 1280 : index
    %c0_131 = arith.constant 0 : index
    %253 = vector.load %arg4[%c1280_130, %c0_131] : memref<2000x160xbf16, #tpu.memory_space<vmem>>, vector<80x160xbf16>
    %cst_132 = arith.constant dense<0.000000e+00> : vector<5x160xf32>
    %254 = tpu.matmul %252, %253, %cst_132 {dimension_numbers = #tpu.dot_dimension_numbers<[1], [0], [0], [1], [0, 0, 1, 1], [], []>} : vector<5x80xbf16>, vector<80x160xbf16>, vector<5x160xf32> -> vector<5x160xf32>
    %255 = arith.addf %250, %254 : vector<5x160xf32>
    %256 = vector.extract_strided_slice %8 {offsets = [49, 16], sizes = [5, 80], strides = [1, 1]} : vector<64x112xf32> to vector<5x80xf32>
    %257 = arith.truncf %256 : vector<5x80xf32> to vector<5x80xbf16>
    %c1360_133 = arith.constant 1360 : index
    %c0_134 = arith.constant 0 : index
    %258 = vector.load %arg4[%c1360_133, %c0_134] : memref<2000x160xbf16, #tpu.memory_space<vmem>>, vector<80x160xbf16>
    %cst_135 = arith.constant dense<0.000000e+00> : vector<5x160xf32>
    %259 = tpu.matmul %257, %258, %cst_135 {dimension_numbers = #tpu.dot_dimension_numbers<[1], [0], [0], [1], [0, 0, 1, 1], [], []>} : vector<5x80xbf16>, vector<80x160xbf16>, vector<5x160xf32> -> vector<5x160xf32>
    %260 = arith.addf %255, %259 : vector<5x160xf32>
    %261 = vector.extract_strided_slice %8 {offsets = [57, 16], sizes = [5, 80], strides = [1, 1]} : vector<64x112xf32> to vector<5x80xf32>
    %262 = arith.truncf %261 : vector<5x80xf32> to vector<5x80xbf16>
    %c1440_136 = arith.constant 1440 : index
    %c0_137 = arith.constant 0 : index
    %263 = vector.load %arg4[%c1440_136, %c0_137] : memref<2000x160xbf16, #tpu.memory_space<vmem>>, vector<80x160xbf16>
    %cst_138 = arith.constant dense<0.000000e+00> : vector<5x160xf32>
    %264 = tpu.matmul %262, %263, %cst_138 {dimension_numbers = #tpu.dot_dimension_numbers<[1], [0], [0], [1], [0, 0, 1, 1], [], []>} : vector<5x80xbf16>, vector<80x160xbf16>, vector<5x160xf32> -> vector<5x160xf32>
    %265 = arith.addf %260, %264 : vector<5x160xf32>
    %266 = vector.extract_strided_slice %8 {offsets = [49, 32], sizes = [5, 80], strides = [1, 1]} : vector<64x112xf32> to vector<5x80xf32>
    %267 = arith.truncf %266 : vector<5x80xf32> to vector<5x80xbf16>
    %c1520_139 = arith.constant 1520 : index
    %c0_140 = arith.constant 0 : index
    %268 = vector.load %arg4[%c1520_139, %c0_140] : memref<2000x160xbf16, #tpu.memory_space<vmem>>, vector<80x160xbf16>
    %cst_141 = arith.constant dense<0.000000e+00> : vector<5x160xf32>
    %269 = tpu.matmul %267, %268, %cst_141 {dimension_numbers = #tpu.dot_dimension_numbers<[1], [0], [0], [1], [0, 0, 1, 1], [], []>} : vector<5x80xbf16>, vector<80x160xbf16>, vector<5x160xf32> -> vector<5x160xf32>
    %270 = arith.addf %265, %269 : vector<5x160xf32>
    %271 = vector.extract_strided_slice %8 {offsets = [34, 0], sizes = [5, 80], strides = [1, 1]} : vector<64x112xf32> to vector<5x80xf32>
    %272 = arith.truncf %271 : vector<5x80xf32> to vector<5x80xbf16>
    %c1600_142 = arith.constant 1600 : index
    %c0_143 = arith.constant 0 : index
    %273 = vector.load %arg4[%c1600_142, %c0_143] : memref<2000x160xbf16, #tpu.memory_space<vmem>>, vector<80x160xbf16>
    %cst_144 = arith.constant dense<0.000000e+00> : vector<5x160xf32>
    %274 = tpu.matmul %272, %273, %cst_144 {dimension_numbers = #tpu.dot_dimension_numbers<[1], [0], [0], [1], [0, 0, 1, 1], [], []>} : vector<5x80xbf16>, vector<80x160xbf16>, vector<5x160xf32> -> vector<5x160xf32>
    %275 = arith.addf %270, %274 : vector<5x160xf32>
    %276 = vector.extract_strided_slice %8 {offsets = [42, 0], sizes = [5, 80], strides = [1, 1]} : vector<64x112xf32> to vector<5x80xf32>
    %277 = arith.truncf %276 : vector<5x80xf32> to vector<5x80xbf16>
    %c1680_145 = arith.constant 1680 : index
    %c0_146 = arith.constant 0 : index
    %278 = vector.load %arg4[%c1680_145, %c0_146] : memref<2000x160xbf16, #tpu.memory_space<vmem>>, vector<80x160xbf16>
    %cst_147 = arith.constant dense<0.000000e+00> : vector<5x160xf32>
    %279 = tpu.matmul %277, %278, %cst_147 {dimension_numbers = #tpu.dot_dimension_numbers<[1], [0], [0], [1], [0, 0, 1, 1], [], []>} : vector<5x80xbf16>, vector<80x160xbf16>, vector<5x160xf32> -> vector<5x160xf32>
    %280 = arith.addf %275, %279 : vector<5x160xf32>
    %281 = vector.extract_strided_slice %8 {offsets = [34, 16], sizes = [5, 80], strides = [1, 1]} : vector<64x112xf32> to vector<5x80xf32>
    %282 = arith.truncf %281 : vector<5x80xf32> to vector<5x80xbf16>
    %c1760_148 = arith.constant 1760 : index
    %c0_149 = arith.constant 0 : index
    %283 = vector.load %arg4[%c1760_148, %c0_149] : memref<2000x160xbf16, #tpu.memory_space<vmem>>, vector<80x160xbf16>
    %cst_150 = arith.constant dense<0.000000e+00> : vector<5x160xf32>
    %284 = tpu.matmul %282, %283, %cst_150 {dimension_numbers = #tpu.dot_dimension_numbers<[1], [0], [0], [1], [0, 0, 1, 1], [], []>} : vector<5x80xbf16>, vector<80x160xbf16>, vector<5x160xf32> -> vector<5x160xf32>
    %285 = arith.addf %280, %284 : vector<5x160xf32>
    %286 = vector.extract_strided_slice %8 {offsets = [42, 16], sizes = [5, 80], strides = [1, 1]} : vector<64x112xf32> to vector<5x80xf32>
    %287 = arith.truncf %286 : vector<5x80xf32> to vector<5x80xbf16>
    %c1840_151 = arith.constant 1840 : index
    %c0_152 = arith.constant 0 : index
    %288 = vector.load %arg4[%c1840_151, %c0_152] : memref<2000x160xbf16, #tpu.memory_space<vmem>>, vector<80x160xbf16>
    %cst_153 = arith.constant dense<0.000000e+00> : vector<5x160xf32>
    %289 = tpu.matmul %287, %288, %cst_153 {dimension_numbers = #tpu.dot_dimension_numbers<[1], [0], [0], [1], [0, 0, 1, 1], [], []>} : vector<5x80xbf16>, vector<80x160xbf16>, vector<5x160xf32> -> vector<5x160xf32>
    %290 = arith.addf %285, %289 : vector<5x160xf32>
    %291 = vector.extract_strided_slice %8 {offsets = [34, 32], sizes = [5, 80], strides = [1, 1]} : vector<64x112xf32> to vector<5x80xf32>
    %292 = arith.truncf %291 : vector<5x80xf32> to vector<5x80xbf16>
    %c1920_154 = arith.constant 1920 : index
    %c0_155 = arith.constant 0 : index
    %293 = vector.load %arg4[%c1920_154, %c0_155] : memref<2000x160xbf16, #tpu.memory_space<vmem>>, vector<80x160xbf16>
    %cst_156 = arith.constant dense<0.000000e+00> : vector<5x160xf32>
    %294 = tpu.matmul %292, %293, %cst_156 {dimension_numbers = #tpu.dot_dimension_numbers<[1], [0], [0], [1], [0, 0, 1, 1], [], []>} : vector<5x80xbf16>, vector<80x160xbf16>, vector<5x160xf32> -> vector<5x160xf32>
    %295 = arith.addf %290, %294 : vector<5x160xf32>
    %c0_157 = arith.constant 0 : index
    %c0_158 = arith.constant 0 : index
    %296 = vector.load %arg5[%c0_157, %c0_158] : memref<1x160xf32, #tpu.memory_space<vmem>>, vector<1x160xf32>
    %297 = vector.broadcast %296 : vector<1x160xf32> to vector<5x160xf32>
    %298 = arith.addf %295, %297 : vector<5x160xf32>
    %cst_159 = arith.constant 0.000000e+00 : f32
    %299 = vector.broadcast %cst_159 : f32 to vector<5x160xf32>
    %300 = arith.maximumf %298, %299 : vector<5x160xf32>
    %cst_160 = arith.constant 0.000000e+00 : f32
    %301 = vector.broadcast %cst_160 : f32 to vector<1x32xf32>
    %302 = vector.extract_strided_slice %300 {offsets = [0, 0], sizes = [1, 160], strides = [1, 1]} : vector<5x160xf32> to vector<1x160xf32>
    %303 = arith.truncf %302 : vector<1x160xf32> to vector<1x160xbf16>
    %c0_161 = arith.constant 0 : index
    %c0_162 = arith.constant 0 : index
    %304 = vector.load %arg6[%c0_161, %c0_162] : memref<800x32xbf16, #tpu.memory_space<vmem>>, vector<160x32xbf16>
    %cst_163 = arith.constant dense<0.000000e+00> : vector<1x32xf32>
    %305 = tpu.matmul %303, %304, %cst_163 {dimension_numbers = #tpu.dot_dimension_numbers<[1], [0], [0], [1], [0, 0, 1, 1], [], []>} : vector<1x160xbf16>, vector<160x32xbf16>, vector<1x32xf32> -> vector<1x32xf32>
    %306 = arith.addf %301, %305 : vector<1x32xf32>
    %307 = vector.extract_strided_slice %300 {offsets = [1, 0], sizes = [1, 160], strides = [1, 1]} : vector<5x160xf32> to vector<1x160xf32>
    %308 = arith.truncf %307 : vector<1x160xf32> to vector<1x160xbf16>
    %c160_164 = arith.constant 160 : index
    %c0_165 = arith.constant 0 : index
    %309 = vector.load %arg6[%c160_164, %c0_165] : memref<800x32xbf16, #tpu.memory_space<vmem>>, vector<160x32xbf16>
    %cst_166 = arith.constant dense<0.000000e+00> : vector<1x32xf32>
    %310 = tpu.matmul %308, %309, %cst_166 {dimension_numbers = #tpu.dot_dimension_numbers<[1], [0], [0], [1], [0, 0, 1, 1], [], []>} : vector<1x160xbf16>, vector<160x32xbf16>, vector<1x32xf32> -> vector<1x32xf32>
    %311 = arith.addf %306, %310 : vector<1x32xf32>
    %312 = vector.extract_strided_slice %300 {offsets = [2, 0], sizes = [1, 160], strides = [1, 1]} : vector<5x160xf32> to vector<1x160xf32>
    %313 = arith.truncf %312 : vector<1x160xf32> to vector<1x160xbf16>
    %c320_167 = arith.constant 320 : index
    %c0_168 = arith.constant 0 : index
    %314 = vector.load %arg6[%c320_167, %c0_168] : memref<800x32xbf16, #tpu.memory_space<vmem>>, vector<160x32xbf16>
    %cst_169 = arith.constant dense<0.000000e+00> : vector<1x32xf32>
    %315 = tpu.matmul %313, %314, %cst_169 {dimension_numbers = #tpu.dot_dimension_numbers<[1], [0], [0], [1], [0, 0, 1, 1], [], []>} : vector<1x160xbf16>, vector<160x32xbf16>, vector<1x32xf32> -> vector<1x32xf32>
    %316 = arith.addf %311, %315 : vector<1x32xf32>
    %317 = vector.extract_strided_slice %300 {offsets = [3, 0], sizes = [1, 160], strides = [1, 1]} : vector<5x160xf32> to vector<1x160xf32>
    %318 = arith.truncf %317 : vector<1x160xf32> to vector<1x160xbf16>
    %c480_170 = arith.constant 480 : index
    %c0_171 = arith.constant 0 : index
    %319 = vector.load %arg6[%c480_170, %c0_171] : memref<800x32xbf16, #tpu.memory_space<vmem>>, vector<160x32xbf16>
    %cst_172 = arith.constant dense<0.000000e+00> : vector<1x32xf32>
    %320 = tpu.matmul %318, %319, %cst_172 {dimension_numbers = #tpu.dot_dimension_numbers<[1], [0], [0], [1], [0, 0, 1, 1], [], []>} : vector<1x160xbf16>, vector<160x32xbf16>, vector<1x32xf32> -> vector<1x32xf32>
    %321 = arith.addf %316, %320 : vector<1x32xf32>
    %322 = vector.extract_strided_slice %300 {offsets = [4, 0], sizes = [1, 160], strides = [1, 1]} : vector<5x160xf32> to vector<1x160xf32>
    %323 = arith.truncf %322 : vector<1x160xf32> to vector<1x160xbf16>
    %c640_173 = arith.constant 640 : index
    %c0_174 = arith.constant 0 : index
    %324 = vector.load %arg6[%c640_173, %c0_174] : memref<800x32xbf16, #tpu.memory_space<vmem>>, vector<160x32xbf16>
    %cst_175 = arith.constant dense<0.000000e+00> : vector<1x32xf32>
    %325 = tpu.matmul %323, %324, %cst_175 {dimension_numbers = #tpu.dot_dimension_numbers<[1], [0], [0], [1], [0, 0, 1, 1], [], []>} : vector<1x160xbf16>, vector<160x32xbf16>, vector<1x32xf32> -> vector<1x32xf32>
    %326 = arith.addf %321, %325 : vector<1x32xf32>
    %c0_176 = arith.constant 0 : index
    %c0_177 = arith.constant 0 : index
    %327 = vector.load %arg7[%c0_176, %c0_177] : memref<1x32xf32, #tpu.memory_space<vmem>>, vector<1x32xf32>
    %328 = arith.addf %326, %327 : vector<1x32xf32>
    %cst_178 = arith.constant 0.000000e+00 : f32
    %329 = vector.broadcast %cst_178 : f32 to vector<1x32xf32>
    %330 = arith.maximumf %328, %329 : vector<1x32xf32>
    %331 = tpu.concatenate %169, %330 in 0 : vector<1x32xf32>, vector<1x32xf32> -> vector<2x32xf32>
    %332 = arith.truncf %331 : vector<2x32xf32> to vector<2x32xbf16>
    %c0_179 = arith.constant 0 : index
    %c0_180 = arith.constant 0 : index
    %333 = vector.load %arg8[%c0_179, %c0_180] : memref<32x128xbf16, #tpu.memory_space<vmem>>, vector<32x128xbf16>
    %cst_181 = arith.constant dense<0.000000e+00> : vector<2x128xf32>
    %334 = tpu.matmul %332, %333, %cst_181 {dimension_numbers = #tpu.dot_dimension_numbers<[1], [0], [0], [1], [0, 0, 1, 1], [], []>} : vector<2x32xbf16>, vector<32x128xbf16>, vector<2x128xf32> -> vector<2x128xf32>
    %c0_182 = arith.constant 0 : index
    %c0_183 = arith.constant 0 : index
    %335 = vector.load %arg9[%c0_182, %c0_183] : memref<1x128xf32, #tpu.memory_space<vmem>>, vector<1x128xf32>
    %336 = vector.broadcast %335 : vector<1x128xf32> to vector<2x128xf32>
    %337 = arith.addf %334, %336 : vector<2x128xf32>
    %c0_184 = arith.constant 0 : index
    %c0_185 = arith.constant 0 : index
    %338 = vector.load %arg10[%c0_184, %c0_185] : memref<2x128xf32, #tpu.memory_space<vmem>>, vector<2x128xf32>
    tpu.vector_store %arg10[%c0_184, %c0_185], %337 {strides = array<i32>} : memref<2x128xf32, #tpu.memory_space<vmem>>, vector<2x128xf32>,
    return
  }
  func.func @transform_0(%arg0: i32) -> (i32, i32, i32) {
    %c0_i32 = arith.constant 0 : i32
    %c0_i32_0 = arith.constant 0 : i32
    %c0_i32_1 = arith.constant 0 : i32
    return %arg0, %c0_i32, %c0_i32_0 : i32, i32, i32
  }
  func.func @transform_1(%arg0: i32) -> (i32, i32) {
    %c0_i32 = arith.constant 0 : i32
    %c0_i32_0 = arith.constant 0 : i32
    %c0_i32_1 = arith.constant 0 : i32
    return %c0_i32, %c0_i32_0 : i32, i32
  }
  func.func @transform_2(%arg0: i32) -> (i32, i32) {
    %c0_i32 = arith.constant 0 : i32
    %c0_i32_0 = arith.constant 0 : i32
    %c0_i32_1 = arith.constant 0 : i32
    return %c0_i32, %c0_i32_0 : i32, i32
  }
  func.func @transform_3(%arg0: i32) -> (i32, i32) {
    %c0_i32 = arith.constant 0 : i32
    %c0_i32_0 = arith.constant 0 : i32
    %c0_i32_1 = arith.constant 0 : i32
    return %c0_i32, %c0_i32_0 : i32, i32
  }
  func.func @transform_4(%arg0: i32) -> (i32, i32) {
    %c0_i32 = arith.constant 0 : i32
    %c0_i32_0 = arith.constant 0 : i32
    %c0_i32_1 = arith.constant 0 : i32
    return %c0_i32, %c0_i32_0 : i32, i32
  }
  func.func @transform_5(%arg0: i32) -> (i32, i32) {
    %c0_i32 = arith.constant 0 : i32
    %c0_i32_0 = arith.constant 0 : i32
    %c0_i32_1 = arith.constant 0 : i32
    return %c0_i32, %c0_i32_0 : i32, i32
  }
  func.func @transform_6(%arg0: i32) -> (i32, i32) {
    %c0_i32 = arith.constant 0 : i32
    %c0_i32_0 = arith.constant 0 : i32
    %c0_i32_1 = arith.constant 0 : i32
    return %c0_i32, %c0_i32_0 : i32, i32
  }
  func.func @transform_7(%arg0: i32) -> (i32, i32) {
    %c0_i32 = arith.constant 0 : i32
    %c0_i32_0 = arith.constant 0 : i32
    %c0_i32_1 = arith.constant 0 : i32
    return %c0_i32, %c0_i32_0 : i32, i32
  }
  func.func @transform_8(%arg0: i32) -> (i32, i32) {
    %c0_i32 = arith.constant 0 : i32
    %c0_i32_0 = arith.constant 0 : i32
    %c0_i32_1 = arith.constant 0 : i32
    return %c0_i32, %c0_i32_0 : i32, i32
  }
  func.func @transform_9(%arg0: i32) -> (i32, i32) {
    %c0_i32 = arith.constant 0 : i32
    %c0_i32_0 = arith.constant 0 : i32
    return %arg0, %c0_i32 : i32, i32
  }
}

</mosaic_0001>

<bundles_post_ra>
// kernel: tile.18
= control target key start
LH: loop header
LB: loop body
LE: loop exit
PB: predicated region body
PF: predicated region fallthrough
CT: control target
= control target key end

     0   :  { %s22_s0 = inlined_call_operand.vmem [shape: f32[32], index: 0, kind: input, shape index: {}]   ;;  %s23_s1 = inlined_call_operand.vmem [shape: f32[5,32], index: 1, kind: output, shape index: {}]  }
   0x1   :  { %v4_v0 = vld [vmem:[%s22_s0] ss:$0 sm:$0xff] }
   0x2   :  { %5 = vst [vmem:[%s23_s1] sm:$0xff] %v4_v0 }

// kernel: tile.19
= control target key start
LH: loop header
LB: loop body
LE: loop exit
PB: predicated region body
PF: predicated region fallthrough
CT: control target
= control target key end

     0   :  { %s42_s8 = smov 96   ;;  %s2_s11 = smov 3  ;;  %vm4_vm0 = vcmask 261120   ;;  %vm10_vm1 = vcmask 1048320   ;;  %vm16_vm2 = vcmask 785920   ;;  %vm22_vm3 = vcmask 523520   ;;  %s73_s0 = inlined_call_operand.vmem [shape: f32[5,32], index: 0, kind: input, shape index: {}]   ;;  %s74_s1 = inlined_call_operand.vmem [shape: f32[1,160], index: 1, kind: output, shape index: {}]  }
   0x1   :  { %v35_v0 = vld [vmem:[%s73_s0 + $0x3] sm:$0x1]   ;;  %v37_v1 = vld [vmem:[%s73_s0 + $0x1] sm:$0x1]   ;;  %v36_v2 = vld [vmem:[%s73_s0 + $0x2] sm:$0x1]  }
   0x2   :  { %8 = vrot.lane.b32.xlu0 %v35_v0, %s42_s8  ;;  %s43_s14 = smov 32   ;;  %v3_v3 = vld [vmem:[%s73_s0] ss:$4 sm:%s2_s11]   ;;  %s44_s0 = smov 64  }
   0x3   :  { %20 = vrot.lane.b32.xlu1 %v37_v1, %s43_s14  ;;  %5 = vst.msk [vmem:[#allocation0] ss:$8 sm:$0x3] %vm4_vm0, %v3_v3  }
   0x6   :  { %14 = vrot.lane.b32.xlu0 %v36_v2, %s44_s0 }
   0xa   :  { %v31_v4 = vld [vmem:[#allocation0 + $0x8] sm:$0x1] }
   0xb   :  { %38 = vst [vmem:[%s74_s1 + $0x1] sm:$0x1] %v31_v4 }
  0x74   :  { %v9_v5 = vpop.permute.xlu0 %8  }
  0x75   :  { %11 = vst.msk [vmem:[#allocation0] sm:$0x1] %vm10_vm1, %v9_v5   ;;  %v21_v6 = vpop.permute.xlu1 %20  }
  0x78   :  { %v15_v7 = vpop.permute.xlu0 %14  }
  0x79   :  { %17 = vst.msk [vmem:[#allocation0] sm:$0x1] %vm16_vm2, %v15_v7  }
  0x7a   :  { %23 = vst.msk [vmem:[#allocation0] sm:$0x1] %vm22_vm3, %v21_v6  }
  0x81   :  { %v27_v8 = vld [vmem:[#allocation0] sm:$0x1] }
  0x82   :  { %29 = vst [vmem:[%s74_s1] sm:$0x1] %v27_v8 }

// kernel: tile.13
= control target key start
LH: loop header
LB: loop body
LE: loop exit
PB: predicated region body
PF: predicated region fallthrough
CT: control target
= control target key end

     0   :  { %s22_s0 = inlined_call_operand.vmem [shape: f32[16], index: 0, kind: input, shape index: {}]   ;;  %s23_s1 = inlined_call_operand.vmem [shape: f32[7,16], index: 1, kind: output, shape index: {}]  }
   0x1   :  { %v4_v0 = vld [vmem:[%s22_s0] ss:$0 sm:$0xff] }
   0x2   :  { %5 = vst [vmem:[%s23_s1] sm:$0xff] %v4_v0 }

// kernel: tile.14
= control target key start
LH: loop header
LB: loop body
LE: loop exit
PB: predicated region body
PF: predicated region fallthrough
CT: control target
= control target key end

     0   :  { %s59_s10 = smov 96   ;;  %s60_s11 = smov 64   ;;  %vm3_vm0 = vcmask 130048   ;;  %vm9_vm1 = vcmask 917248   ;;  %vm15_vm2 = vcmask 786048   ;;  %vm21_vm3 = vcmask 654848   ;;  %s99_s0 = inlined_call_operand.vmem [shape: f32[7,16], index: 0, kind: input, shape index: {}]   ;;  %s100_s1 = inlined_call_operand.vmem [shape: f32[1,112], index: 1, kind: output, shape index: {}]  }
   0x1   :  { %v47_v0 = vld [vmem:[%s99_s0 + $0x6] sm:$0x1]   ;;  %v49_v1 = vld [vmem:[%s99_s0 + $0x4] sm:$0x1]   ;;  %v48_v2 = vld [vmem:[%s99_s0 + $0x5] sm:$0x1]  }
   0x2   :  { %7 = vrot.lane.b32.xlu0 %v47_v0, %s59_s10  ;;  %19 = vrot.lane.b32.xlu1 %v49_v1, %s60_s11  ;;  %v50_v3 = vld [vmem:[%s99_s0 + $0x3] sm:$0x1]   ;;  %v2_v4 = vld [vmem:[%s99_s0] sm:$0x1]   ;;  %s61_s18 = smov 80   ;;  %s62_s19 = smov 48  }
   0x3   :  { %4 = vst.msk [vmem:[#allocation0] sm:$0x1] %vm3_vm0, %v2_v4   ;;  %v51_v5 = vld [vmem:[%s99_s0 + $0x2] sm:$0x1]   ;;  %v52_v6 = vld [vmem:[%s99_s0 + $0x1] sm:$0x1]  }
   0x4   :  { %s63_s0 = smov 32   ;;  %s64_s24 = smov 16   ;;  %vm27_vm4 = vcmask 523648   ;;  %vm33_vm5 = vcmask 392448   ;;  %vm39_vm6 = vcmask 261248  }
   0x6   :  { %13 = vrot.lane.b32.xlu0 %v48_v2, %s61_s18  ;;  %25 = vrot.lane.b32.xlu1 %v50_v3, %s62_s19 }
   0xa   :  { %31 = vrot.lane.b32.xlu0 %v51_v5, %s63_s0  ;;  %37 = vrot.lane.b32.xlu1 %v52_v6, %s64_s24 }
  0x74   :  { %v8_v7 = vpop.permute.xlu0 %7   ;;  %v20_v8 = vpop.permute.xlu1 %19  }
  0x75   :  { %10 = vst.msk [vmem:[#allocation0] sm:$0x1] %vm9_vm1, %v8_v7  }
  0x78   :  { %v14_v9 = vpop.permute.xlu0 %13   ;;  %v26_v10 = vpop.permute.xlu1 %25  }
  0x79   :  { %16 = vst.msk [vmem:[#allocation0] sm:$0x1] %vm15_vm2, %v14_v9  }
  0x7a   :  { %22 = vst.msk [vmem:[#allocation0] sm:$0x1] %vm21_vm3, %v20_v8  }
  0x7b   :  { %28 = vst.msk [vmem:[#allocation0] sm:$0x1] %vm27_vm4, %v26_v10  }
  0x7c   :  { %v32_v11 = vpop.permute.xlu0 %31   ;;  %v38_v12 = vpop.permute.xlu1 %37  }
  0x7d   :  { %34 = vst.msk [vmem:[#allocation0] sm:$0x1] %vm33_vm5, %v32_v11  }
  0x7e   :  { %40 = vst.msk [vmem:[#allocation0] sm:$0x1] %vm39_vm6, %v38_v12  }
  0x85   :  { %v44_v13 = vld [vmem:[#allocation0] sm:$0x1] }
  0x86   :  { %46 = vst [vmem:[%s100_s1] sm:$0x1] %v44_v13 }

// kernel: qnet_forward.1
= control target key start
LH: loop header
LB: loop body
LE: loop exit
PB: predicated region body
PF: predicated region fallthrough
CT: control target
= control target key end

     0   :  { %v7025_v33 = vmov 0   ;;  %vm532_vm0 = vcmask 490496   ;;  %vm545_vm1 = vcmask 1045504   ;;  %s9544_s0 = inlined_call_operand.vmem [shape: bf16[1,64,700], index: 0, kind: input, shape index: {}]   ;;  %s9545_s1 = inlined_call_operand.vmem [shape: bf16[700,112], index: 1, kind: input, shape index: {}]   ;;  %s9546_s2 = inlined_call_operand.vmem [shape: f32[1,112], index: 2, kind: input, shape index: {}]   ;;  %s9547_s3 = inlined_call_operand.vmem [shape: bf16[2000,160], index: 3, kind: input, shape index: {}]   ;;  %s9548_s4 = inlined_call_operand.vmem [shape: f32[1,160], index: 4, kind: input, shape index: {}]   ;;  %s9549_s5 = inlined_call_operand.vmem [shape: bf16[800,32], index: 5, kind: input, shape index: {}]   ;;  %s9550_s6 = inlined_call_operand.vmem [shape: f32[1,32], index: 6, kind: input, shape index: {}]   ;;  %s9551_s7 = inlined_call_operand.vmem [shape: bf16[32,128], index: 7, kind: input, shape index: {}]   ;;  %s9552_s8 = inlined_call_operand.vmem [shape: f32[1,128], index: 8, kind: input, shape index: {}]   ;;  %s9553_s9 = inlined_call_operand.hbm [shape: f32[2,128], index: 9, kind: output, shape index: {}]  }
   0x1   :  { %v6194_v0 = vld [vmem:[%s9545_s1 + $0x40] sm:$0xff]   ;;  %v6198_v4 = vld [vmem:[%s9545_s1 + $0x48] sm:$0xff]   ;;  %v6202_v8 = vld [vmem:[%s9545_s1 + $0x50] sm:$0xff]  }
   0x2   :  { %v6195_v1 = vld [vmem:[%s9545_s1] sm:$0xff]   ;;  %6097 = vmatprep.subr.bf16.mxu0 %v6194_v0  ;;  %v6199_v5 = vld [vmem:[%s9545_s1 + $0x8] sm:$0xff]   ;;  %v6203_v9 = vld [vmem:[%s9545_s1 + $0x10] sm:$0xff]  }
   0x3   :  { %v6196_v2 = vld [vmem:[%s9545_s1 + $0xc0] sm:$0xff]   ;;  %6098 = vmatpush3.bf16.msra.mxu0 %v6195_v1  ;;  %v6200_v6 = vld [vmem:[%s9545_s1 + $0xc8] sm:$0xff]   ;;  %v6204_v10 = vld [vmem:[%s9545_s1 + $0xd0] sm:$0xff]  }
   0x4   :  { %v6197_v3 = vld [vmem:[%s9545_s1 + $0x80] sm:$0xff]   ;;  %6137 = vmatprep.subr.bf16.mxu1 %v6196_v2  ;;  %6099 = vmatprep.subr.bf16.mxu0 %v6198_v4  ;;  %v6201_v7 = vld [vmem:[%s9545_s1 + $0x88] sm:$0xff]   ;;  %v6205_v11 = vld [vmem:[%s9545_s1 + $0x90] sm:$0xff]  }
   0x5   :  { %6138 = vmatpush3.bf16.msra.mxu1 %v6197_v3  ;;  %v6206_v12 = vld [vmem:[%s9545_s1 + $0x58] sm:$0xff]   ;;  %v6210_v16 = vld [vmem:[%s9545_s1 + $0x60] sm:$0xff]   ;;  %v6214_v20 = vld [vmem:[%s9545_s1 + $0x68] sm:$0xff]  }
   0x6   :  { %6139 = vmatprep.subr.bf16.mxu1 %v6200_v6  ;;  %v6207_v13 = vld [vmem:[%s9545_s1 + $0x18] sm:$0xff]   ;;  %v6211_v17 = vld [vmem:[%s9545_s1 + $0x20] sm:$0xff]   ;;  %v6215_v21 = vld [vmem:[%s9545_s1 + $0x28] sm:$0xff]  }
   0x7   :  { %6100 = vmatpush3.bf16.msra.mxu0 %v6199_v5  ;;  %v6208_v14 = vld [vmem:[%s9545_s1 + $0xd8] sm:$0xff]   ;;  %v6212_v18 = vld [vmem:[%s9545_s1 + $0xe0] sm:$0xff]   ;;  %v6216_v22 = vld [vmem:[%s9545_s1 + $0xe8] sm:$0xff]  }
   0x8   :  { %6101 = vmatprep.subr.bf16.mxu0 %v6202_v8  ;;  %v6209_v15 = vld [vmem:[%s9545_s1 + $0x98] sm:$0xff]   ;;  %v6213_v19 = vld [vmem:[%s9545_s1 + $0xa0] sm:$0xff]   ;;  %v6217_v23 = vld [vmem:[%s9545_s1 + $0xa8] sm:$0xff]  }
   0x9   :  { %6140 = vmatpush3.bf16.msra.mxu1 %v6201_v7  ;;  %v6218_v24 = vld [vmem:[%s9545_s1 + $0x70] sm:$0xff]   ;;  %v6222_v28 = vld [vmem:[%s9545_s1 + $0x78] sm:$0xff]   ;;  %v6229_v35 = vld [vmem:[%s9544_s0 + $0x8] ss:$24 sps:$4 sm:$0xff]  }
   0xa   :  { %6141 = vmatprep.subr.bf16.mxu1 %v6204_v10  ;;  %v6219_v25 = vld [vmem:[%s9545_s1 + $0x30] sm:$0xff]   ;;  %v6223_v29 = vld [vmem:[%s9545_s1 + $0x38] sm:$0xff]   ;;  %v6231_v36 = vld [vmem:[%s9544_s0 + $0xc] ss:$24 sps:$4 sm:$0xff]  }
   0xb   :  { %6102 = vmatpush3.bf16.msra.mxu0 %v6203_v9  ;;  %v6220_v26 = vld [vmem:[%s9545_s1 + $0xf0] sm:$0xff]   ;;  %v6224_v30 = vld [vmem:[%s9545_s1 + $0xf8] sm:$0xff]   ;;  %v6232_v37 = vld [vmem:[%s9545_s1 + $0x100] sm:$0xff]   ;;  %646 = vmatprep.mubr.bf16.mxu1 %v6231_v36 }
   0xc   :  { %6103 = vmatprep.subr.bf16.mxu0 %v6206_v12  ;;  %v6221_v27 = vld [vmem:[%s9545_s1 + $0xb0] sm:$0xff]   ;;  %v6225_v31 = vld [vmem:[%s9544_s0] ss:$24 sps:$4 sm:$0xff]   ;;  %v6227_v32 = vld [vmem:[%s9544_s0 + $0x4] ss:$24 sps:$4 sm:$0xff]  }
   0xd   :  { %6142 = vmatpush3.bf16.msra.mxu1 %v6205_v11  ;;  %v6228_v34 = vld [vmem:[%s9545_s1 + $0xb8] sm:$0xff]   ;;  %581 = vmatprep.mubr.bf16.mxu0 %v6227_v32  ;;  %v6233_v38 = vld [vmem:[%s9545_s1 + $0x108] sm:$0xff]   ;;  %v6234_v41 = vld [vmem:[%s9545_s1 + $0x110] sm:$0xff]  }
   0xe   :  { %6143 = vmatprep.subr.bf16.mxu1 %v6208_v14  ;;  %v6237_v39 = vld [vmem:[%s9544_s0 + $0x34] ss:$24 sps:$4 sm:$0xff]   ;;  %v6239_v40 = vld [vmem:[%s9544_s0 + $0x30] ss:$24 sps:$4 sm:$0xff]   ;;  %v6235_v44 = vld [vmem:[%s9545_s1 + $0x118] sm:$0xff]  }
   0xf   :  { %6104 = vmatpush3.bf16.msra.mxu0 %v6207_v13  ;;  %v6241_v42 = vld [vmem:[%s9544_s0 + $0x3c] ss:$24 sps:$4 sm:$0xff]   ;;  %v6243_v43 = vld [vmem:[%s9544_s0 + $0x38] ss:$24 sps:$4 sm:$0xff]   ;;  %v6249_v47 = vld [vmem:[%s9544_s0 + $0x6c] ss:$24 sps:$4 sm:$0xff]  }
  0x10   :  { %6105 = vmatprep.subr.bf16.mxu0 %v6210_v16  ;;  %v6245_v45 = vld [vmem:[%s9544_s0 + $0x64] ss:$24 sps:$4 sm:$0xff]   ;;  %v6247_v46 = vld [vmem:[%s9544_s0 + $0x60] ss:$24 sps:$4 sm:$0xff]   ;;  %v6253_v49 = vld [vmem:[%s9544_s0 + $0x94] ss:$24 sps:$4 sm:$0xff]  }
  0x11   :  { %6144 = vmatpush3.bf16.msra.mxu1 %v6209_v15  ;;  %v6236_v48 = vld [vmem:[%s9545_s1 + $0x120] sm:$0xff]   ;;  %v6257_v51 = vld [vmem:[%s9544_s0 + $0x9c] ss:$24 sps:$4 sm:$0xff]   ;;  %v6240_v52 = vld [vmem:[%s9545_s1 + $0x128] sm:$0xff]  }
  0x12   :  { %6145 = vmatprep.subr.bf16.mxu1 %v6212_v18  ;;  %v6251_v50 = vld [vmem:[%s9544_s0 + $0x68] ss:$24 sps:$4 sm:$0xff]   ;;  %v6264_v54 = vld [vmem:[%s9544_s0 + $0x14] ss:$24 sps:$4 sm:$0xff]   ;;  %v6259_v56 = vld [vmem:[%s9544_s0 + $0x98] ss:$24 sps:$4 sm:$0xff]  }
  0x13   :  { %6106 = vmatpush3.bf16.msra.mxu0 %v6211_v17  ;;  %v6255_v53 = vld [vmem:[%s9544_s0 + $0x90] ss:$24 sps:$4 sm:$0xff]   ;;  %v6248_v57 = vld [vmem:[%s9545_s1 + $0x138] sm:$0xff]   ;;  %v6252_v58 = vld [vmem:[%s9545_s1 + $0x140] sm:$0xff]  }
  0x14   :  { %6107 = vmatprep.subr.bf16.mxu0 %v6214_v20  ;;  %v6244_v55 = vld [vmem:[%s9545_s1 + $0x130] sm:$0xff]   ;;  %v6256_v59 = vld [vmem:[%s9545_s1 + $0x148] sm:$0xff]   ;;  %v6261_v61 = vld [vmem:[%s9545_s1 + $0x158] sm:$0x3f]  }
  0x15   :  { %6146 = vmatpush3.bf16.msra.mxu1 %v6213_v19  ;;  %v6260_v60 = vld [vmem:[%s9545_s1 + $0x150] sm:$0xff]   ;;  %v547_v62 = vsel %vm545_vm1, %v6261_v61, 0  ;;  %v6265_v0 = vld [vmem:[%s9544_s0 + $0x44] ss:$24 sps:$4 sm:$0xff]   ;;  %v6267_v1 = vld [vmem:[%s9544_s0 + $0x40] ss:$24 sps:$4 sm:$0xff]  }
  0x16   :  { %6147 = vmatprep.subr.bf16.mxu1 %v6216_v22  ;;  %v6262_v63 = vld [vmem:[%s9544_s0 + $0x10] ss:$24 sps:$4 sm:$0xff]   ;;  %v6268_v2 = vld [vmem:[%s9544_s0 + $0x74] ss:$24 sps:$4 sm:$0xff]   ;;  %v6271_v4 = vld [vmem:[%s9544_s0 + $0xa4] ss:$24 sps:$4 sm:$0xff]  }
  0x17   :  { %6108 = vmatpush3.bf16.msra.mxu0 %v6215_v21  ;;  %v6270_v3 = vld [vmem:[%s9544_s0 + $0x70] ss:$24 sps:$4 sm:$0xff]   ;;  %v6273_v5 = vld [vmem:[%s9544_s0 + $0xa0] ss:$24 sps:$4 sm:$0xff]   ;;  %v6276_v7 = vld [vmem:[%s9547_s3 + $0x4] ss:$8 sps:$4 sm:$0xff]  }
  0x18   :  { %6109 = vmatprep.subr.bf16.mxu0 %v6218_v24  ;;  %v6274_v6 = vld [vmem:[%s9547_s3] ss:$8 sps:$4 sm:$0xff]   ;;  %v6277_v8 = vld [vmem:[%s9547_s3 + $0x50] ss:$8 sps:$4 sm:$0xff]   ;;  %v6279_v9 = vld [vmem:[%s9547_s3 + $0x54] ss:$8 sps:$4 sm:$0xff]  }
  0x19   :  { %6148 = vmatpush3.bf16.msra.mxu1 %v6217_v23  ;;  %v6280_v10 = vld [vmem:[%s9547_s3 + $0x10] ss:$8 sps:$4 sm:$0xff]   ;;  %v6282_v11 = vld [vmem:[%s9547_s3 + $0x14] ss:$8 sps:$4 sm:$0xff]   ;;  %v6283_v12 = vld [vmem:[%s9547_s3 + $0x60] ss:$8 sps:$4 sm:$0xff]  }
  0x1a   :  { %6149 = vmatprep.subr.bf16.mxu1 %v6220_v26  ;;  %v6285_v13 = vld [vmem:[%s9547_s3 + $0x64] ss:$8 sps:$4 sm:$0xff]   ;;  %v6286_v14 = vld [vmem:[%s9547_s3 + $0x20] ss:$8 sps:$4 sm:$0xff]   ;;  %v6289_v16 = vld [vmem:[%s9547_s3 + $0x70] ss:$8 sps:$4 sm:$0xff]  }
  0x1b   :  { %6110 = vmatpush3.bf16.msra.mxu0 %v6219_v25  ;;  %v6288_v15 = vld [vmem:[%s9547_s3 + $0x24] ss:$8 sps:$4 sm:$0xff]   ;;  %v6291_v17 = vld [vmem:[%s9547_s3 + $0x74] ss:$8 sps:$4 sm:$0xff]   ;;  %v6292_v19 = vld [vmem:[%s9547_s3 + $0x30] ss:$8 sps:$4 sm:$0xff]  }
  0x1c   :  { %6111 = vmatprep.subr.bf16.mxu0 %v6222_v28  ;;  %v6294_v18 = vld [vmem:[%s9547_s3 + $0x34] ss:$8 sps:$4 sm:$0xff]   ;;  %v6297_v20 = vld [vmem:[%s9547_s3 + $0x84] ss:$8 sps:$4 sm:$0xff]   ;;  %v6295_v21 = vld [vmem:[%s9547_s3 + $0x80] ss:$8 sps:$4 sm:$0xff]  }
  0x1d   :  { %6150 = vmatpush3.bf16.msra.mxu1 %v6221_v27  ;;  %v6300_v22 = vld [vmem:[%s9547_s3 + $0x44] ss:$8 sps:$4 sm:$0xff]   ;;  %v6298_v23 = vld [vmem:[%s9547_s3 + $0x40] ss:$8 sps:$4 sm:$0xff]   ;;  %v6303_v24 = vld [vmem:[%s9547_s3 + $0x94] ss:$8 sps:$4 sm:$0xff]  }
  0x1e   :  { %6151 = vmatprep.subr.bf16.mxu1 %v6224_v30  ;;  %v6301_v25 = vld [vmem:[%s9547_s3 + $0x90] ss:$8 sps:$4 sm:$0xff]  }
  0x1f   :  { %6112 = vmatpush3.bf16.msra.mxu0 %v6223_v29 }
  0x20   :  { %679 = vmatprep.subr.bf16.mxu0 %v7025_v33 }
  0x21   :  { %6152 = vmatpush3.bf16.msra.mxu1 %v6228_v34 }
  0x22   :  { %582 = vmatmul.mubr.bf16.vlgmr.msra.gmra.mrb[0].mxu0 %v6225_v31  ;;  %922 = vmatprep.subr.bf16.mxu1 %v6276_v7 }
  0x23   :  { %680 = vmatpush1.bf16.msra.mxu0 %v6232_v37  ;;  %589 = vmatprep.mubr.bf16.mxu0 %v6237_v39 }
  0x24   :  { %647 = vmatmul.mubr.bf16.vlgmr.msra.gmra.mrb[0].mxu1 %v6229_v35  ;;  %681 = vmatprep.subr.bf16.mxu0 %v7025_v33 }
  0x25   :  { %654 = vmatprep.mubr.bf16.mxu1 %v6241_v42  ;;  %923 = vmatpush1.bf16.msra.mxu1 %v6274_v6 }
  0x26   :  { %924 = vmatprep.subr.bf16.mxu1 %v6282_v11 }
  0x27   :  { %682 = vmatpush1.bf16.msra.mxu0 %v6233_v38 }
  0x28   :  { %683 = vmatprep.subr.bf16.mxu0 %v7025_v33 }
  0x29   :  { %925 = vmatpush1.bf16.msra.mxu1 %v6280_v10 }
  0x2a   :  { %590 = vmatmul.mubr.bf16.gmra.mrb[4].mxu0 %v6239_v40  ;;  %926 = vmatprep.subr.bf16.mxu1 %v6288_v15 }
  0x2b   :  { %684 = vmatpush1.bf16.msra.mxu0 %v6234_v41  ;;  %597 = vmatprep.mubr.bf16.mxu0 %v6245_v45 }
  0x2c   :  { %685 = vmatprep.subr.bf16.mxu0 %v7025_v33  ;;  %655 = vmatmul.mubr.bf16.gmra.mrb[4].mxu1 %v6243_v43 }
  0x2d   :  { %662 = vmatprep.mubr.bf16.mxu1 %v6249_v47  ;;  %927 = vmatpush1.bf16.msra.mxu1 %v6286_v14 }
  0x2e   :  { %928 = vmatprep.subr.bf16.mxu1 %v6294_v18 }
  0x2f   :  { %686 = vmatpush1.bf16.msra.mxu0 %v6235_v44 }
  0x30   :  { %687 = vmatprep.subr.bf16.mxu0 %v7025_v33 }
  0x31   :  { %929 = vmatpush1.bf16.msra.mxu1 %v6292_v19 }
  0x32   :  { %598 = vmatmul.mubr.bf16.gmra.mrb[8].mxu0 %v6247_v46  ;;  %930 = vmatprep.subr.bf16.mxu1 %v6300_v22 }
  0x33   :  { %605 = vmatprep.mubr.bf16.mxu0 %v6253_v49  ;;  %688 = vmatpush1.bf16.msra.mxu0 %v6236_v48 }
  0x34   :  { %689 = vmatprep.subr.bf16.mxu0 %v7025_v33  ;;  %663 = vmatmul.mubr.bf16.gmra.mrb[8].mxu1 %v6251_v50 }
  0x35   :  { %670 = vmatprep.mubr.bf16.mxu1 %v6257_v51  ;;  %931 = vmatpush1.bf16.msra.mxu1 %v6298_v23 }
  0x37   :  { %690 = vmatpush1.bf16.msra.mxu0 %v6240_v52 }
  0x38   :  { %691 = vmatprep.subr.bf16.mxu0 %v7025_v33 }
  0x3a   :  { %606 = vmatmul.mubr.bf16.gmra.mrb[12].mxu0 %v6255_v53 }
  0x3b   :  { %5729 = vmatprep.mubr.msk.bf16.mxu0 %vm532_vm0, %v6264_v54  ;;  %692 = vmatpush1.bf16.msra.mxu0 %v6244_v55 }
  0x3c   :  { %693 = vmatprep.subr.bf16.mxu0 %v7025_v33  ;;  %671 = vmatmul.mubr.bf16.gmra.mrb[12].mxu1 %v6259_v56 }
  0x3d   :  { %954 = vmatprep.mubr.bf16.mxu1 %v7025_v33 }
  0x3f   :  { %694 = vmatpush1.bf16.msra.mxu0 %v6248_v57 }
  0x40   :  { %695 = vmatprep.subr.bf16.mxu0 %v7025_v33 }
  0x43   :  { %696 = vmatpush1.bf16.msra.mxu0 %v6252_v58 }
  0x44   :  { %697 = vmatprep.subr.bf16.mxu0 %v7025_v33 }
  0x47   :  { %698 = vmatpush1.bf16.msra.mxu0 %v6256_v59 }
  0x48   :  { %699 = vmatprep.subr.bf16.mxu0 %v7025_v33 }
  0x4b   :  { %700 = vmatpush1.bf16.msra.mxu0 %v6260_v60 }
  0x4c   :  { %701 = vmatprep.subr.bf16.mxu0 %v7025_v33 }
  0x4f   :  { %702 = vmatpush1.bf16.msra.mxu0 %v547_v62 }
  0x50   :  { %828 = vmatprep.subr.bf16.mxu0 %v6279_v9 }
  0x52   :  { %712 = vmatmul.mubr.bf16.vlgmr.msra.gmra.mrb[16].mxu0 %v6262_v63 }
  0x53   :  { %5730 = vmatprep.mubr.msk.bf16.mxu0 %vm532_vm0, %v6265_v0  ;;  %829 = vmatpush1.bf16.msra.mxu0 %v6277_v8 }
  0x54   :  { %830 = vmatprep.subr.bf16.mxu0 %v6285_v13 }
  0x57   :  { %831 = vmatpush1.bf16.msra.mxu0 %v6283_v12 }
  0x58   :  { %832 = vmatprep.subr.bf16.mxu0 %v6291_v17 }
  0x5a   :  { %720 = vmatmul.mubr.bf16.gmra.mrb[20].mxu0 %v6267_v1 }
  0x5b   :  { %5731 = vmatprep.mubr.msk.bf16.mxu0 %vm532_vm0, %v6268_v2  ;;  %833 = vmatpush1.bf16.msra.mxu0 %v6289_v16 }
  0x5c   :  { %834 = vmatprep.subr.bf16.mxu0 %v6297_v20 }
  0x5f   :  { %835 = vmatpush1.bf16.msra.mxu0 %v6295_v21 }
  0x60   :  { %836 = vmatprep.subr.bf16.mxu0 %v6303_v24 }
  0x62   :  { %728 = vmatmul.mubr.bf16.gmra.mrb[24].mxu0 %v6270_v3 }
  0x63   :  { %5732 = vmatprep.mubr.msk.bf16.mxu0 %vm532_vm0, %v6271_v4  ;;  %837 = vmatpush1.bf16.msra.mxu0 %v6301_v25 }
  0x6a   :  { %736 = vmatmul.mubr.bf16.gmra.mrb[28].mxu0 %v6273_v5 }
  0x6b   :  { %860 = vmatprep.mubr.bf16.mxu0 %v7025_v33 }
  0x6c   :  { %14 = vsyncpa [#allocation3], 0  ;;  %v6306_v26 = vld [vmem:[%s9547_s3 + $0xa4] ss:$8 sps:$4 sm:$0xff]   ;;  %v6312_v27 = vld [vmem:[%s9547_s3 + $0xf4] ss:$8 sps:$4 sm:$0xff]  }
  0x6d   :  { %1029 = vmatprep.subr.bf16.mxu1 %v6306_v26  ;;  %1138 = vmatprep.subr.bf16.mxu0 %v6312_v27  ;;  %v5660_v29 = vld [vmem:[%s9546_s2] ss:$0 sm:$0xff]  ;;  %vm824_vm2 = vcmask 654336   ;;  %s7026_s23 = smov 96   ;;  %s7027_s24 = smov 112   ;;  %vm3588_vm3 = vcmask 261120  }
  0x6e   :  { %vm7029_vm4 = vmmov 0   ;;  %vm5576_vm5 = vcmask 1040384  }
  0xf5   :  { %v6113_v28 = vpop.f32.mrb[0].mxu0 }
  0xf6   :  { %v6114_v30 = vpop.f32.mrb[1].mxu0 }
  0xf7   :  { %v6115_v31 = vadd.f32 %v6114_v30, %v6113_v28  ;;  %v6116_v32 = vpop.f32.mrb[2].mxu0  ;;  %v6153_v34 = vpop.f32.mrb[0].mxu1 }
  0xf8   :  { %v6117_v35 = vpop.f32.mrb[3].mxu0  ;;  %v6154_v38 = vpop.f32.mrb[1].mxu1 }
  0xf9   :  { %v584_v36 = vadd.f32 %v6115_v31, %v5660_v29  ;;  %v6118_v37 = vadd.f32 %v6117_v35, %v6116_v32  ;;  %v6155_v39 = vadd.f32 %v6154_v38, %v6153_v34  ;;  %v6156_v40 = vpop.f32.mrb[2].mxu1 }
  0xfa   :  { %v6157_v42 = vpop.f32.mrb[3].mxu1 }
  0xfb   :  { %v587_v41 = vadd.f32 %v6118_v37, %v5660_v29  ;;  %v6158_v43 = vadd.f32 %v6157_v42, %v6156_v40  ;;  %v649_v44 = vadd.f32 %v6155_v39, %v584_v36  ;;  %v6310_v42 = vld [vmem:[%s9547_s3 + $0xf0] ss:$8 sps:$4 sm:$0xff]  }
  0xfd   :  { %v6119_v45 = vpop.f32.mrb[4].mxu0  ;;  %v652_v47 = vadd.f32 %v6158_v43, %v587_v41  ;;  %v6309_v41 = vld [vmem:[%s9547_s3 + $0xb4] ss:$8 sps:$4 sm:$0xff]  }
  0xfe   :  { %v6120_v46 = vpop.f32.mrb[5].mxu0 }
  0xff   :  { %v6121_v48 = vadd.f32 %v6120_v46, %v6119_v45  ;;  %v6122_v49 = vpop.f32.mrb[6].mxu0  ;;  %v6159_v50 = vpop.f32.mrb[4].mxu1 }
 0x100   :  { %v6123_v51 = vpop.f32.mrb[7].mxu0  ;;  %v6160_v54 = vpop.f32.mrb[5].mxu1 }
 0x101   :  { %v592_v52 = vadd.f32 %v6121_v48, %v5660_v29  ;;  %v6124_v53 = vadd.f32 %v6123_v51, %v6122_v49  ;;  %v6161_v55 = vadd.f32 %v6160_v54, %v6159_v50  ;;  %v6162_v56 = vpop.f32.mrb[6].mxu1  ;;  %v6307_v48 = vld [vmem:[%s9547_s3 + $0xb0] ss:$8 sps:$4 sm:$0xff]   ;;  %v6315_v50 = vld [vmem:[%s9547_s3 + $0xc4] ss:$8 sps:$4 sm:$0xff]  }
 0x102   :  { %v6163_v58 = vpop.f32.mrb[7].mxu1  ;;  %v6316_v51 = vld [vmem:[%s9547_s3 + $0x100] ss:$8 sps:$4 sm:$0xff]  }
 0x103   :  { %v595_v57 = vadd.f32 %v6124_v53, %v5660_v29  ;;  %v6164_v59 = vadd.f32 %v6163_v58, %v6162_v56  ;;  %v657_v60 = vadd.f32 %v6161_v55, %v592_v52  ;;  %v6324_v56 = vld [vmem:[%s9547_s3 + $0x114] ss:$8 sps:$4 sm:$0xff]  }
 0x105   :  { %v6125_v61 = vpop.f32.mrb[8].mxu0  ;;  %v7372_v63 = vadd.f32 %v6164_v59, %v595_v57 }
 0x106   :  { %v6126_v62 = vpop.f32.mrb[9].mxu0 }
 0x107   :  { %v6127_v0 = vadd.f32 %v6126_v62, %v6125_v61  ;;  %v6128_v1 = vpop.f32.mrb[10].mxu0  ;;  %v6165_v2 = vpop.f32.mrb[8].mxu1  ;;  %v6321_v61 = vld [vmem:[%s9547_s3 + $0xd4] ss:$8 sps:$4 sm:$0xff]   ;;  %v6322_v62 = vld [vmem:[%s9547_s3 + $0x110] ss:$8 sps:$4 sm:$0xff]  }
 0x108   :  { %v6129_v3 = vpop.f32.mrb[11].mxu0  ;;  %v6166_v6 = vpop.f32.mrb[9].mxu1 }
 0x109   :  { %v600_v4 = vadd.f32 %v6127_v0, %v5660_v29  ;;  %v6130_v5 = vadd.f32 %v6129_v3, %v6128_v1  ;;  %v6167_v7 = vadd.f32 %v6166_v6, %v6165_v2  ;;  %v6168_v8 = vpop.f32.mrb[10].mxu1  ;;  %v6330_v1 = vld [vmem:[%s9547_s3 + $0x124] ss:$8 sps:$4 sm:$0xff]  }
 0x10a   :  { %v6169_v10 = vpop.f32.mrb[11].mxu1 }
 0x10b   :  { %v603_v9 = vadd.f32 %v6130_v5, %v5660_v29  ;;  %v6170_v11 = vadd.f32 %v6169_v10, %v6168_v8  ;;  %v7374_v12 = vadd.f32 %v6167_v7, %v600_v4  ;;  %v6319_v8 = vld [vmem:[%s9547_s3 + $0xd0] ss:$8 sps:$4 sm:$0xff]   ;;  %v6327_v10 = vld [vmem:[%s9547_s3 + $0xe4] ss:$8 sps:$4 sm:$0xff]  }
 0x10d   :  { %v6131_v13 = vpop.f32.mrb[12].mxu0  ;;  %v7376_v15 = vadd.f32 %v6170_v11, %v603_v9  ;;  %v6328_v11 = vld [vmem:[%s9547_s3 + $0x120] ss:$8 sps:$4 sm:$0xff]  }
 0x10e   :  { %v6132_v14 = vpop.f32.mrb[13].mxu0 }
 0x10f   :  { %v6133_v16 = vadd.f32 %v6132_v14, %v6131_v13  ;;  %v6134_v17 = vpop.f32.mrb[14].mxu0  ;;  %v6171_v18 = vpop.f32.mrb[12].mxu1 }
 0x110   :  { %v6135_v19 = vpop.f32.mrb[15].mxu0  ;;  %v6172_v22 = vpop.f32.mrb[13].mxu1 }
 0x111   :  { %v608_v20 = vadd.f32 %v6133_v16, %v5660_v29  ;;  %v6136_v21 = vadd.f32 %v6135_v19, %v6134_v17  ;;  %v6173_v23 = vadd.f32 %v6172_v22, %v6171_v18  ;;  %v6174_v24 = vpop.f32.mrb[14].mxu1  ;;  %v6333_v18 = vld [vmem:[%s9547_s3 + $0x134] ss:$8 sps:$4 sm:$0xff]   ;;  %v6336_v22 = vld [vmem:[%s9547_s3 + $0x144] ss:$8 sps:$4 sm:$0xff]  }
 0x112   :  { %v6175_v26 = vpop.f32.mrb[15].mxu1 }
 0x113   :  { %v611_v25 = vadd.f32 %v6136_v21, %v5660_v29  ;;  %v6176_v27 = vadd.f32 %v6175_v26, %v6174_v24  ;;  %v7378_v28 = vadd.f32 %v6173_v23, %v608_v20  ;;  %v6304_v29 = vld [vmem:[%s9547_s3 + $0xa0] ss:$8 sps:$4 sm:$0xff]   ;;  %v6331_v21 = vld [vmem:[%s9547_s3 + $0x130] ss:$8 sps:$4 sm:$0xff]  }
 0x114   :  { %v6325_v20 = vld [vmem:[%s9547_s3 + $0xe0] ss:$8 sps:$4 sm:$0xff]  }
 0x115   :  { %v7380_v30 = vadd.f32 %v6176_v27, %v611_v25  ;;  %v6339_v25 = vld [vmem:[%s9547_s3 + $0x194] ss:$8 sps:$4 sm:$0xff]  }
 0x125   :  { %v713_v31 = vpop.f32.mrb[16].mxu0 }
 0x126   :  { %v714_v32 = vadd.f32 %v713_v31, %v649_v44  ;;  %v715_v34 = vpop.f32.mrb[17].mxu0  ;;  %v6318_v44 = vld [vmem:[%s9547_s3 + $0x104] ss:$8 sps:$4 sm:$0xff]  }
 0x127   :  { %v716_v35 = vpop.f32.mrb[18].mxu0 }
 0x128   :  { %v744_v36 = vmax.f32 %v714_v32, 0.0  ;;  %v717_v37 = vadd.f32 %v716_v35, %v652_v47  ;;  %v718_v38 = vpop.f32.mrb[19].mxu0 }
 0x12a   :  { %v7382_v39 = vpack.c.bf16 %v744_v36, %v744_v36  ;;  %v745_v40 = vmax.f32 %v717_v37, 0.0 }
 0x12c   :  { %v7393_v43 = vpack.c.bf16 %v745_v40, %v745_v40  ;;  %1191 = vrot.lane.b32.xlu1 %v7382_v39, %s7026_s23  ;;  %974 = vrot.lane.b32.xlu0 %v7382_v39, %s7027_s24  ;;  %v1841_v55 = vshll.u32 %v7382_v39, 16  ;;  %v1839_v5 = vshrl.u32 %v7382_v39, 16  ;;  %v7502_v38 = vrot.slane %v7382_v39, 1 }
 0x12d   :  { %5754 = vmatmul.mubr.msk.bf16.vlgmr.msra.gmra.mrb[16].mxu1 %vm824_vm2, %v7382_v39  ;;  %v721_v45 = vpop.f32.mrb[20].mxu0 }
 0x12e   :  { %v722_v46 = vadd.f32 %v721_v45, %v657_v60  ;;  %v723_v47 = vpop.f32.mrb[21].mxu0  ;;  %5743 = vmatmul.mubr.msk.bf16.vlgmr.msra.gmra.mrb[32].mxu0 %vm824_vm2, %v7393_v43  ;;  %1030 = vmatpush1.bf16.msra.mxu1 %v6304_v29  ;;  %v1953_v59 = vshll.u32 %v7393_v43, 16  ;;  %v6313_v60 = vld [vmem:[%s9547_s3 + $0xc0] ss:$8 sps:$4 sm:$0xff]   ;;  %v1843_v0 = vrot.slane %v1841_v55, 1  ;;  %v1951_v16 = vshrl.u32 %v7393_v43, 16 }
 0x12f   :  { %v724_v49 = vpop.f32.mrb[22].mxu0  ;;  %1031 = vmatprep.subr.bf16.mxu1 %v6309_v41  ;;  %1139 = vmatpush1.bf16.msra.mxu0 %v6310_v42 }
 0x130   :  { %v746_v52 = vmax.f32 %v722_v46, 0.0  ;;  %v725_v53 = vadd.f32 %v724_v49, %v7372_v63  ;;  %1083 = vrot.lane.b32.xlu0 %v7393_v43, %s7027_s24  ;;  %v726_v54 = vpop.f32.mrb[23].mxu0  ;;  %1140 = vmatprep.subr.bf16.mxu0 %v6318_v44  ;;  %v1955_v6 = vrot.slane %v1953_v59, 1  ;;  %v7460_v13 = vor.u32 %v1843_v0, %v1839_v5 }
 0x131   :  { %1061 = vmatprep.mubr.bf16.mxu1 %v7025_v33  ;;  %1170 = vmatprep.mubr.bf16.mxu0 %v7025_v33 }
 0x132   :  { %v7424_v57 = vpack.c.bf16 %v746_v52, %v746_v52  ;;  %v747_v58 = vmax.f32 %v725_v53, 0.0  ;;  %1032 = vmatpush1.bf16.msra.mxu1 %v6307_v48  ;;  %v7469_v19 = vor.u32 %v1955_v6, %v1951_v16  ;;  %v6337_v6 = vld [vmem:[%s9547_s3 + $0x190] ss:$8 sps:$4 sm:$0xff]   ;;  %v6354_v16 = vld [vmem:[%s9547_s3 + $0x1b4] ss:$8 sps:$4 sm:$0xff]  }
 0x133   :  { %1033 = vmatprep.subr.bf16.mxu1 %v6315_v50  ;;  %1141 = vmatpush1.bf16.msra.mxu0 %v6316_v51 }
 0x134   :  { %v7436_v63 = vpack.c.bf16 %v747_v58, %v747_v58  ;;  %1514 = vrot.lane.b32.xlu1 %v7424_v57, %s7027_s24  ;;  %1142 = vmatprep.subr.bf16.mxu0 %v6324_v56  ;;  %v2389_v7 = vshll.u32 %v7424_v57, 16  ;;  %v2387_v23 = vshrl.u32 %v7424_v57, 16 }
 0x135   :  { %v729_v2 = vpop.f32.mrb[24].mxu0 }
 0x136   :  { %v730_v3 = vadd.f32 %v729_v2, %v7374_v12  ;;  %v731_v4 = vpop.f32.mrb[25].mxu0  ;;  %1623 = vrot.lane.b32.xlu0 %v7436_v63, %s7027_s24  ;;  %1034 = vmatpush1.bf16.msra.mxu1 %v6313_v60  ;;  %v2501_v17 = vshll.u32 %v7436_v63, 16  ;;  %v2499_v34 = vshrl.u32 %v7436_v63, 16 }
 0x137   :  { %v732_v9 = vpop.f32.mrb[26].mxu0  ;;  %1035 = vmatprep.subr.bf16.mxu1 %v6321_v61  ;;  %1143 = vmatpush1.bf16.msra.mxu0 %v6322_v62  ;;  %v6342_v4 = vld [vmem:[%s9547_s3 + $0x154] ss:$8 sps:$4 sm:$0xff]  }
 0x138   :  { %v733_v12 = vadd.f32 %v732_v9, %v7376_v15  ;;  %1731 = vrot.lane.b32.xlu1 %v7424_v57, %s7026_s23  ;;  %v734_v14 = vpop.f32.mrb[27].mxu0  ;;  %1144 = vmatprep.subr.bf16.mxu0 %v6330_v1  ;;  %v2391_v15 = vrot.slane %v2389_v7, 1  ;;  %v2503_v24 = vrot.slane %v2501_v17, 1  ;;  %v748_v40 = vmax.f32 %v730_v3, 0.0  ;;  %v6334_v3 = vld [vmem:[%s9547_s3 + $0x140] ss:$8 sps:$4 sm:$0xff]  }
 0x139   :  { %v6340_v7 = vld [vmem:[%s9547_s3 + $0x150] ss:$8 sps:$4 sm:$0xff]   ;;  %v6348_v9 = vld [vmem:[%s9547_s3 + $0x1a4] ss:$8 sps:$4 sm:$0xff]   ;;  %v6351_v14 = vld [vmem:[%s9547_s3 + $0x174] ss:$8 sps:$4 sm:$0xff]  }
 0x13a   :  { %2063 = vrot.lane.b32.xlu0 %v7460_v13, %s7027_s24  ;;  %1036 = vmatpush1.bf16.msra.mxu1 %v6319_v8  ;;  %v7489_v32 = vor.u32 %v2391_v15, %v2387_v23  ;;  %v7495_v37 = vor.u32 %v2503_v24, %v2499_v34  ;;  %v749_v29 = vmax.f32 %v733_v12, 0.0  ;;  %v7510_v41 = vpack.c.bf16 %v748_v40, %v748_v40  ;;  %v6345_v8 = vld [vmem:[%s9547_s3 + $0x164] ss:$8 sps:$4 sm:$0xff]   ;;  %v6346_v12 = vld [vmem:[%s9547_s3 + $0x1a0] ss:$8 sps:$4 sm:$0xff]  }
 0x13b   :  { %1037 = vmatprep.subr.bf16.mxu1 %v6327_v10  ;;  %1145 = vmatpush1.bf16.msra.mxu0 %v6328_v11  ;;  %v6343_v11 = vld [vmem:[%s9547_s3 + $0x160] ss:$8 sps:$4 sm:$0xff]   ;;  %v6349_v17 = vld [vmem:[%s9547_s3 + $0x170] ss:$8 sps:$4 sm:$0xff]   ;;  %v6357_v15 = vld [vmem:[%s9547_s3 + $0x184] ss:$8 sps:$4 sm:$0xff]  }
 0x13c   :  { %2171 = vrot.lane.b32.xlu1 %v7469_v19, %s7027_s24  ;;  %1146 = vmatprep.subr.bf16.mxu0 %v6333_v18  ;;  %v7514_v42 = vpack.c.bf16 %v749_v29, %v749_v29  ;;  %v4598_v45 = vshll.u32 %v7510_v41, 16  ;;  %v4596_v50 = vshrl.u32 %v7510_v41, 16  ;;  %v7561_v1 = vrot.slane %v7510_v41, 1  ;;  %v6352_v18 = vld [vmem:[%s9547_s3 + $0x1b0] ss:$8 sps:$4 sm:$0xff]  }
 0x13d   :  { %v737_v26 = vpop.f32.mrb[28].mxu0  ;;  %v6363_v23 = vld [vmem:[%s9547_s3 + $0x1d4] ss:$8 sps:$4 sm:$0xff]   ;;  %v6366_v24 = vld [vmem:[%s9547_s3 + $0x1e4] ss:$8 sps:$4 sm:$0xff]  }
 0x13e   :  { %v738_v27 = vadd.f32 %v737_v26, %v7378_v28  ;;  %v739_v31 = vpop.f32.mrb[29].mxu0  ;;  %2279 = vrot.lane.b32.xlu0 %v7460_v13, %s7026_s23  ;;  %1038 = vmatpush1.bf16.msra.mxu1 %v6325_v20  ;;  %v4650_v47 = vshll.u32 %v7514_v42, 16  ;;  %v4600_v49 = vrot.slane %v4598_v45, 1  ;;  %v4648_v54 = vshrl.u32 %v7514_v42, 16  ;;  %v6360_v20 = vld [vmem:[%s9547_s3 + $0x1c4] ss:$8 sps:$4 sm:$0xff]  }
 0x13f   :  { %v740_v35 = vpop.f32.mrb[30].mxu0  ;;  %1246 = vmatprep.subr.bf16.mxu1 %v6336_v22  ;;  %1147 = vmatpush1.bf16.msra.mxu0 %v6331_v21  ;;  %v5139_v2 = vrot.slane %v7514_v42, 1  ;;  %v6355_v21 = vld [vmem:[%s9547_s3 + $0x180] ss:$8 sps:$4 sm:$0xff]   ;;  %v6372_v31 = vld [vmem:[%s9547_s3 + $0x234] ss:$8 sps:$4 sm:$0xff]  }
 0x140   :  { %v741_v36 = vadd.f32 %v740_v35, %v7380_v30  ;;  %2611 = vrot.lane.b32.xlu1 %v7489_v32, %s7027_s24  ;;  %1353 = vmatprep.subr.bf16.mxu0 %v6339_v25  ;;  %v742_v28 = vpop.f32.mrb[31].mxu0  ;;  %v3042_v30 = vrot.slane %v7393_v43, 1  ;;  %v750_v39 = vmax.f32 %v738_v27, 0.0  ;;  %v4652_v51 = vrot.slane %v4650_v47, 1  ;;  %v6358_v22 = vld [vmem:[%s9547_s3 + $0x1c0] ss:$8 sps:$4 sm:$0xff]  }
 0x141   :  { %v7536_v53 = vor.u32 %v4600_v49, %v4596_v50  ;;  %v6361_v25 = vld [vmem:[%s9547_s3 + $0x1d0] ss:$8 sps:$4 sm:$0xff]   ;;  %v6364_v26 = vld [vmem:[%s9547_s3 + $0x1e0] ss:$8 sps:$4 sm:$0xff]   ;;  %v6369_v27 = vld [vmem:[%s9547_s3 + $0x1f4] ss:$8 sps:$4 sm:$0xff]  }
 0x142   :  { %2719 = vrot.lane.b32.xlu0 %v7495_v37, %s7027_s24  ;;  %v751_v44 = vmax.f32 %v741_v36, 0.0  ;;  %v7521_v46 = vpack.c.bf16 %v750_v39, %v750_v39  ;;  %v7542_v56 = vor.u32 %v4652_v51, %v4648_v54  ;;  %v6367_v35 = vld [vmem:[%s9547_s3 + $0x1f0] ss:$8 sps:$4 sm:$0xff]   ;;  %v6375_v28 = vld [vmem:[%s9547_s3 + $0x204] ss:$8 sps:$4 sm:$0xff]  }
 0x143   :  { %v6370_v36 = vld [vmem:[%s9547_s3 + $0x230] ss:$8 sps:$4 sm:$0xff]   ;;  %v6378_v40 = vld [vmem:[%s9547_s3 + $0x244] ss:$8 sps:$4 sm:$0xff]   ;;  %v6373_v29 = vld [vmem:[%s9547_s3 + $0x200] ss:$8 sps:$4 sm:$0xff]  }
 0x144   :  { %2827 = vrot.lane.b32.xlu1 %v7489_v32, %s7026_s23  ;;  %v7526_v48 = vpack.c.bf16 %v751_v44, %v751_v44  ;;  %v4846_v52 = vshll.u32 %v7521_v46, 16  ;;  %v4844_v59 = vshrl.u32 %v7521_v46, 16  ;;  %v6376_v39 = vld [vmem:[%s9547_s3 + $0x240] ss:$8 sps:$4 sm:$0xff]   ;;  %v6381_v44 = vld [vmem:[%s9547_s3 + $0x214] ss:$8 sps:$4 sm:$0xff]  }
 0x145   :  { %v6379_v45 = vld [vmem:[%s9547_s3 + $0x210] ss:$8 sps:$4 sm:$0xff]   ;;  %v6387_v49 = vld [vmem:[%s9547_s3 + $0x224] ss:$8 sps:$4 sm:$0xff]   ;;  %v6385_v51 = vld [vmem:[%s9547_s3 + $0x220] ss:$8 sps:$4 sm:$0xff]  }
 0x146   :  { %3149 = vrot.lane.b32.xlu0 %v7502_v38, %s7027_s24  ;;  %v4898_v55 = vshll.u32 %v7526_v48, 16  ;;  %v4848_v58 = vrot.slane %v4846_v52, 1  ;;  %v4896_v62 = vshrl.u32 %v7526_v48, 16  ;;  %v6382_v47 = vld [vmem:[%s9547_s3 + $0x250] ss:$8 sps:$4 sm:$0xff]  }
 0x147   :  { %v6390_v50 = vld [vmem:[%s9547_s3 + $0x264] ss:$8 sps:$4 sm:$0xff]   ;;  %v6388_v52 = vld [vmem:[%s9547_s3 + $0x260] ss:$8 sps:$4 sm:$0xff]   ;;  %v6393_v54 = vld [vmem:[%s9547_s3 + $0x274] ss:$8 sps:$4 sm:$0xff]  }
 0x148   :  { %3257 = vrot.lane.b32.xlu1 %v3042_v30, %s7027_s24  ;;  %v4900_v60 = vrot.slane %v4898_v55, 1  ;;  %v7549_v61 = vor.u32 %v4848_v58, %v4844_v59  ;;  %v6396_v55 = vld [vmem:[%s9547_s3 + $0x284] ss:$8 sps:$4 sm:$0xff]   ;;  %v6391_v58 = vld [vmem:[%s9547_s3 + $0x270] ss:$8 sps:$4 sm:$0xff]  }
 0x149   :  { %v6394_v59 = vld [vmem:[%s9547_s3 + $0x280] ss:$8 sps:$4 sm:$0xff]   ;;  %v6624_v43 = vld [vmem:[%s9547_s3 + $0x754] ss:$8 sps:$4 sm:$0xff]  }
 0x14a   :  { %3365 = vrot.lane.b32.xlu0 %v7502_v38, %s7026_s23  ;;  %v7554_v0 = vor.u32 %v4900_v60, %v4896_v62  ;;  %v6399_v60 = vld [vmem:[%s9547_s3 + $0x294] ss:$8 sps:$4 sm:$0xff]  }
 0x14b   :  { %v6402_v62 = vld [vmem:[%s9547_s3 + $0x2d4] ss:$8 sps:$4 sm:$0xff]  }
 0x14c   :  { %4211 = vrot.lane.b32.xlu1 %v7510_v41, %s7027_s24 }
 0x14e   :  { %4260 = vrot.lane.b32.xlu0 %v7514_v42, %s7027_s24 }
 0x150   :  { %4308 = vrot.lane.b32.xlu1 %v7510_v41, %s7026_s23 }
 0x152   :  { %4451 = vrot.lane.b32.xlu0 %v7521_v46, %s7027_s24 }
 0x154   :  { %4500 = vrot.lane.b32.xlu1 %v7526_v48, %s7027_s24 }
 0x156   :  { %4548 = vrot.lane.b32.xlu0 %v7521_v46, %s7026_s23 }
 0x158   :  { %4700 = vrot.lane.b32.xlu1 %v7536_v53, %s7027_s24 }
 0x15a   :  { %4748 = vrot.lane.b32.xlu0 %v7542_v56, %s7027_s24 }
 0x15c   :  { %4796 = vrot.lane.b32.xlu1 %v7536_v53, %s7026_s23 }
 0x15e   :  { %4948 = vrot.lane.b32.xlu0 %v7549_v61, %s7027_s24 }
 0x160   :  { %4996 = vrot.lane.b32.xlu1 %v7554_v0, %s7027_s24 }
 0x162   :  { %5044 = vrot.lane.b32.xlu0 %v7549_v61, %s7026_s23 }
 0x164   :  { %5186 = vrot.lane.b32.xlu1 %v7561_v1, %s7027_s24 }
 0x166   :  { %5234 = vrot.lane.b32.xlu0 %v5139_v2, %s7027_s24 }
 0x168   :  { %5282 = vrot.lane.b32.xlu1 %v7561_v1, %s7026_s23 }
 0x19e   :  { %v975_v5 = vpop.permute.xlu0 %974  ;;  %v1192_v34 = vpop.permute.xlu1 %1191 }
 0x19f   :  { %5765 = vmatmul.mubr.msk.bf16.vlgmr.msra.gmra.mrb[20].mxu1 %vm824_vm2, %v975_v5  ;;  %v6405_v5 = vld [vmem:[%s9547_s3 + $0x2a4] ss:$8 sps:$4 sm:$0xff]  }
 0x1a0   :  { %1247 = vmatpush1.bf16.msra.mxu1 %v6334_v3  ;;  %1278 = vmatprep.mubr.bf16.mxu1 %v7025_v33  ;;  %v6397_v3 = vld [vmem:[%s9547_s3 + $0x290] ss:$8 sps:$4 sm:$0xff]  }
 0x1a1   :  { %1248 = vmatprep.subr.bf16.mxu1 %v6342_v4  ;;  %v6400_v4 = vld [vmem:[%s9547_s3 + $0x2d0] ss:$8 sps:$4 sm:$0xff]  }
 0x1a2   :  { %v1084_v10 = vpop.permute.xlu0 %1083 }
 0x1a3   :  { %5776 = vmatmul.mubr.msk.bf16.vlgmr.msra.gmra.mrb[36].mxu0 %vm824_vm2, %v1084_v10  ;;  %v6414_v10 = vld [vmem:[%s9547_s3 + $0x2f4] ss:$8 sps:$4 sm:$0xff]  }
 0x1a4   :  { %1249 = vmatpush1.bf16.msra.mxu1 %v6340_v7  ;;  %1354 = vmatpush1.bf16.msra.mxu0 %v6337_v6  ;;  %v6403_v7 = vld [vmem:[%s9547_s3 + $0x2a0] ss:$8 sps:$4 sm:$0xff]  }
 0x1a5   :  { %1250 = vmatprep.subr.bf16.mxu1 %v6345_v8  ;;  %1355 = vmatprep.subr.bf16.mxu0 %v6348_v9  ;;  %v6406_v8 = vld [vmem:[%s9547_s3 + $0x2e0] ss:$8 sps:$4 sm:$0xff]   ;;  %v6411_v9 = vld [vmem:[%s9547_s3 + $0x2b4] ss:$8 sps:$4 sm:$0xff]  }
 0x1a6   :  { %1385 = vmatprep.mubr.bf16.mxu0 %v7025_v33  ;;  %v1515_v6 = vpop.permute.xlu1 %1514 }
 0x1a8   :  { %1251 = vmatpush1.bf16.msra.mxu1 %v6343_v11  ;;  %1356 = vmatpush1.bf16.msra.mxu0 %v6346_v12  ;;  %v6409_v11 = vld [vmem:[%s9547_s3 + $0x2b0] ss:$8 sps:$4 sm:$0xff]  }
 0x1a9   :  { %1252 = vmatprep.subr.bf16.mxu1 %v6351_v14  ;;  %1357 = vmatprep.subr.bf16.mxu0 %v6354_v16  ;;  %v6412_v12 = vld [vmem:[%s9547_s3 + $0x2f0] ss:$8 sps:$4 sm:$0xff]   ;;  %v6417_v14 = vld [vmem:[%s9547_s3 + $0x2c4] ss:$8 sps:$4 sm:$0xff]  }
 0x1aa   :  { %v6420_v16 = vld [vmem:[%s9547_s3 + $0x304] ss:$8 sps:$4 sm:$0xff]  }
 0x1ac   :  { %1253 = vmatpush1.bf16.msra.mxu1 %v6349_v17  ;;  %1358 = vmatpush1.bf16.msra.mxu0 %v6352_v18  ;;  %v6415_v17 = vld [vmem:[%s9547_s3 + $0x2c0] ss:$8 sps:$4 sm:$0xff]  }
 0x1ad   :  { %1254 = vmatprep.subr.bf16.mxu1 %v6357_v15  ;;  %1359 = vmatprep.subr.bf16.mxu0 %v6360_v20  ;;  %v6418_v18 = vld [vmem:[%s9547_s3 + $0x300] ss:$8 sps:$4 sm:$0xff]   ;;  %v6423_v15 = vld [vmem:[%s9547_s3 + $0x314] ss:$8 sps:$4 sm:$0xff]   ;;  %v6426_v20 = vld [vmem:[%s9547_s3 + $0x324] ss:$8 sps:$4 sm:$0xff]  }
 0x1b0   :  { %1255 = vmatpush1.bf16.msra.mxu1 %v6355_v21  ;;  %1360 = vmatpush1.bf16.msra.mxu0 %v6358_v22  ;;  %v6421_v21 = vld [vmem:[%s9547_s3 + $0x310] ss:$8 sps:$4 sm:$0xff]   ;;  %v6424_v22 = vld [vmem:[%s9547_s3 + $0x320] ss:$8 sps:$4 sm:$0xff]  }
 0x1b1   :  { %1361 = vmatprep.subr.bf16.mxu0 %v6363_v23  ;;  %1460 = vmatprep.subr.bf16.mxu1 %v6366_v24  ;;  %v6429_v23 = vld [vmem:[%s9547_s3 + $0x334] ss:$8 sps:$4 sm:$0xff]  }
 0x1b2   :  { %v6432_v24 = vld [vmem:[%s9547_s3 + $0x374] ss:$8 sps:$4 sm:$0xff]  }
 0x1b3   :  { %5787 = vmatmul.mubr.msk.bf16.vlgmr.msra.gmra.mrb[24].mxu1 %vm824_vm2, %v1192_v34  ;;  %v6438_v34 = vld [vmem:[%s9547_s3 + $0x384] ss:$8 sps:$4 sm:$0xff]  }
 0x1b4   :  { %1362 = vmatpush1.bf16.msra.mxu0 %v6361_v25  ;;  %1461 = vmatpush1.bf16.msra.mxu1 %v6364_v26  ;;  %v1624_v25 = vpop.permute.xlu0 %1623  ;;  %v6427_v26 = vld [vmem:[%s9547_s3 + $0x330] ss:$8 sps:$4 sm:$0xff]  }
 0x1b5   :  { %1462 = vmatprep.subr.bf16.mxu1 %v6369_v27  ;;  %1569 = vmatprep.subr.bf16.mxu0 %v6372_v31  ;;  %v6430_v27 = vld [vmem:[%s9547_s3 + $0x370] ss:$8 sps:$4 sm:$0xff]   ;;  %v6435_v31 = vld [vmem:[%s9547_s3 + $0x344] ss:$8 sps:$4 sm:$0xff]  }
 0x1b6   :  { %1492 = vmatprep.mubr.bf16.mxu1 %v7025_v33 }
 0x1b7   :  { %5798 = vmatmul.mubr.msk.bf16.vlgmr.msra.gmra.mrb[40].mxu0 %vm824_vm2, %v7424_v57  ;;  %v6384_v57 = vld [vmem:[%s9547_s3 + $0x254] ss:$8 sps:$4 sm:$0xff]  }
 0x1b8   :  { %1463 = vmatpush1.bf16.msra.mxu1 %v6367_v35  ;;  %1570 = vmatpush1.bf16.msra.mxu0 %v6370_v36  ;;  %v1732_v35 = vpop.permute.xlu1 %1731  ;;  %v6433_v36 = vld [vmem:[%s9547_s3 + $0x340] ss:$8 sps:$4 sm:$0xff]  }
 0x1b9   :  { %1464 = vmatprep.subr.bf16.mxu1 %v6375_v28  ;;  %1571 = vmatprep.subr.bf16.mxu0 %v6378_v40  ;;  %v6436_v28 = vld [vmem:[%s9547_s3 + $0x380] ss:$8 sps:$4 sm:$0xff]   ;;  %v6441_v40 = vld [vmem:[%s9547_s3 + $0x354] ss:$8 sps:$4 sm:$0xff]  }
 0x1ba   :  { %1601 = vmatprep.mubr.bf16.mxu0 %v7025_v33 }
 0x1bc   :  { %1465 = vmatpush1.bf16.msra.mxu1 %v6373_v29  ;;  %1572 = vmatpush1.bf16.msra.mxu0 %v6376_v39  ;;  %v6444_v29 = vld [vmem:[%s9547_s3 + $0x394] ss:$8 sps:$4 sm:$0xff]   ;;  %v6439_v39 = vld [vmem:[%s9547_s3 + $0x350] ss:$8 sps:$4 sm:$0xff]  }
 0x1bd   :  { %1466 = vmatprep.subr.bf16.mxu1 %v6381_v44  ;;  %1573 = vmatprep.subr.bf16.mxu0 %v6384_v57  ;;  %v6442_v44 = vld [vmem:[%s9547_s3 + $0x390] ss:$8 sps:$4 sm:$0xff]   ;;  %v6447_v57 = vld [vmem:[%s9547_s3 + $0x364] ss:$8 sps:$4 sm:$0xff]  }
 0x1c0   :  { %1467 = vmatpush1.bf16.msra.mxu1 %v6379_v45  ;;  %1574 = vmatpush1.bf16.msra.mxu0 %v6382_v47  ;;  %v6450_v45 = vld [vmem:[%s9547_s3 + $0x3a4] ss:$8 sps:$4 sm:$0xff]   ;;  %v6445_v47 = vld [vmem:[%s9547_s3 + $0x360] ss:$8 sps:$4 sm:$0xff]  }
 0x1c1   :  { %1468 = vmatprep.subr.bf16.mxu1 %v6387_v49  ;;  %1575 = vmatprep.subr.bf16.mxu0 %v6390_v50  ;;  %v6448_v49 = vld [vmem:[%s9547_s3 + $0x3a0] ss:$8 sps:$4 sm:$0xff]   ;;  %v6453_v50 = vld [vmem:[%s9547_s3 + $0x3b4] ss:$8 sps:$4 sm:$0xff]  }
 0x1c4   :  { %1469 = vmatpush1.bf16.msra.mxu1 %v6385_v51  ;;  %1576 = vmatpush1.bf16.msra.mxu0 %v6388_v52  ;;  %v6456_v51 = vld [vmem:[%s9547_s3 + $0x3c4] ss:$8 sps:$4 sm:$0xff]   ;;  %v6451_v52 = vld [vmem:[%s9547_s3 + $0x3b0] ss:$8 sps:$4 sm:$0xff]  }
 0x1c5   :  { %1577 = vmatprep.subr.bf16.mxu0 %v6393_v54  ;;  %1678 = vmatprep.subr.bf16.mxu1 %v6396_v55  ;;  %v6454_v54 = vld [vmem:[%s9547_s3 + $0x3c0] ss:$8 sps:$4 sm:$0xff]   ;;  %v6459_v55 = vld [vmem:[%s9547_s3 + $0x3d4] ss:$8 sps:$4 sm:$0xff]  }
 0x1c7   :  { %5809 = vmatmul.mubr.msk.bf16.vlgmr.msra.gmra.mrb[28].mxu1 %vm824_vm2, %v7436_v63  ;;  %v6408_v63 = vld [vmem:[%s9547_s3 + $0x2e4] ss:$8 sps:$4 sm:$0xff]  }
 0x1c8   :  { %1578 = vmatpush1.bf16.msra.mxu0 %v6391_v58  ;;  %1679 = vmatpush1.bf16.msra.mxu1 %v6394_v59  ;;  %v6462_v58 = vld [vmem:[%s9547_s3 + $0x414] ss:$8 sps:$4 sm:$0xff]   ;;  %v6457_v59 = vld [vmem:[%s9547_s3 + $0x3d0] ss:$8 sps:$4 sm:$0xff]  }
 0x1c9   :  { %1680 = vmatprep.subr.bf16.mxu1 %v6399_v60  ;;  %1786 = vmatprep.subr.bf16.mxu0 %v6402_v62  ;;  %v6460_v60 = vld [vmem:[%s9547_s3 + $0x410] ss:$8 sps:$4 sm:$0xff]   ;;  %v6465_v62 = vld [vmem:[%s9547_s3 + $0x3e4] ss:$8 sps:$4 sm:$0xff]  }
 0x1ca   :  { %1710 = vmatprep.mubr.bf16.mxu1 %v7025_v33 }
 0x1cb   :  { %5820 = vmatmul.mubr.msk.bf16.vlgmr.msra.gmra.mrb[44].mxu0 %vm824_vm2, %v1515_v6  ;;  %v6472_v6 = vld [vmem:[%s9547_s3 + $0x430] ss:$8 sps:$4 sm:$0xff]  }
 0x1cc   :  { %1681 = vmatpush1.bf16.msra.mxu1 %v6397_v3  ;;  %1787 = vmatpush1.bf16.msra.mxu0 %v6400_v4  ;;  %v6463_v3 = vld [vmem:[%s9547_s3 + $0x3e0] ss:$8 sps:$4 sm:$0xff]  }
 0x1cd   :  { %1682 = vmatprep.subr.bf16.mxu1 %v6405_v5  ;;  %1788 = vmatprep.subr.bf16.mxu0 %v6408_v63  ;;  %v6466_v4 = vld [vmem:[%s9547_s3 + $0x420] ss:$8 sps:$4 sm:$0xff]   ;;  %v6471_v5 = vld [vmem:[%s9547_s3 + $0x3f4] ss:$8 sps:$4 sm:$0xff]   ;;  %v6469_v63 = vld [vmem:[%s9547_s3 + $0x3f0] ss:$8 sps:$4 sm:$0xff]  }
 0x1ce   :  { %1818 = vmatprep.mubr.bf16.mxu0 %v7025_v33 }
 0x1d0   :  { %1683 = vmatpush1.bf16.msra.mxu1 %v6403_v7  ;;  %1789 = vmatpush1.bf16.msra.mxu0 %v6406_v8  ;;  %v6477_v7 = vld [vmem:[%s9547_s3 + $0x404] ss:$8 sps:$4 sm:$0xff]  }
 0x1d1   :  { %1684 = vmatprep.subr.bf16.mxu1 %v6411_v9  ;;  %1790 = vmatprep.subr.bf16.mxu0 %v6414_v10  ;;  %v6480_v8 = vld [vmem:[%s9547_s3 + $0x444] ss:$8 sps:$4 sm:$0xff]   ;;  %v6475_v9 = vld [vmem:[%s9547_s3 + $0x400] ss:$8 sps:$4 sm:$0xff]  }
 0x1d2   :  { %v6478_v10 = vld [vmem:[%s9547_s3 + $0x440] ss:$8 sps:$4 sm:$0xff]  }
 0x1d4   :  { %1685 = vmatpush1.bf16.msra.mxu1 %v6409_v11  ;;  %1791 = vmatpush1.bf16.msra.mxu0 %v6412_v12  ;;  %v6483_v11 = vld [vmem:[%s9547_s3 + $0x454] ss:$8 sps:$4 sm:$0xff]   ;;  %v6486_v12 = vld [vmem:[%s9547_s3 + $0x464] ss:$8 sps:$4 sm:$0xff]  }
 0x1d5   :  { %1686 = vmatprep.subr.bf16.mxu1 %v6417_v14  ;;  %1792 = vmatprep.subr.bf16.mxu0 %v6420_v16  ;;  %v2064_v14 = vpop.permute.xlu0 %2063 }
 0x1d8   :  { %1687 = vmatpush1.bf16.msra.mxu1 %v6415_v17  ;;  %1793 = vmatpush1.bf16.msra.mxu0 %v6418_v18  ;;  %v6481_v17 = vld [vmem:[%s9547_s3 + $0x450] ss:$8 sps:$4 sm:$0xff]   ;;  %v6484_v18 = vld [vmem:[%s9547_s3 + $0x460] ss:$8 sps:$4 sm:$0xff]  }
 0x1d9   :  { %1794 = vmatprep.subr.bf16.mxu0 %v6423_v15  ;;  %1898 = vmatprep.subr.bf16.mxu1 %v6426_v20 }
 0x1db   :  { %5831 = vmatmul.mubr.msk.bf16.vlgmr.msra.gmra.mrb[32].mxu1 %vm824_vm2, %v1624_v25 }
 0x1dc   :  { %1795 = vmatpush1.bf16.msra.mxu0 %v6421_v21  ;;  %1899 = vmatpush1.bf16.msra.mxu1 %v6424_v22  ;;  %v6489_v21 = vld [vmem:[%s9547_s3 + $0x474] ss:$8 sps:$4 sm:$0xff]  }
 0x1dd   :  { %1900 = vmatprep.subr.bf16.mxu1 %v6429_v23  ;;  %2010 = vmatprep.subr.bf16.mxu0 %v6432_v24  ;;  %v6492_v22 = vld [vmem:[%s9547_s3 + $0x4b4] ss:$8 sps:$4 sm:$0xff]  }
 0x1de   :  { %1930 = vmatprep.mubr.bf16.mxu1 %v7025_v33 }
 0x1df   :  { %5842 = vmatmul.mubr.msk.bf16.vlgmr.msra.gmra.mrb[48].mxu0 %vm824_vm2, %v1732_v35  ;;  %v6487_v35 = vld [vmem:[%s9547_s3 + $0x470] ss:$8 sps:$4 sm:$0xff]  }
 0x1e0   :  { %1901 = vmatpush1.bf16.msra.mxu1 %v6427_v26  ;;  %2011 = vmatpush1.bf16.msra.mxu0 %v6430_v27 }
 0x1e1   :  { %1902 = vmatprep.subr.bf16.mxu1 %v6435_v31  ;;  %2012 = vmatprep.subr.bf16.mxu0 %v6438_v34 }
 0x1e2   :  { %2042 = vmatprep.mubr.bf16.mxu0 %v7025_v33 }
 0x1e4   :  { %1903 = vmatpush1.bf16.msra.mxu1 %v6433_v36  ;;  %2013 = vmatpush1.bf16.msra.mxu0 %v6436_v28  ;;  %v6490_v36 = vld [vmem:[%s9547_s3 + $0x4b0] ss:$8 sps:$4 sm:$0xff]   ;;  %v6495_v28 = vld [vmem:[%s9547_s3 + $0x484] ss:$8 sps:$4 sm:$0xff]  }
 0x1e5   :  { %1904 = vmatprep.subr.bf16.mxu1 %v6441_v40  ;;  %2014 = vmatprep.subr.bf16.mxu0 %v6444_v29  ;;  %v6498_v40 = vld [vmem:[%s9547_s3 + $0x4c4] ss:$8 sps:$4 sm:$0xff]   ;;  %v2172_v29 = vpop.permute.xlu1 %2171 }
 0x1e8   :  { %1905 = vmatpush1.bf16.msra.mxu1 %v6439_v39  ;;  %2015 = vmatpush1.bf16.msra.mxu0 %v6442_v44  ;;  %v6493_v39 = vld [vmem:[%s9547_s3 + $0x480] ss:$8 sps:$4 sm:$0xff]  }
 0x1e9   :  { %1906 = vmatprep.subr.bf16.mxu1 %v6447_v57  ;;  %2016 = vmatprep.subr.bf16.mxu0 %v6450_v45  ;;  %v6496_v44 = vld [vmem:[%s9547_s3 + $0x4c0] ss:$8 sps:$4 sm:$0xff]   ;;  %v6501_v57 = vld [vmem:[%s9547_s3 + $0x494] ss:$8 sps:$4 sm:$0xff]  }
 0x1ea   :  { %v6504_v45 = vld [vmem:[%s9547_s3 + $0x4d4] ss:$8 sps:$4 sm:$0xff]  }
 0x1ec   :  { %1907 = vmatpush1.bf16.msra.mxu1 %v6445_v47  ;;  %2017 = vmatpush1.bf16.msra.mxu0 %v6448_v49  ;;  %v6499_v47 = vld [vmem:[%s9547_s3 + $0x490] ss:$8 sps:$4 sm:$0xff]  }
 0x1ed   :  { %2018 = vmatprep.subr.bf16.mxu0 %v6453_v50  ;;  %2118 = vmatprep.subr.bf16.mxu1 %v6456_v51  ;;  %v6502_v49 = vld [vmem:[%s9547_s3 + $0x4d0] ss:$8 sps:$4 sm:$0xff]   ;;  %v6507_v50 = vld [vmem:[%s9547_s3 + $0x4a4] ss:$8 sps:$4 sm:$0xff]  }
 0x1ee   :  { %v6510_v51 = vld [vmem:[%s9547_s3 + $0x4e4] ss:$8 sps:$4 sm:$0xff]  }
 0x1ef   :  { %5853 = vmatmul.mubr.msk.bf16.vlgmr.msra.gmra.mrb[36].mxu1 %vm824_vm2, %v7460_v13  ;;  %v6468_v13 = vld [vmem:[%s9547_s3 + $0x424] ss:$8 sps:$4 sm:$0xff]  }
 0x1f0   :  { %2019 = vmatpush1.bf16.msra.mxu0 %v6451_v52  ;;  %2119 = vmatpush1.bf16.msra.mxu1 %v6454_v54  ;;  %v6505_v52 = vld [vmem:[%s9547_s3 + $0x4a0] ss:$8 sps:$4 sm:$0xff]  }
 0x1f1   :  { %2120 = vmatprep.subr.bf16.mxu1 %v6459_v55  ;;  %2226 = vmatprep.subr.bf16.mxu0 %v6462_v58  ;;  %v6508_v54 = vld [vmem:[%s9547_s3 + $0x4e0] ss:$8 sps:$4 sm:$0xff]   ;;  %v6513_v55 = vld [vmem:[%s9547_s3 + $0x4f4] ss:$8 sps:$4 sm:$0xff]   ;;  %v6516_v58 = vld [vmem:[%s9547_s3 + $0x504] ss:$8 sps:$4 sm:$0xff]  }
 0x1f2   :  { %2150 = vmatprep.mubr.bf16.mxu1 %v7025_v33 }
 0x1f3   :  { %5864 = vmatmul.mubr.msk.bf16.vlgmr.msra.gmra.mrb[52].mxu0 %vm824_vm2, %v7469_v19  ;;  %v6474_v19 = vld [vmem:[%s9547_s3 + $0x434] ss:$8 sps:$4 sm:$0xff]  }
 0x1f4   :  { %2121 = vmatpush1.bf16.msra.mxu1 %v6457_v59  ;;  %2227 = vmatpush1.bf16.msra.mxu0 %v6460_v60  ;;  %v6511_v59 = vld [vmem:[%s9547_s3 + $0x4f0] ss:$8 sps:$4 sm:$0xff]   ;;  %v6514_v60 = vld [vmem:[%s9547_s3 + $0x500] ss:$8 sps:$4 sm:$0xff]  }
 0x1f5   :  { %2122 = vmatprep.subr.bf16.mxu1 %v6465_v62  ;;  %2228 = vmatprep.subr.bf16.mxu0 %v6468_v13  ;;  %v6519_v62 = vld [vmem:[%s9547_s3 + $0x514] ss:$8 sps:$4 sm:$0xff]  }
 0x1f6   :  { %2258 = vmatprep.mubr.bf16.mxu0 %v7025_v33  ;;  %v6522_v13 = vld [vmem:[%s9547_s3 + $0x554] ss:$8 sps:$4 sm:$0xff]  }
 0x1f8   :  { %2123 = vmatpush1.bf16.msra.mxu1 %v6463_v3  ;;  %2229 = vmatpush1.bf16.msra.mxu0 %v6466_v4  ;;  %v2280_v3 = vpop.permute.xlu0 %2279  ;;  %v6517_v4 = vld [vmem:[%s9547_s3 + $0x510] ss:$8 sps:$4 sm:$0xff]  }
 0x1f9   :  { %2124 = vmatprep.subr.bf16.mxu1 %v6471_v5  ;;  %2230 = vmatprep.subr.bf16.mxu0 %v6474_v19  ;;  %v6520_v5 = vld [vmem:[%s9547_s3 + $0x550] ss:$8 sps:$4 sm:$0xff]   ;;  %v6525_v19 = vld [vmem:[%s9547_s3 + $0x524] ss:$8 sps:$4 sm:$0xff]  }
 0x1fc   :  { %2125 = vmatpush1.bf16.msra.mxu1 %v6469_v63  ;;  %2231 = vmatpush1.bf16.msra.mxu0 %v6472_v6  ;;  %v6528_v63 = vld [vmem:[%s9547_s3 + $0x564] ss:$8 sps:$4 sm:$0xff]   ;;  %v6523_v6 = vld [vmem:[%s9547_s3 + $0x520] ss:$8 sps:$4 sm:$0xff]  }
 0x1fd   :  { %2126 = vmatprep.subr.bf16.mxu1 %v6477_v7  ;;  %2232 = vmatprep.subr.bf16.mxu0 %v6480_v8  ;;  %v6526_v7 = vld [vmem:[%s9547_s3 + $0x560] ss:$8 sps:$4 sm:$0xff]   ;;  %v6531_v8 = vld [vmem:[%s9547_s3 + $0x534] ss:$8 sps:$4 sm:$0xff]  }
 0x200   :  { %v956_v16 = vpop.f32.mrb[16].mxu1  ;;  %2127 = vmatpush1.bf16.msra.mxu1 %v6475_v9  ;;  %2233 = vmatpush1.bf16.msra.mxu0 %v6478_v10  ;;  %v6529_v9 = vld [vmem:[%s9547_s3 + $0x530] ss:$8 sps:$4 sm:$0xff]  }
 0x201   :  { %v958_v15 = vpop.f32.mrb[17].mxu1  ;;  %v862_v20 = vpop.f32.mrb[32].mxu0  ;;  %2234 = vmatprep.subr.bf16.mxu0 %v6483_v11  ;;  %2334 = vmatprep.subr.bf16.mxu1 %v6486_v12  ;;  %v6532_v10 = vld [vmem:[%s9547_s3 + $0x570] ss:$8 sps:$4 sm:$0xff]   ;;  %v6537_v11 = vld [vmem:[%s9547_s3 + $0x544] ss:$8 sps:$4 sm:$0xff]  }
 0x202   :  { %v7901_v23 = vadd.f32 %v956_v16, %v862_v20  ;;  %v960_v24 = vpop.f32.mrb[18].mxu1  ;;  %v864_v25 = vpop.f32.mrb[33].mxu0  ;;  %v6540_v12 = vld [vmem:[%s9547_s3 + $0x584] ss:$8 sps:$4 sm:$0xff]   ;;  %v6538_v16 = vld [vmem:[%s9547_s3 + $0x580] ss:$8 sps:$4 sm:$0xff]  }
 0x203   :  { %v7903_v26 = vadd.f32 %v958_v15, %v864_v25  ;;  %v961_v27 = vpop.f32.mrb[19].mxu1  ;;  %5875 = vmatmul.mubr.msk.bf16.vlgmr.msra.gmra.mrb[40].mxu1 %vm824_vm2, %v2064_v14  ;;  %v866_v31 = vpop.f32.mrb[34].mxu0  ;;  %v6535_v14 = vld [vmem:[%s9547_s3 + $0x540] ss:$8 sps:$4 sm:$0xff]   ;;  %v6541_v15 = vld [vmem:[%s9547_s3 + $0x590] ss:$8 sps:$4 sm:$0xff]  }
 0x204   :  { %2235 = vmatpush1.bf16.msra.mxu0 %v6481_v17  ;;  %2335 = vmatpush1.bf16.msra.mxu1 %v6484_v18  ;;  %v867_v34 = vpop.f32.mrb[35].mxu0  ;;  %v6543_v17 = vld [vmem:[%s9547_s3 + $0x594] ss:$8 sps:$4 sm:$0xff]   ;;  %v6546_v18 = vld [vmem:[%s9547_s3 + $0x5a4] ss:$8 sps:$4 sm:$0xff]   ;;  %v2612_v31 = vpop.permute.xlu1 %2611 }
 0x205   :  { %2336 = vmatprep.subr.bf16.mxu1 %v6489_v21  ;;  %2446 = vmatprep.subr.bf16.mxu0 %v6492_v22  ;;  %v6544_v20 = vld [vmem:[%s9547_s3 + $0x5a0] ss:$8 sps:$4 sm:$0xff]   ;;  %v6549_v21 = vld [vmem:[%s9547_s3 + $0x5b4] ss:$8 sps:$4 sm:$0xff]   ;;  %v6547_v24 = vld [vmem:[%s9547_s3 + $0x5b0] ss:$8 sps:$4 sm:$0xff]  }
 0x206   :  { %2366 = vmatprep.mubr.bf16.mxu1 %v7025_v33  ;;  %v6552_v22 = vld [vmem:[%s9547_s3 + $0x5f4] ss:$8 sps:$4 sm:$0xff]   ;;  %v6550_v25 = vld [vmem:[%s9547_s3 + $0x5f0] ss:$8 sps:$4 sm:$0xff]   ;;  %v6555_v27 = vld [vmem:[%s9547_s3 + $0x5c4] ss:$8 sps:$4 sm:$0xff]  }
 0x207   :  { %5886 = vmatmul.mubr.msk.bf16.vlgmr.msra.gmra.mrb[56].mxu0 %vm824_vm2, %v2172_v29  ;;  %v6553_v34 = vld [vmem:[%s9547_s3 + $0x5c0] ss:$8 sps:$4 sm:$0xff]   ;;  %v6562_v29 = vld [vmem:[%s9547_s3 + $0x610] ss:$8 sps:$4 sm:$0xff]  }
 0x208   :  { %2337 = vmatpush1.bf16.msra.mxu1 %v6487_v35  ;;  %2447 = vmatpush1.bf16.msra.mxu0 %v6490_v36  ;;  %v6556_v35 = vld [vmem:[%s9547_s3 + $0x600] ss:$8 sps:$4 sm:$0xff]   ;;  %v6561_v36 = vld [vmem:[%s9547_s3 + $0x5d4] ss:$8 sps:$4 sm:$0xff]  }
 0x209   :  { %2338 = vmatprep.subr.bf16.mxu1 %v6495_v28  ;;  %2448 = vmatprep.subr.bf16.mxu0 %v6498_v40  ;;  %v6564_v28 = vld [vmem:[%s9547_s3 + $0x614] ss:$8 sps:$4 sm:$0xff]   ;;  %v6559_v40 = vld [vmem:[%s9547_s3 + $0x5d0] ss:$8 sps:$4 sm:$0xff]  }
 0x20a   :  { %2478 = vmatprep.mubr.bf16.mxu0 %v7025_v33 }
 0x20c   :  { %2339 = vmatpush1.bf16.msra.mxu1 %v6493_v39  ;;  %2449 = vmatpush1.bf16.msra.mxu0 %v6496_v44  ;;  %v6567_v39 = vld [vmem:[%s9547_s3 + $0x5e4] ss:$8 sps:$4 sm:$0xff]  }
 0x20d   :  { %2340 = vmatprep.subr.bf16.mxu1 %v6501_v57  ;;  %2450 = vmatprep.subr.bf16.mxu0 %v6504_v45  ;;  %v6570_v44 = vld [vmem:[%s9547_s3 + $0x624] ss:$8 sps:$4 sm:$0xff]   ;;  %v6565_v57 = vld [vmem:[%s9547_s3 + $0x5e0] ss:$8 sps:$4 sm:$0xff]  }
 0x20e   :  { %v6568_v45 = vld [vmem:[%s9547_s3 + $0x620] ss:$8 sps:$4 sm:$0xff]  }
 0x210   :  { %2341 = vmatpush1.bf16.msra.mxu1 %v6499_v47  ;;  %2451 = vmatpush1.bf16.msra.mxu0 %v6502_v49  ;;  %v6573_v47 = vld [vmem:[%s9547_s3 + $0x634] ss:$8 sps:$4 sm:$0xff]   ;;  %v6576_v49 = vld [vmem:[%s9547_s3 + $0x644] ss:$8 sps:$4 sm:$0xff]  }
 0x211   :  { %2342 = vmatprep.subr.bf16.mxu1 %v6507_v50  ;;  %2452 = vmatprep.subr.bf16.mxu0 %v6510_v51  ;;  %v6571_v50 = vld [vmem:[%s9547_s3 + $0x630] ss:$8 sps:$4 sm:$0xff]   ;;  %v6574_v51 = vld [vmem:[%s9547_s3 + $0x640] ss:$8 sps:$4 sm:$0xff]  }
 0x214   :  { %2343 = vmatpush1.bf16.msra.mxu1 %v6505_v52  ;;  %2453 = vmatpush1.bf16.msra.mxu0 %v6508_v54  ;;  %v6579_v52 = vld [vmem:[%s9547_s3 + $0x654] ss:$8 sps:$4 sm:$0xff]  }
 0x215   :  { %2454 = vmatprep.subr.bf16.mxu0 %v6513_v55  ;;  %2558 = vmatprep.subr.bf16.mxu1 %v6516_v58  ;;  %v6582_v54 = vld [vmem:[%s9547_s3 + $0x694] ss:$8 sps:$4 sm:$0xff]   ;;  %v2720_v55 = vpop.permute.xlu0 %2719  ;;  %v6577_v58 = vld [vmem:[%s9547_s3 + $0x650] ss:$8 sps:$4 sm:$0xff]  }
 0x217   :  { %5897 = vmatmul.mubr.msk.bf16.vlgmr.msra.gmra.mrb[44].mxu1 %vm824_vm2, %v2280_v3  ;;  %v6583_v3 = vld [vmem:[%s9547_s3 + $0x660] ss:$8 sps:$4 sm:$0xff]  }
 0x218   :  { %2455 = vmatpush1.bf16.msra.mxu0 %v6511_v59  ;;  %2559 = vmatpush1.bf16.msra.mxu1 %v6514_v60  ;;  %v6580_v59 = vld [vmem:[%s9547_s3 + $0x690] ss:$8 sps:$4 sm:$0xff]   ;;  %v6585_v60 = vld [vmem:[%s9547_s3 + $0x664] ss:$8 sps:$4 sm:$0xff]  }
 0x219   :  { %2560 = vmatprep.subr.bf16.mxu1 %v6519_v62  ;;  %2666 = vmatprep.subr.bf16.mxu0 %v6522_v13  ;;  %v6588_v62 = vld [vmem:[%s9547_s3 + $0x6a4] ss:$8 sps:$4 sm:$0xff]   ;;  %v2828_v13 = vpop.permute.xlu1 %2827 }
 0x21a   :  { %2590 = vmatprep.mubr.bf16.mxu1 %v7025_v33 }
 0x21b   :  { %5908 = vmatmul.mubr.msk.bf16.vlgmr.msra.gmra.mrb[60].mxu0 %vm824_vm2, %v7489_v32  ;;  %v6534_v32 = vld [vmem:[%s9547_s3 + $0x574] ss:$8 sps:$4 sm:$0xff]  }
 0x21c   :  { %2561 = vmatpush1.bf16.msra.mxu1 %v6517_v4  ;;  %2667 = vmatpush1.bf16.msra.mxu0 %v6520_v5  ;;  %v6586_v4 = vld [vmem:[%s9547_s3 + $0x6a0] ss:$8 sps:$4 sm:$0xff]   ;;  %v6591_v5 = vld [vmem:[%s9547_s3 + $0x674] ss:$8 sps:$4 sm:$0xff]  }
 0x21d   :  { %2562 = vmatprep.subr.bf16.mxu1 %v6525_v19  ;;  %2668 = vmatprep.subr.bf16.mxu0 %v6528_v63  ;;  %v6594_v19 = vld [vmem:[%s9547_s3 + $0x6b4] ss:$8 sps:$4 sm:$0xff]   ;;  %v6589_v63 = vld [vmem:[%s9547_s3 + $0x670] ss:$8 sps:$4 sm:$0xff]  }
 0x21e   :  { %2698 = vmatprep.mubr.bf16.mxu0 %v7025_v33 }
 0x220   :  { %2563 = vmatpush1.bf16.msra.mxu1 %v6523_v6  ;;  %2669 = vmatpush1.bf16.msra.mxu0 %v6526_v7  ;;  %v6592_v6 = vld [vmem:[%s9547_s3 + $0x6b0] ss:$8 sps:$4 sm:$0xff]   ;;  %v6597_v7 = vld [vmem:[%s9547_s3 + $0x684] ss:$8 sps:$4 sm:$0xff]  }
 0x221   :  { %2564 = vmatprep.subr.bf16.mxu1 %v6531_v8  ;;  %2670 = vmatprep.subr.bf16.mxu0 %v6534_v32  ;;  %v6600_v8 = vld [vmem:[%s9547_s3 + $0x6c4] ss:$8 sps:$4 sm:$0xff]   ;;  %v6595_v32 = vld [vmem:[%s9547_s3 + $0x680] ss:$8 sps:$4 sm:$0xff]  }
 0x224   :  { %2565 = vmatpush1.bf16.msra.mxu1 %v6529_v9  ;;  %2671 = vmatpush1.bf16.msra.mxu0 %v6532_v10  ;;  %v6598_v9 = vld [vmem:[%s9547_s3 + $0x6c0] ss:$8 sps:$4 sm:$0xff]   ;;  %v6603_v10 = vld [vmem:[%s9547_s3 + $0x6d4] ss:$8 sps:$4 sm:$0xff]  }
 0x225   :  { %2566 = vmatprep.subr.bf16.mxu1 %v6537_v11  ;;  %2672 = vmatprep.subr.bf16.mxu0 %v6540_v12  ;;  %v6606_v11 = vld [vmem:[%s9547_s3 + $0x6e4] ss:$8 sps:$4 sm:$0xff]   ;;  %v6601_v12 = vld [vmem:[%s9547_s3 + $0x6d0] ss:$8 sps:$4 sm:$0xff]  }
 0x228   :  { %2567 = vmatpush1.bf16.msra.mxu1 %v6535_v14  ;;  %2673 = vmatpush1.bf16.msra.mxu0 %v6538_v16  ;;  %v6604_v14 = vld [vmem:[%s9547_s3 + $0x6e0] ss:$8 sps:$4 sm:$0xff]   ;;  %v6609_v16 = vld [vmem:[%s9547_s3 + $0x6f4] ss:$8 sps:$4 sm:$0xff]  }
 0x229   :  { %2674 = vmatprep.subr.bf16.mxu0 %v6543_v17  ;;  %2774 = vmatprep.subr.bf16.mxu1 %v6546_v18  ;;  %v6612_v17 = vld [vmem:[%s9547_s3 + $0x734] ss:$8 sps:$4 sm:$0xff]   ;;  %v6607_v18 = vld [vmem:[%s9547_s3 + $0x6f0] ss:$8 sps:$4 sm:$0xff]  }
 0x22b   :  { %5919 = vmatmul.mubr.msk.bf16.vlgmr.msra.gmra.mrb[48].mxu1 %vm824_vm2, %v7495_v37  ;;  %v6558_v37 = vld [vmem:[%s9547_s3 + $0x604] ss:$8 sps:$4 sm:$0xff]  }
 0x22c   :  { %2675 = vmatpush1.bf16.msra.mxu0 %v6541_v15  ;;  %2775 = vmatpush1.bf16.msra.mxu1 %v6544_v20  ;;  %v6610_v15 = vld [vmem:[%s9547_s3 + $0x730] ss:$8 sps:$4 sm:$0xff]   ;;  %v6615_v20 = vld [vmem:[%s9547_s3 + $0x704] ss:$8 sps:$4 sm:$0xff]  }
 0x22d   :  { %2776 = vmatprep.subr.bf16.mxu1 %v6549_v21  ;;  %2882 = vmatprep.subr.bf16.mxu0 %v6552_v22  ;;  %v6613_v21 = vld [vmem:[%s9547_s3 + $0x700] ss:$8 sps:$4 sm:$0xff]  }
 0x22e   :  { %2806 = vmatprep.mubr.bf16.mxu1 %v7025_v33  ;;  %v6616_v22 = vld [vmem:[%s9547_s3 + $0x740] ss:$8 sps:$4 sm:$0xff]  }
 0x22f   :  { %5930 = vmatmul.mubr.msk.bf16.vlgmr.msra.gmra.mrb[64].mxu0 %vm824_vm2, %v2612_v31  ;;  %v6625_v31 = vld [vmem:[%s9547_s3 + $0x720] ss:$8 sps:$4 sm:$0xff]  }
 0x230   :  { %2777 = vmatpush1.bf16.msra.mxu1 %v6547_v24  ;;  %2883 = vmatpush1.bf16.msra.mxu0 %v6550_v25  ;;  %v6621_v24 = vld [vmem:[%s9547_s3 + $0x714] ss:$8 sps:$4 sm:$0xff]   ;;  %v6622_v25 = vld [vmem:[%s9547_s3 + $0x750] ss:$8 sps:$4 sm:$0xff]  }
 0x231   :  { %2778 = vmatprep.subr.bf16.mxu1 %v6555_v27  ;;  %2884 = vmatprep.subr.bf16.mxu0 %v6558_v37  ;;  %v6627_v27 = vld [vmem:[%s9547_s3 + $0x724] ss:$8 sps:$4 sm:$0xff]  }
 0x232   :  { %2914 = vmatprep.mubr.bf16.mxu0 %v7025_v33  ;;  %v6630_v37 = vld [vmem:[%s9547_s3 + $0x764] ss:$8 sps:$4 sm:$0xff]  }
 0x234   :  { %2779 = vmatpush1.bf16.msra.mxu1 %v6553_v34  ;;  %2885 = vmatpush1.bf16.msra.mxu0 %v6556_v35  ;;  %v6628_v34 = vld [vmem:[%s9547_s3 + $0x760] ss:$8 sps:$4 sm:$0xff]   ;;  %v6633_v35 = vld [vmem:[%s9547_s3 + $0x774] ss:$8 sps:$4 sm:$0xff]  }
 0x235   :  { %2780 = vmatprep.subr.bf16.mxu1 %v6561_v36  ;;  %2886 = vmatprep.subr.bf16.mxu0 %v6564_v28  ;;  %v6636_v36 = vld [vmem:[%s9547_s3 + $0x784] ss:$8 sps:$4 sm:$0xff]   ;;  %v6631_v28 = vld [vmem:[%s9547_s3 + $0x770] ss:$8 sps:$4 sm:$0xff]  }
 0x238   :  { %2781 = vmatpush1.bf16.msra.mxu1 %v6559_v40  ;;  %2887 = vmatpush1.bf16.msra.mxu0 %v6562_v29  ;;  %v6634_v40 = vld [vmem:[%s9547_s3 + $0x780] ss:$8 sps:$4 sm:$0xff]   ;;  %v6639_v29 = vld [vmem:[%s9547_s3 + $0x794] ss:$8 sps:$4 sm:$0xff]  }
 0x239   :  { %2782 = vmatprep.subr.bf16.mxu1 %v6567_v39  ;;  %2888 = vmatprep.subr.bf16.mxu0 %v6570_v44  ;;  %v3150_v39 = vpop.permute.xlu0 %3149  ;;  %v6637_v44 = vld [vmem:[%s9547_s3 + $0x790] ss:$8 sps:$4 sm:$0xff]  }
 0x23c   :  { %2783 = vmatpush1.bf16.msra.mxu1 %v6565_v57  ;;  %2889 = vmatpush1.bf16.msra.mxu0 %v6568_v45  ;;  %v6642_v57 = vld [vmem:[%s9547_s3 + $0x7a4] ss:$8 sps:$4 sm:$0xff]   ;;  %v3258_v45 = vpop.permute.xlu1 %3257 }
 0x23d   :  { %2890 = vmatprep.subr.bf16.mxu0 %v6573_v47  ;;  %2989 = vmatprep.subr.bf16.mxu1 %v6576_v49  ;;  %v6640_v47 = vld [vmem:[%s9547_s3 + $0x7a0] ss:$8 sps:$4 sm:$0xff]   ;;  %v6645_v49 = vld [vmem:[%s9547_s3 + $0x7b4] ss:$8 sps:$4 sm:$0xff]  }
 0x23f   :  { %5941 = vmatmul.mubr.msk.bf16.vlgmr.msra.gmra.mrb[52].mxu1 %vm824_vm2, %v2720_v55 }
 0x240   :  { %2891 = vmatpush1.bf16.msra.mxu0 %v6571_v50  ;;  %2990 = vmatpush1.bf16.msra.mxu1 %v6574_v51  ;;  %v6643_v50 = vld [vmem:[%s9547_s3 + $0x7b0] ss:$8 sps:$4 sm:$0xff]   ;;  %v6648_v51 = vld [vmem:[%s9547_s3 + $0x7c4] ss:$8 sps:$4 sm:$0xff]  }
 0x241   :  { %2991 = vmatprep.subr.bf16.mxu1 %v6579_v52  ;;  %3096 = vmatprep.subr.bf16.mxu0 %v6582_v54 }
 0x242   :  { %3021 = vmatprep.mubr.bf16.mxu1 %v7025_v33 }
 0x243   :  { %5952 = vmatmul.mubr.msk.bf16.vlgmr.msra.gmra.mrb[68].mxu0 %vm824_vm2, %v2828_v13 }
 0x244   :  { %2992 = vmatpush1.bf16.msra.mxu1 %v6577_v58  ;;  %3097 = vmatpush1.bf16.msra.mxu0 %v6580_v59 }
 0x245   :  { %2993 = vmatprep.subr.bf16.mxu1 %v6585_v60  ;;  %3098 = vmatprep.subr.bf16.mxu0 %v6588_v62  ;;  %v6646_v60 = vld [vmem:[%s9547_s3 + $0x7c0] ss:$8 sps:$4 sm:$0xff]  }
 0x246   :  { %3128 = vmatprep.mubr.bf16.mxu0 %v7025_v33 }
 0x248   :  { %2994 = vmatpush1.bf16.msra.mxu1 %v6583_v3  ;;  %3099 = vmatpush1.bf16.msra.mxu0 %v6586_v4 }
 0x249   :  { %2995 = vmatprep.subr.bf16.mxu1 %v6591_v5  ;;  %3100 = vmatprep.subr.bf16.mxu0 %v6594_v19 }
 0x24c   :  { %2996 = vmatpush1.bf16.msra.mxu1 %v6589_v63  ;;  %3101 = vmatpush1.bf16.msra.mxu0 %v6592_v6 }
 0x24d   :  { %2997 = vmatprep.subr.bf16.mxu1 %v6597_v7  ;;  %3102 = vmatprep.subr.bf16.mxu0 %v6600_v8 }
 0x250   :  { %2998 = vmatpush1.bf16.msra.mxu1 %v6595_v32  ;;  %3103 = vmatpush1.bf16.msra.mxu0 %v6598_v9 }
 0x251   :  { %3104 = vmatprep.subr.bf16.mxu0 %v6603_v10  ;;  %3204 = vmatprep.subr.bf16.mxu1 %v6606_v11 }
 0x253   :  { %5963 = vmatmul.mubr.msk.bf16.vlgmr.msra.gmra.mrb[56].mxu1 %vm824_vm2, %v7502_v38  ;;  %v6618_v38 = vld [vmem:[%s9547_s3 + $0x744] ss:$8 sps:$4 sm:$0xff]  }
 0x254   :  { %3105 = vmatpush1.bf16.msra.mxu0 %v6601_v12  ;;  %3205 = vmatpush1.bf16.msra.mxu1 %v6604_v14 }
 0x255   :  { %3206 = vmatprep.subr.bf16.mxu1 %v6609_v16  ;;  %3312 = vmatprep.subr.bf16.mxu0 %v6612_v17 }
 0x256   :  { %3236 = vmatprep.mubr.bf16.mxu1 %v7025_v33 }
 0x257   :  { %5974 = vmatmul.mubr.msk.bf16.vlgmr.msra.gmra.mrb[72].mxu0 %vm824_vm2, %v3042_v30  ;;  %v6619_v30 = vld [vmem:[%s9547_s3 + $0x710] ss:$8 sps:$4 sm:$0xff]  }
 0x258   :  { %3207 = vmatpush1.bf16.msra.mxu1 %v6607_v18  ;;  %3313 = vmatpush1.bf16.msra.mxu0 %v6610_v15 }
 0x259   :  { %3208 = vmatprep.subr.bf16.mxu1 %v6615_v20  ;;  %3314 = vmatprep.subr.bf16.mxu0 %v6618_v38 }
 0x25a   :  { %3344 = vmatprep.mubr.bf16.mxu0 %v7025_v33 }
 0x25c   :  { %3209 = vmatpush1.bf16.msra.mxu1 %v6613_v21  ;;  %3315 = vmatpush1.bf16.msra.mxu0 %v6616_v22 }
 0x25d   :  { %3210 = vmatprep.subr.bf16.mxu1 %v6621_v24  ;;  %3316 = vmatprep.subr.bf16.mxu0 %v6624_v43 }
 0x260   :  { %3211 = vmatpush1.bf16.msra.mxu1 %v6619_v30  ;;  %3317 = vmatpush1.bf16.msra.mxu0 %v6622_v25 }
 0x261   :  { %3212 = vmatprep.subr.bf16.mxu1 %v6627_v27  ;;  %3318 = vmatprep.subr.bf16.mxu0 %v6630_v37 }
 0x264   :  { %3213 = vmatpush1.bf16.msra.mxu1 %v6625_v31  ;;  %3319 = vmatpush1.bf16.msra.mxu0 %v6628_v34  ;;  %v6649_v31 = vld [vmem:[%s9549_s5] sm:$0xff]   ;;  %v6650_v34 = vld [vmem:[%s9549_s5 + $0x50] sm:$0xff]  }
 0x265   :  { %3320 = vmatprep.subr.bf16.mxu0 %v6633_v35  ;;  %3420 = vmatprep.subr.bf16.mxu1 %v6636_v36 }
 0x267   :  { %5985 = vmatmul.mubr.msk.bf16.vlgmr.msra.gmra.mrb[60].mxu1 %vm824_vm2, %v3150_v39 }
 0x268   :  { %3321 = vmatpush1.bf16.msra.mxu0 %v6631_v28  ;;  %3421 = vmatpush1.bf16.msra.mxu1 %v6634_v40  ;;  %v6651_v40 = vld [vmem:[%s9549_s5 + $0x8] sm:$0xff]  }
 0x269   :  { %3422 = vmatprep.subr.bf16.mxu1 %v6639_v29  ;;  %3452 = vmatprep.mubr.bf16.mxu1 %v7025_v33  ;;  %v6652_v29 = vld [vmem:[%s9549_s5 + $0x58] sm:$0xff]  }
 0x26a   :  { %3592 = vmatprep.subr.bf16.mxu0 %v7025_v33 }
 0x26b   :  { %5996 = vmatmul.mubr.msk.bf16.vlgmr.msra.gmra.mrb[76].mxu0 %vm824_vm2, %v3258_v45 }
 0x26c   :  { %3423 = vmatpush1.bf16.msra.mxu1 %v6637_v44  ;;  %3593 = vmatpush1.bf16.msra.mxu0 %v6650_v34 }
 0x26d   :  { %3424 = vmatprep.subr.bf16.mxu1 %v6642_v57  ;;  %3594 = vmatprep.subr.bf16.mxu0 %v7025_v33 }
 0x270   :  { %3425 = vmatpush1.bf16.msra.mxu1 %v6640_v47  ;;  %3595 = vmatpush1.bf16.msra.mxu0 %v6652_v29 }
 0x271   :  { %3426 = vmatprep.subr.bf16.mxu1 %v6645_v49  ;;  %3596 = vmatprep.subr.bf16.mxu0 %v7025_v33 }
 0x272   :  { %v1063_v52 = vpop.f32.mrb[20].mxu1 }
 0x273   :  { %v1070_v54 = vadd.f32 %v1063_v52, %v7901_v23  ;;  %v1065_v55 = vpop.f32.mrb[21].mxu1  ;;  %v3366_v23 = vpop.permute.xlu0 %3365 }
 0x274   :  { %v1071_v58 = vadd.f32 %v1065_v55, %v7903_v26  ;;  %3427 = vmatpush1.bf16.msra.mxu1 %v6643_v50  ;;  %v1067_v59 = vpop.f32.mrb[22].mxu1  ;;  %v6653_v50 = vld [vmem:[%s9549_s5 + $0x10] sm:$0xff]   ;;  %v6654_v55 = vld [vmem:[%s9549_s5 + $0x60] sm:$0xff]  }
 0x275   :  { %v1068_v62 = vpop.f32.mrb[23].mxu1  ;;  %3428 = vmatprep.subr.bf16.mxu1 %v6648_v51  ;;  %3597 = vmatpush1.bf16.msra.mxu0 %v6654_v55  ;;  %v6656_v59 = vld [vmem:[%s9549_s5 + $0x68] sm:$0xff]  }
 0x276   :  { %v1172_v13 = vpop.f32.mrb[36].mxu0  ;;  %3598 = vmatprep.subr.bf16.mxu0 %v7025_v33  ;;  %v6658_v62 = vld [vmem:[%s9549_s5 + $0x70] sm:$0xff]  }
 0x277   :  { %v1179_v3 = vadd.f32 %v1172_v13, %v1070_v54  ;;  %v1174_v4 = vpop.f32.mrb[37].mxu0  ;;  %v6659_v13 = vld [vmem:[%s9549_s5 + $0x28] sm:$0xff]  }
 0x278   :  { %v1180_v5 = vadd.f32 %v1174_v4, %v1071_v58  ;;  %3429 = vmatpush1.bf16.msra.mxu1 %v6646_v60  ;;  %v1176_v19 = vpop.f32.mrb[38].mxu0  ;;  %v6655_v58 = vld [vmem:[%s9549_s5 + $0x18] sm:$0xff]   ;;  %v6657_v60 = vld [vmem:[%s9549_s5 + $0x20] sm:$0xff]  }
 0x279   :  { %v1177_v63 = vpop.f32.mrb[39].mxu0  ;;  %3694 = vmatprep.subr.bf16.mxu1 %v7025_v33  ;;  %3599 = vmatpush1.bf16.msra.mxu0 %v6656_v59  ;;  %v6660_v19 = vld [vmem:[%s9549_s5 + $0x78] sm:$0xff]  }
 0x27a   :  { %3600 = vmatprep.subr.bf16.mxu0 %v7025_v33 }
 0x27b   :  { %6007 = vmatmul.mubr.msk.bf16.vlgmr.msra.gmra.mrb[64].mxu1 %vm824_vm2, %v3366_v23 }
 0x27c   :  { %3695 = vmatpush1.bf16.msra.mxu1 %v6649_v31 }
 0x27d   :  { %3696 = vmatprep.subr.bf16.mxu1 %v7025_v33  ;;  %3601 = vmatpush1.bf16.msra.mxu0 %v6658_v62 }
 0x27e   :  { %3602 = vmatprep.subr.bf16.mxu0 %v7025_v33 }
 0x280   :  { %3697 = vmatpush1.bf16.msra.mxu1 %v6651_v40 }
 0x281   :  { %3698 = vmatprep.subr.bf16.mxu1 %v7025_v33  ;;  %3603 = vmatpush1.bf16.msra.mxu0 %v6660_v19 }
 0x282   :  { %3604 = vmatprep.subr.bf16.mxu0 %v7025_v33 }
 0x284   :  { %3699 = vmatpush1.bf16.msra.mxu1 %v6653_v50 }
 0x285   :  { %3700 = vmatprep.subr.bf16.mxu1 %v7025_v33 }
 0x286   :  { %v1280_v26 = vpop.f32.mrb[24].mxu1 }
 0x287   :  { %v1287_v6 = vadd.f32 %v1280_v26, %v1179_v3  ;;  %v1282_v7 = vpop.f32.mrb[25].mxu1 }
 0x288   :  { %v1288_v8 = vadd.f32 %v1282_v7, %v1180_v5  ;;  %v1284_v32 = vpop.f32.mrb[26].mxu1  ;;  %3701 = vmatpush1.bf16.msra.mxu1 %v6655_v58 }
 0x289   :  { %v1285_v9 = vpop.f32.mrb[27].mxu1  ;;  %3702 = vmatprep.subr.bf16.mxu1 %v7025_v33 }
 0x28a   :  { %v1387_v10 = vpop.f32.mrb[40].mxu0  ;;  %v6662_v9 = vld [vmem:[%s9549_s5 + $0x80] sm:$0xff]  }
 0x28b   :  { %v1394_v11 = vadd.f32 %v1387_v10, %v1287_v6  ;;  %v1389_v12 = vpop.f32.mrb[41].mxu0  ;;  %v6661_v6 = vld [vmem:[%s9549_s5 + $0x30] sm:$0xff]   ;;  %3605 = vmatpush1.bf16.msra.mxu0 %v6662_v9 }
 0x28c   :  { %v1395_v14 = vadd.f32 %v1389_v12, %v1288_v8  ;;  %v1391_v16 = vpop.f32.mrb[42].mxu0  ;;  %3703 = vmatpush1.bf16.msra.mxu1 %v6657_v60  ;;  %3606 = vmatprep.subr.bf16.mxu0 %v7025_v33 }
 0x28d   :  { %v1392_v17 = vpop.f32.mrb[43].mxu0  ;;  %3704 = vmatprep.subr.bf16.mxu1 %v7025_v33  ;;  %v6664_v16 = vld [vmem:[%s9549_s5 + $0x88] sm:$0xff]  }
 0x28e   :  { %v6665_v17 = vld [vmem:[%s9549_s5 + $0x40] sm:$0xff]  }
 0x28f   :  { %3607 = vmatpush1.bf16.msra.mxu0 %v6664_v16 }
 0x290   :  { %3705 = vmatpush1.bf16.msra.mxu1 %v6659_v13  ;;  %3608 = vmatprep.subr.bf16.mxu0 %v7025_v33 }
 0x291   :  { %3706 = vmatprep.subr.bf16.mxu1 %v7025_v33 }
 0x294   :  { %3707 = vmatpush1.bf16.msra.mxu1 %v6661_v6 }
 0x295   :  { %3708 = vmatprep.subr.bf16.mxu1 %v7025_v33 }
 0x29a   :  { %v1494_v18 = vpop.f32.mrb[28].mxu1 }
 0x29b   :  { %v1501_v15 = vadd.f32 %v1494_v18, %v1394_v11  ;;  %v1496_v20 = vpop.f32.mrb[29].mxu1  ;;  %v6666_v18 = vld [vmem:[%s9549_s5 + $0x90] sm:$0xff]  }
 0x29c   :  { %v1502_v38 = vadd.f32 %v1496_v20, %v1395_v14  ;;  %v1498_v21 = vpop.f32.mrb[30].mxu1  ;;  %v6663_v14 = vld [vmem:[%s9549_s5 + $0x38] sm:$0xff]   ;;  %3609 = vmatpush1.bf16.msra.mxu0 %v6666_v18 }
 0x29d   :  { %v1499_v22 = vpop.f32.mrb[31].mxu1  ;;  %3709 = vmatpush1.bf16.msra.mxu1 %v6663_v14  ;;  %3610 = vmatprep.subr.bf16.mxu0 %v7025_v33  ;;  %v6668_v20 = vld [vmem:[%s9549_s5 + $0x98] sm:$0xff]  }
 0x29e   :  { %v1603_v24 = vpop.f32.mrb[44].mxu0  ;;  %3710 = vmatprep.subr.bf16.mxu1 %v7025_v33 }
 0x29f   :  { %v1610_v43 = vadd.f32 %v1603_v24, %v1501_v15  ;;  %v1605_v30 = vpop.f32.mrb[45].mxu0  ;;  %v6667_v15 = vld [vmem:[%s9549_s5 + $0x48] sm:$0xff]  }
 0x2a0   :  { %v1611_v25 = vadd.f32 %v1605_v30, %v1502_v38  ;;  %v1607_v27 = vpop.f32.mrb[46].mxu0  ;;  %3611 = vmatpush1.bf16.msra.mxu0 %v6668_v20 }
 0x2a1   :  { %v1608_v37 = vpop.f32.mrb[47].mxu0  ;;  %3711 = vmatpush1.bf16.msra.mxu1 %v6665_v17  ;;  %3822 = vmatprep.subr.bf16.mxu0 %v7025_v33 }
 0x2a2   :  { %3712 = vmatprep.subr.bf16.mxu1 %v7025_v33 }
 0x2a5   :  { %3713 = vmatpush1.bf16.msra.mxu1 %v6667_v15 }
 0x2a6   :  { %3949 = vmatprep.subr.bf16.mxu1 %v7025_v33 }
 0x2ae   :  { %v1712_v35 = vpop.f32.mrb[32].mxu1 }
 0x2af   :  { %v1719_v36 = vadd.f32 %v1712_v35, %v1610_v43  ;;  %v1714_v28 = vpop.f32.mrb[33].mxu1 }
 0x2b0   :  { %v1720_v39 = vadd.f32 %v1714_v28, %v1611_v25  ;;  %v1716_v44 = vpop.f32.mrb[34].mxu1 }
 0x2b1   :  { %v1717_v57 = vpop.f32.mrb[35].mxu1 }
 0x2b2   :  { %v1820_v45 = vpop.f32.mrb[48].mxu0 }
 0x2b3   :  { %v1827_v47 = vadd.f32 %v1820_v45, %v1719_v36  ;;  %v1822_v49 = vpop.f32.mrb[49].mxu0 }
 0x2b4   :  { %v1828_v51 = vadd.f32 %v1822_v49, %v1720_v39  ;;  %v1824_v52 = vpop.f32.mrb[50].mxu0 }
 0x2b5   :  { %v1825_v54 = vpop.f32.mrb[51].mxu0 }
 0x2c2   :  { %v1932_v3 = vpop.f32.mrb[36].mxu1 }
 0x2c3   :  { %v1939_v4 = vadd.f32 %v1932_v3, %v1827_v47  ;;  %v1934_v5 = vpop.f32.mrb[37].mxu1 }
 0x2c4   :  { %v1940_v63 = vadd.f32 %v1934_v5, %v1828_v51  ;;  %v1936_v23 = vpop.f32.mrb[38].mxu1 }
 0x2c5   :  { %v1937_v26 = vpop.f32.mrb[39].mxu1 }
 0x2c6   :  { %v2044_v7 = vpop.f32.mrb[52].mxu0 }
 0x2c7   :  { %v2051_v8 = vadd.f32 %v2044_v7, %v1939_v4  ;;  %v2046_v32 = vpop.f32.mrb[53].mxu0 }
 0x2c8   :  { %v2052_v10 = vadd.f32 %v2046_v32, %v1940_v63  ;;  %v2048_v11 = vpop.f32.mrb[54].mxu0 }
 0x2c9   :  { %v2049_v12 = vpop.f32.mrb[55].mxu0 }
 0x2d6   :  { %v2152_v38 = vpop.f32.mrb[40].mxu1 }
 0x2d7   :  { %v2159_v21 = vadd.f32 %v2152_v38, %v2051_v8  ;;  %v2154_v22 = vpop.f32.mrb[41].mxu1 }
 0x2d8   :  { %v2160_v24 = vadd.f32 %v2154_v22, %v2052_v10  ;;  %v2156_v43 = vpop.f32.mrb[42].mxu1 }
 0x2d9   :  { %v2157_v30 = vpop.f32.mrb[43].mxu1 }
 0x2da   :  { %v2260_v25 = vpop.f32.mrb[56].mxu0 }
 0x2db   :  { %v2267_v27 = vadd.f32 %v2260_v25, %v2159_v21  ;;  %v2262_v37 = vpop.f32.mrb[57].mxu0 }
 0x2dc   :  { %v2268_v31 = vadd.f32 %v2262_v37, %v2160_v24  ;;  %v2264_v34 = vpop.f32.mrb[58].mxu0 }
 0x2dd   :  { %v2265_v35 = vpop.f32.mrb[59].mxu0 }
 0x2ea   :  { %v2368_v36 = vpop.f32.mrb[44].mxu1 }
 0x2eb   :  { %v2375_v28 = vadd.f32 %v2368_v36, %v2267_v27  ;;  %v2370_v40 = vpop.f32.mrb[45].mxu1 }
 0x2ec   :  { %v2376_v29 = vadd.f32 %v2370_v40, %v2268_v31  ;;  %v2372_v39 = vpop.f32.mrb[46].mxu1 }
 0x2ed   :  { %v2373_v44 = vpop.f32.mrb[47].mxu1 }
 0x2ee   :  { %v2480_v57 = vpop.f32.mrb[60].mxu0 }
 0x2ef   :  { %v2487_v45 = vadd.f32 %v2480_v57, %v2375_v28  ;;  %v2482_v47 = vpop.f32.mrb[61].mxu0 }
 0x2f0   :  { %v2488_v49 = vadd.f32 %v2482_v47, %v2376_v29  ;;  %v2484_v50 = vpop.f32.mrb[62].mxu0 }
 0x2f1   :  { %v2485_v51 = vpop.f32.mrb[63].mxu0  ;;  %v3463_v50 = vld [vmem:[%s9548_s4] sm:$0x3] }
 0x2fe   :  { %v2592_v52 = vpop.f32.mrb[48].mxu1 }
 0x2ff   :  { %v2599_v54 = vadd.f32 %v2592_v52, %v2487_v45  ;;  %v2594_v55 = vpop.f32.mrb[49].mxu1  ;;  %v3465_v45 = vlaneseq }
 0x300   :  { %v2600_v58 = vadd.f32 %v2594_v55, %v2488_v49  ;;  %v2596_v59 = vpop.f32.mrb[50].mxu1 }
 0x301   :  { %v2597_v60 = vpop.f32.mrb[51].mxu1  ;;  %v3466_v47 = vshrl.u32 %v3465_v45, 7  ;;  %v6691_v45 = vld [vmem:[%s9549_s5 + $0x150] sm:$0xff]  }
 0x302   :  { %v2700_v62 = vpop.f32.mrb[64].mxu0 }
 0x303   :  { %v2707_v13 = vadd.f32 %v2700_v62, %v2599_v54  ;;  %v2702_v3 = vpop.f32.mrb[65].mxu0  ;;  %v3467_v49 = vsub.s32 0, %v3466_v47  ;;  %v3471_v51 = vsub.s32 1, %v3466_v47  ;;  %v6706_v47 = vld [vmem:[%s9547_s3 + $0x70] ss:$8 sps:$4 sm:$0xff]  }
 0x304   :  { %v2708_v4 = vadd.f32 %v2702_v3, %v2600_v58  ;;  %v2704_v5 = vpop.f32.mrb[66].mxu0 }
 0x305   :  { %v2705_v19 = vpop.f32.mrb[67].mxu0  ;;  %v8339_v52 = vrot.slane %v3463_v50, %v3467_v49  ;;  %v8341_v55 = vrot.slane %v3463_v50, %v3471_v51  ;;  %v6707_v49 = vld [vmem:[%s9547_s3 + $0x84] ss:$8 sps:$4 sm:$0xff]   ;;  %v6692_v50 = vld [vmem:[%s9549_s5 + $0x158] sm:$0xff]   ;;  %v6708_v51 = vld [vmem:[%s9547_s3 + $0x80] ss:$8 sps:$4 sm:$0xff]  }
 0x312   :  { %v2808_v63 = vpop.f32.mrb[52].mxu1 }
 0x313   :  { %v2815_v23 = vadd.f32 %v2808_v63, %v2707_v13  ;;  %v2810_v26 = vpop.f32.mrb[53].mxu1 }
 0x314   :  { %v2816_v6 = vadd.f32 %v2810_v26, %v2708_v4  ;;  %v2812_v7 = vpop.f32.mrb[54].mxu1  ;;  %v6669_v26 = vld [vmem:[%s9549_s5 + $0xf0] sm:$0xff]  }
 0x315   :  { %v2813_v8 = vpop.f32.mrb[55].mxu1  ;;  %v6670_v7 = vld [vmem:[%s9549_s5 + $0xa0] sm:$0xff]  }
 0x316   :  { %v2916_v32 = vpop.f32.mrb[68].mxu0 }
 0x317   :  { %v2923_v9 = vadd.f32 %v2916_v32, %v2815_v23  ;;  %v2918_v10 = vpop.f32.mrb[69].mxu0 }
 0x318   :  { %v2924_v11 = vadd.f32 %v2918_v10, %v2816_v6  ;;  %v2920_v12 = vpop.f32.mrb[70].mxu0  ;;  %v6671_v10 = vld [vmem:[%s9549_s5 + $0xf8] sm:$0xff]  }
 0x319   :  { %v2921_v14 = vpop.f32.mrb[71].mxu0  ;;  %v6673_v12 = vld [vmem:[%s9549_s5 + $0x100] sm:$0xff]  }
 0x31a   :  { %v6674_v14 = vld [vmem:[%s9549_s5 + $0xb0] sm:$0xff]  }
 0x326   :  { %v3023_v16 = vpop.f32.mrb[56].mxu1 }
 0x327   :  { %v3030_v17 = vadd.f32 %v3023_v16, %v2923_v9  ;;  %v3025_v18 = vpop.f32.mrb[57].mxu1  ;;  %v6675_v16 = vld [vmem:[%s9549_s5 + $0x108] sm:$0xff]  }
 0x328   :  { %v3031_v15 = vadd.f32 %v3025_v18, %v2924_v11  ;;  %v3027_v20 = vpop.f32.mrb[58].mxu1  ;;  %v6672_v11 = vld [vmem:[%s9549_s5 + $0xa8] sm:$0xff]   ;;  %v6677_v18 = vld [vmem:[%s9549_s5 + $0x110] sm:$0xff]  }
 0x329   :  { %v3028_v38 = vpop.f32.mrb[59].mxu1  ;;  %v6679_v20 = vld [vmem:[%s9549_s5 + $0x118] sm:$0xff]  }
 0x32a   :  { %v3130_v21 = vpop.f32.mrb[72].mxu0  ;;  %v6680_v38 = vld [vmem:[%s9549_s5 + $0xc8] sm:$0xff]  }
 0x32b   :  { %v3137_v22 = vadd.f32 %v3130_v21, %v3030_v17  ;;  %v3132_v24 = vpop.f32.mrb[73].mxu0  ;;  %v6676_v17 = vld [vmem:[%s9549_s5 + $0xb8] sm:$0xff]   ;;  %v6681_v21 = vld [vmem:[%s9549_s5 + $0x120] sm:$0xff]  }
 0x32c   :  { %v3138_v43 = vadd.f32 %v3132_v24, %v3031_v15  ;;  %v3134_v30 = vpop.f32.mrb[74].mxu0  ;;  %v6678_v15 = vld [vmem:[%s9549_s5 + $0xc0] sm:$0xff]   ;;  %v6683_v24 = vld [vmem:[%s9549_s5 + $0x128] sm:$0xff]  }
 0x32d   :  { %v3135_v25 = vpop.f32.mrb[75].mxu0  ;;  %v6685_v30 = vld [vmem:[%s9549_s5 + $0x130] sm:$0xff]  }
 0x32e   :  { %v6686_v25 = vld [vmem:[%s9549_s5 + $0xe0] sm:$0xff]  }
 0x33a   :  { %v3238_v27 = vpop.f32.mrb[60].mxu1 }
 0x33b   :  { %v3245_v37 = vadd.f32 %v3238_v27, %v3137_v22  ;;  %v3240_v31 = vpop.f32.mrb[61].mxu1  ;;  %v6682_v22 = vld [vmem:[%s9549_s5 + $0xd0] sm:$0xff]   ;;  %v6687_v27 = vld [vmem:[%s9549_s5 + $0x138] sm:$0xff]  }
 0x33c   :  { %v3246_v34 = vadd.f32 %v3240_v31, %v3138_v43  ;;  %v3242_v35 = vpop.f32.mrb[62].mxu1  ;;  %v6684_v43 = vld [vmem:[%s9549_s5 + $0xd8] sm:$0xff]  }
 0x33d   :  { %v3243_v36 = vpop.f32.mrb[63].mxu1  ;;  %v6689_v35 = vld [vmem:[%s9549_s5 + $0x140] sm:$0xff]  }
 0x33e   :  { %v3346_v28 = vpop.f32.mrb[76].mxu0 }
 0x33f   :  { %v3353_v40 = vadd.f32 %v3346_v28, %v3245_v37  ;;  %v3348_v29 = vpop.f32.mrb[77].mxu0  ;;  %v6688_v37 = vld [vmem:[%s9549_s5 + $0xe8] sm:$0xff]   ;;  %v6702_v28 = vld [vmem:[%s9547_s3 + $0x50] ss:$8 sps:$4 sm:$0xff]  }
 0x340   :  { %v3354_v39 = vadd.f32 %v3348_v29, %v3246_v34  ;;  %v3350_v44 = vpop.f32.mrb[78].mxu0  ;;  %v6701_v34 = vld [vmem:[%s9547_s3 + $0x54] ss:$8 sps:$4 sm:$0xff]   ;;  %v6703_v29 = vld [vmem:[%s9547_s3 + $0x64] ss:$8 sps:$4 sm:$0xff]  }
 0x341   :  { %v3351_v57 = vpop.f32.mrb[79].mxu0  ;;  %v6704_v44 = vld [vmem:[%s9547_s3 + $0x60] ss:$8 sps:$4 sm:$0xff]  }
 0x342   :  { %v6705_v57 = vld [vmem:[%s9547_s3 + $0x74] ss:$8 sps:$4 sm:$0xff]  }
 0x34e   :  { %v3454_v54 = vpop.f32.mrb[64].mxu1 }
 0x34f   :  { %v3461_v58 = vadd.f32 %v3454_v54, %v3353_v40  ;;  %v3456_v59 = vpop.f32.mrb[65].mxu1  ;;  %v6709_v54 = vld [vmem:[%s9547_s3 + $0x94] ss:$8 sps:$4 sm:$0xff]  }
 0x350   :  { %v3462_v60 = vadd.f32 %v3456_v59, %v3354_v39  ;;  %v3458_v62 = vpop.f32.mrb[66].mxu1  ;;  %v6690_v39 = vld [vmem:[%s9549_s5 + $0x148] sm:$0xff]   ;;  %v6710_v59 = vld [vmem:[%s9547_s3 + $0x90] ss:$8 sps:$4 sm:$0xff]  }
 0x351   :  { %v3475_v13 = vadd.f32 %v8339_v52, %v3461_v58  ;;  %v3459_v3 = vpop.f32.mrb[67].mxu1  ;;  %v6693_v58 = vld [vmem:[%s9549_s5 + $0x160] sm:$0xff]   ;;  %v6694_v62 = vld [vmem:[%s9549_s5 + $0x168] sm:$0xff]  }
 0x352   :  { %v3476_v4 = vadd.f32 %v8341_v55, %v3462_v60  ;;  %v6711_v60 = vld [vmem:[%s9547_s3 + $0x4] ss:$8 sps:$4 sm:$0xff]   ;;  %v6713_v3 = vld [vmem:[%s9547_s3 + $0x14] ss:$8 sps:$4 sm:$0xff]  }
 0x353   :  { %v3477_v5 = vmax.f32 %v3475_v13, 0.0  ;;  %v6712_v13 = vld [vmem:[%s9547_s3] ss:$8 sps:$4 sm:$0xff]  }
 0x354   :  { %v3478_v19 = vmax.f32 %v3476_v4, 0.0  ;;  %v6695_v4 = vld [vmem:[%s9549_s5 + $0x170] sm:$0xff]  }
 0x355   :  { %v8345_v63 = vpack.c.bf16 %v3477_v5, %v3477_v5  ;;  %v6714_v5 = vld [vmem:[%s9547_s3 + $0x10] ss:$8 sps:$4 sm:$0xff]  }
 0x356   :  { %v8347_v23 = vpack.c.bf16 %v3478_v19, %v3478_v19  ;;  %v6715_v19 = vld [vmem:[%s9547_s3 + $0x24] ss:$8 sps:$4 sm:$0xff]  }
 0x357   :  { %v3522_v8 = vshrl.u32 %v8345_v63, 16  ;;  %v3756_v36 = vrot.slane %v8345_v63, 1 }
 0x358   :  { %6029 = vmatprep.mubr.msk.bf16.mxu1 %vm3588_vm3, %v8347_v23  ;;  %v3525_v6 = vshrl.u32 %v8347_v23, 16  ;;  %v3757_v32 = vrot.slane %v8347_v23, 1  ;;  %v4011_v40 = vrot.slane %v8347_v23, 2  ;;  %v6696_v23 = vld [vmem:[%s9549_s5 + $0x178] sm:$0xff]  }
 0x359   :  { %3727 = vmatmul.mubr.bf16.vlgmr.msra.gmra.mrb[68].mxu1 %v8345_v63  ;;  %v3883_v31 = vrot.slane %v3522_v8, 1 }
 0x35a   :  { %3950 = vmatpush1.bf16.msra.mxu1 %v6669_v26  ;;  %6018 = vmatprep.mubr.msk.bf16.mxu0 %vm3588_vm3, %v3525_v6  ;;  %v3884_v9 = vrot.slane %v3525_v6, 1  ;;  %v6716_v26 = vld [vmem:[%s9547_s3 + $0x20] ss:$8 sps:$4 sm:$0xff]   ;;  %v6717_v6 = vld [vmem:[%s9547_s3 + $0x34] ss:$8 sps:$4 sm:$0xff]  }
 0x35b   :  { %3625 = vmatmul.mubr.bf16.vlgmr.msra.gmra.mrb[80].mxu0 %v3522_v8  ;;  %3951 = vmatprep.subr.bf16.mxu1 %v7025_v33  ;;  %v6718_v8 = vld [vmem:[%s9547_s3 + $0x30] ss:$8 sps:$4 sm:$0xff]  }
 0x35c   :  { %3823 = vmatpush1.bf16.msra.mxu0 %v6670_v7  ;;  %6040 = vmatprep.mubr.msk.bf16.mxu0 %vm3588_vm3, %v3757_v32  ;;  %v6697_v7 = vld [vmem:[%s9549_s5 + $0x180] sm:$0xff]  }
 0x35d   :  { %6051 = vmatprep.mubr.msk.bf16.mxu1 %vm3588_vm3, %v3884_v9  ;;  %3824 = vmatprep.subr.bf16.mxu0 %v7025_v33  ;;  %v6719_v32 = vld [vmem:[%s9547_s3 + $0x44] ss:$8 sps:$4 sm:$0xff]  }
 0x35e   :  { %3952 = vmatpush1.bf16.msra.mxu1 %v6671_v10  ;;  %v6698_v9 = vld [vmem:[%s9549_s5 + $0x188] sm:$0xff]  }
 0x35f   :  { %3953 = vmatprep.subr.bf16.mxu1 %v7025_v33  ;;  %v6720_v10 = vld [vmem:[%s9547_s3 + $0x40] ss:$8 sps:$4 sm:$0xff]  }
 0x360   :  { %3825 = vmatpush1.bf16.msra.mxu0 %v6672_v11  ;;  %v6721_v11 = vld [vmem:[%s9547_s3 + $0xf4] ss:$8 sps:$4 sm:$0xff]  }
 0x361   :  { %3826 = vmatprep.subr.bf16.mxu0 %v7025_v33 }
 0x362   :  { %3954 = vmatpush1.bf16.msra.mxu1 %v6673_v12  ;;  %v4010_v12 = vrot.slane %v8345_v63, 2  ;;  %v6726_v63 = vld [vmem:[%s9547_s3 + $0xb4] ss:$8 sps:$4 sm:$0xff]  }
 0x363   :  { %3955 = vmatprep.subr.bf16.mxu1 %v7025_v33 }
 0x364   :  { %3827 = vmatpush1.bf16.msra.mxu0 %v6674_v14  ;;  %v6722_v14 = vld [vmem:[%s9547_s3 + $0xa4] ss:$8 sps:$4 sm:$0xff]  }
 0x365   :  { %3828 = vmatprep.subr.bf16.mxu0 %v7025_v33 }
 0x366   :  { %3956 = vmatpush1.bf16.msra.mxu1 %v6675_v16  ;;  %v6723_v16 = vld [vmem:[%s9547_s3 + $0xf0] ss:$8 sps:$4 sm:$0xff]  }
 0x367   :  { %3957 = vmatprep.subr.bf16.mxu1 %v7025_v33 }
 0x368   :  { %3829 = vmatpush1.bf16.msra.mxu0 %v6676_v17  ;;  %v6724_v17 = vld [vmem:[%s9547_s3 + $0x104] ss:$8 sps:$4 sm:$0xff]  }
 0x369   :  { %3830 = vmatprep.subr.bf16.mxu0 %v7025_v33 }
 0x36a   :  { %3958 = vmatpush1.bf16.msra.mxu1 %v6677_v18  ;;  %v6727_v18 = vld [vmem:[%s9547_s3 + $0x100] ss:$8 sps:$4 sm:$0xff]  }
 0x36b   :  { %3959 = vmatprep.subr.bf16.mxu1 %v7025_v33 }
 0x36c   :  { %3831 = vmatpush1.bf16.msra.mxu0 %v6678_v15  ;;  %v6728_v15 = vld [vmem:[%s9547_s3 + $0x114] ss:$8 sps:$4 sm:$0xff]  }
 0x36d   :  { %3832 = vmatprep.subr.bf16.mxu0 %v7025_v33 }
 0x36e   :  { %3960 = vmatpush1.bf16.msra.mxu1 %v6679_v20  ;;  %v6729_v20 = vld [vmem:[%s9547_s3 + $0xb0] ss:$8 sps:$4 sm:$0xff]  }
 0x36f   :  { %3961 = vmatprep.subr.bf16.mxu1 %v7025_v33 }
 0x370   :  { %3833 = vmatpush1.bf16.msra.mxu0 %v6680_v38  ;;  %v6730_v38 = vld [vmem:[%s9547_s3 + $0xc4] ss:$8 sps:$4 sm:$0xff]  }
 0x371   :  { %3834 = vmatprep.subr.bf16.mxu0 %v7025_v33 }
 0x372   :  { %3962 = vmatpush1.bf16.msra.mxu1 %v6681_v21  ;;  %v6731_v21 = vld [vmem:[%s9547_s3 + $0x110] ss:$8 sps:$4 sm:$0xff]  }
 0x373   :  { %3963 = vmatprep.subr.bf16.mxu1 %v7025_v33 }
 0x374   :  { %3835 = vmatpush1.bf16.msra.mxu0 %v6682_v22  ;;  %v6732_v22 = vld [vmem:[%s9547_s3 + $0x124] ss:$8 sps:$4 sm:$0xff]  }
 0x375   :  { %3836 = vmatprep.subr.bf16.mxu0 %v7025_v33 }
 0x376   :  { %3964 = vmatpush1.bf16.msra.mxu1 %v6683_v24  ;;  %v6733_v24 = vld [vmem:[%s9547_s3 + $0xc0] ss:$8 sps:$4 sm:$0xff]  }
 0x377   :  { %3965 = vmatprep.subr.bf16.mxu1 %v7025_v33 }
 0x378   :  { %3837 = vmatpush1.bf16.msra.mxu0 %v6684_v43  ;;  %v6734_v43 = vld [vmem:[%s9547_s3 + $0xd4] ss:$8 sps:$4 sm:$0xff]  }
 0x379   :  { %3838 = vmatprep.subr.bf16.mxu0 %v7025_v33 }
 0x37a   :  { %3966 = vmatpush1.bf16.msra.mxu1 %v6685_v30  ;;  %v6735_v30 = vld [vmem:[%s9547_s3 + $0x120] ss:$8 sps:$4 sm:$0xff]  }
 0x37b   :  { %3967 = vmatprep.subr.bf16.mxu1 %v7025_v33 }
 0x37c   :  { %3839 = vmatpush1.bf16.msra.mxu0 %v6686_v25  ;;  %v6736_v25 = vld [vmem:[%s9547_s3 + $0x134] ss:$8 sps:$4 sm:$0xff]  }
 0x37d   :  { %3840 = vmatprep.subr.bf16.mxu0 %v7025_v33 }
 0x37e   :  { %3968 = vmatpush1.bf16.msra.mxu1 %v6687_v27  ;;  %v6737_v27 = vld [vmem:[%s9547_s3 + $0xd0] ss:$8 sps:$4 sm:$0xff]  }
 0x37f   :  { %4125 = vmatprep.subr.bf16.mxu1 %v6701_v34  ;;  %v6740_v34 = vld [vmem:[%s9547_s3 + $0x194] ss:$8 sps:$4 sm:$0xff]  }
 0x380   :  { %3841 = vmatpush1.bf16.msra.mxu0 %v6688_v37  ;;  %v6738_v37 = vld [vmem:[%s9547_s3 + $0xe4] ss:$8 sps:$4 sm:$0xff]  }
 0x381   :  { %3982 = vmatmul.mubr.bf16.vlgmr.msra.gmra.mrb[72].mxu1 %v3883_v31  ;;  %4076 = vmatprep.subr.bf16.mxu0 %v7025_v33  ;;  %v6739_v31 = vld [vmem:[%s9547_s3 + $0x130] ss:$8 sps:$4 sm:$0xff]  }
 0x382   :  { %4126 = vmatpush1.bf16.msra.mxu1 %v6702_v28  ;;  %4157 = vmatprep.mubr.bf16.mxu1 %v7025_v33  ;;  %v6742_v28 = vld [vmem:[%s9547_s3 + $0x144] ss:$8 sps:$4 sm:$0xff]  }
 0x383   :  { %3855 = vmatmul.mubr.bf16.vlgmr.msra.gmra.mrb[84].mxu0 %v3756_v36  ;;  %4127 = vmatprep.subr.bf16.mxu1 %v6703_v29  ;;  %v6741_v36 = vld [vmem:[%s9547_s3 + $0xe0] ss:$8 sps:$4 sm:$0xff]   ;;  %v6743_v29 = vld [vmem:[%s9547_s3 + $0x190] ss:$8 sps:$4 sm:$0xff]  }
 0x384   :  { %4077 = vmatpush1.bf16.msra.mxu0 %v6689_v35  ;;  %6062 = vmatprep.mubr.msk.bf16.mxu0 %vm3588_vm3, %v4011_v40  ;;  %v4261_v35 = vpop.permute.xlu0 %4260  ;;  %v4212_v40 = vpop.permute.xlu1 %4211 }
 0x385   :  { %4078 = vmatprep.subr.bf16.mxu0 %v7025_v33 }
 0x386   :  { %4128 = vmatpush1.bf16.msra.mxu1 %v6704_v44  ;;  %v6745_v44 = vld [vmem:[%s9547_s3 + $0x140] ss:$8 sps:$4 sm:$0xff]  }
 0x387   :  { %4129 = vmatprep.subr.bf16.mxu1 %v6705_v57  ;;  %v6746_v57 = vld [vmem:[%s9547_s3 + $0x154] ss:$8 sps:$4 sm:$0xff]  }
 0x388   :  { %4079 = vmatpush1.bf16.msra.mxu0 %v6690_v39  ;;  %v6744_v39 = vld [vmem:[%s9547_s3 + $0x1a4] ss:$8 sps:$4 sm:$0xff]  }
 0x389   :  { %4080 = vmatprep.subr.bf16.mxu0 %v7025_v33 }
 0x38a   :  { %4130 = vmatpush1.bf16.msra.mxu1 %v6706_v47  ;;  %v6748_v47 = vld [vmem:[%s9547_s3 + $0x1b4] ss:$8 sps:$4 sm:$0xff]  }
 0x38b   :  { %4131 = vmatprep.subr.bf16.mxu1 %v6707_v49  ;;  %v6749_v49 = vld [vmem:[%s9547_s3 + $0x150] ss:$8 sps:$4 sm:$0xff]  }
 0x38c   :  { %4081 = vmatpush1.bf16.msra.mxu0 %v6691_v45  ;;  %v6747_v45 = vld [vmem:[%s9547_s3 + $0x1a0] ss:$8 sps:$4 sm:$0xff]  }
 0x38d   :  { %4082 = vmatprep.subr.bf16.mxu0 %v7025_v33 }
 0x38e   :  { %4132 = vmatpush1.bf16.msra.mxu1 %v6708_v51  ;;  %v6751_v51 = vld [vmem:[%s9547_s3 + $0x1b0] ss:$8 sps:$4 sm:$0xff]  }
 0x38f   :  { %4133 = vmatprep.subr.bf16.mxu1 %v6709_v54  ;;  %v6752_v54 = vld [vmem:[%s9547_s3 + $0x1c4] ss:$8 sps:$4 sm:$0xff]  }
 0x390   :  { %4083 = vmatpush1.bf16.msra.mxu0 %v6692_v50  ;;  %v6750_v50 = vld [vmem:[%s9547_s3 + $0x164] ss:$8 sps:$4 sm:$0xff]  }
 0x391   :  { %4084 = vmatprep.subr.bf16.mxu0 %v7025_v33 }
 0x392   :  { %4134 = vmatpush1.bf16.msra.mxu1 %v6710_v59  ;;  %v6754_v59 = vld [vmem:[%s9547_s3 + $0x174] ss:$8 sps:$4 sm:$0xff]  }
 0x393   :  { %4169 = vmatprep.subr.bf16.mxu1 %v6711_v60  ;;  %v6755_v60 = vld [vmem:[%s9547_s3 + $0x1c0] ss:$8 sps:$4 sm:$0xff]  }
 0x394   :  { %4085 = vmatpush1.bf16.msra.mxu0 %v6693_v58  ;;  %v6753_v58 = vld [vmem:[%s9547_s3 + $0x160] ss:$8 sps:$4 sm:$0xff]  }
 0x395   :  { %6063 = vmatmul.mubr.msk.bf16.vlgmr.msra.gmra.mrb[76].mxu1 %vm824_vm2, %v7514_v42  ;;  %4086 = vmatprep.subr.bf16.mxu0 %v7025_v33  ;;  %v6924_v42 = vld [vmem:[%s9547_s3 + $0x744] ss:$8 sps:$4 sm:$0xff]  }
 0x396   :  { %4170 = vmatpush1.bf16.msra.mxu1 %v6712_v13  ;;  %4201 = vmatprep.mubr.bf16.mxu1 %v7025_v33  ;;  %v6757_v13 = vld [vmem:[%s9547_s3 + $0x170] ss:$8 sps:$4 sm:$0xff]  }
 0x397   :  { %4171 = vmatprep.subr.bf16.mxu1 %v6713_v3  ;;  %v6758_v3 = vld [vmem:[%s9547_s3 + $0x184] ss:$8 sps:$4 sm:$0xff]  }
 0x398   :  { %4087 = vmatpush1.bf16.msra.mxu0 %v6694_v62  ;;  %v6756_v62 = vld [vmem:[%s9547_s3 + $0x1d4] ss:$8 sps:$4 sm:$0xff]  }
 0x399   :  { %4088 = vmatprep.subr.bf16.mxu0 %v7025_v33 }
 0x39a   :  { %4172 = vmatpush1.bf16.msra.mxu1 %v6714_v5  ;;  %v6760_v5 = vld [vmem:[%s9547_s3 + $0x234] ss:$8 sps:$4 sm:$0xff]  }
 0x39b   :  { %4173 = vmatprep.subr.bf16.mxu1 %v6715_v19  ;;  %v6761_v19 = vld [vmem:[%s9547_s3 + $0x180] ss:$8 sps:$4 sm:$0xff]  }
 0x39c   :  { %4089 = vmatpush1.bf16.msra.mxu0 %v6695_v4  ;;  %v6759_v4 = vld [vmem:[%s9547_s3 + $0x1d0] ss:$8 sps:$4 sm:$0xff]  }
 0x39d   :  { %4090 = vmatprep.subr.bf16.mxu0 %v7025_v33 }
 0x39e   :  { %4174 = vmatpush1.bf16.msra.mxu1 %v6716_v26  ;;  %v4309_v26 = vpop.permute.xlu1 %4308 }
 0x39f   :  { %4175 = vmatprep.subr.bf16.mxu1 %v6717_v6  ;;  %v6763_v6 = vld [vmem:[%s9547_s3 + $0x230] ss:$8 sps:$4 sm:$0xff]  }
 0x3a0   :  { %4091 = vmatpush1.bf16.msra.mxu0 %v6696_v23  ;;  %v6762_v23 = vld [vmem:[%s9547_s3 + $0x1e4] ss:$8 sps:$4 sm:$0xff]  }
 0x3a1   :  { %4092 = vmatprep.subr.bf16.mxu0 %v7025_v33 }
 0x3a2   :  { %4176 = vmatpush1.bf16.msra.mxu1 %v6718_v8  ;;  %v6766_v8 = vld [vmem:[%s9547_s3 + $0x1f4] ss:$8 sps:$4 sm:$0xff]  }
 0x3a3   :  { %4177 = vmatprep.subr.bf16.mxu1 %v6719_v32  ;;  %v6767_v32 = vld [vmem:[%s9547_s3 + $0x240] ss:$8 sps:$4 sm:$0xff]  }
 0x3a4   :  { %4093 = vmatpush1.bf16.msra.mxu0 %v6697_v7  ;;  %v6764_v7 = vld [vmem:[%s9547_s3 + $0x244] ss:$8 sps:$4 sm:$0xff]  }
 0x3a5   :  { %4094 = vmatprep.subr.bf16.mxu0 %v7025_v33 }
 0x3a6   :  { %4178 = vmatpush1.bf16.msra.mxu1 %v6720_v10  ;;  %v6769_v10 = vld [vmem:[%s9547_s3 + $0x1f0] ss:$8 sps:$4 sm:$0xff]  }
 0x3a7   :  { %4265 = vmatprep.subr.bf16.mxu1 %v6721_v11  ;;  %v6770_v11 = vld [vmem:[%s9547_s3 + $0x204] ss:$8 sps:$4 sm:$0xff]  }
 0x3a8   :  { %4095 = vmatpush1.bf16.msra.mxu0 %v6698_v9  ;;  %v6768_v9 = vld [vmem:[%s9547_s3 + $0x254] ss:$8 sps:$4 sm:$0xff]  }
 0x3a9   :  { %6064 = vmatmul.mubr.msk.bf16.vlgmr.msra.gmra.mrb[80].mxu1 %vm824_vm2, %v7510_v41  ;;  %4216 = vmatprep.subr.bf16.mxu0 %v6722_v14  ;;  %v6725_v41 = vld [vmem:[%s9547_s3 + $0xa0] ss:$8 sps:$4 sm:$0xff]   ;;  %v6772_v14 = vld [vmem:[%s9547_s3 + $0x264] ss:$8 sps:$4 sm:$0xff]  }
 0x3aa   :  { %4266 = vmatpush1.bf16.msra.mxu1 %v6723_v16  ;;  %4297 = vmatprep.mubr.bf16.mxu1 %v7025_v33  ;;  %v6773_v16 = vld [vmem:[%s9547_s3 + $0x200] ss:$8 sps:$4 sm:$0xff]  }
 0x3ab   :  { %4109 = vmatmul.mubr.bf16.vlgmr.msra.gmra.mrb[88].mxu0 %v4010_v12  ;;  %4267 = vmatprep.subr.bf16.mxu1 %v6724_v17  ;;  %v6771_v12 = vld [vmem:[%s9547_s3 + $0x250] ss:$8 sps:$4 sm:$0xff]   ;;  %v6774_v17 = vld [vmem:[%s9547_s3 + $0x214] ss:$8 sps:$4 sm:$0xff]  }
 0x3ac   :  { %4217 = vmatpush1.bf16.msra.mxu0 %v6725_v41  ;;  %4248 = vmatprep.mubr.bf16.mxu0 %v7025_v33  ;;  %v6775_v41 = vld [vmem:[%s9547_s3 + $0x260] ss:$8 sps:$4 sm:$0xff]  }
 0x3ad   :  { %4218 = vmatprep.subr.bf16.mxu0 %v6726_v63  ;;  %v6776_v63 = vld [vmem:[%s9547_s3 + $0x274] ss:$8 sps:$4 sm:$0xff]  }
 0x3ae   :  { %4268 = vmatpush1.bf16.msra.mxu1 %v6727_v18  ;;  %v6777_v18 = vld [vmem:[%s9547_s3 + $0x210] ss:$8 sps:$4 sm:$0xff]  }
 0x3af   :  { %4269 = vmatprep.subr.bf16.mxu1 %v6728_v15  ;;  %v6778_v15 = vld [vmem:[%s9547_s3 + $0x224] ss:$8 sps:$4 sm:$0xff]  }
 0x3b0   :  { %4219 = vmatpush1.bf16.msra.mxu0 %v6729_v20  ;;  %v6779_v20 = vld [vmem:[%s9547_s3 + $0x270] ss:$8 sps:$4 sm:$0xff]  }
 0x3b1   :  { %4220 = vmatprep.subr.bf16.mxu0 %v6730_v38  ;;  %v6780_v38 = vld [vmem:[%s9547_s3 + $0x2d4] ss:$8 sps:$4 sm:$0xff]  }
 0x3b2   :  { %4270 = vmatpush1.bf16.msra.mxu1 %v6731_v21  ;;  %v4452_v21 = vpop.permute.xlu0 %4451 }
 0x3b3   :  { %4271 = vmatprep.subr.bf16.mxu1 %v6732_v22  ;;  %v6781_v22 = vld [vmem:[%s9547_s3 + $0x220] ss:$8 sps:$4 sm:$0xff]  }
 0x3b4   :  { %4221 = vmatpush1.bf16.msra.mxu0 %v6733_v24  ;;  %v6782_v24 = vld [vmem:[%s9547_s3 + $0x284] ss:$8 sps:$4 sm:$0xff]  }
 0x3b5   :  { %4222 = vmatprep.subr.bf16.mxu0 %v6734_v43  ;;  %v6783_v43 = vld [vmem:[%s9547_s3 + $0x2d0] ss:$8 sps:$4 sm:$0xff]  }
 0x3b6   :  { %4272 = vmatpush1.bf16.msra.mxu1 %v6735_v30  ;;  %v6784_v30 = vld [vmem:[%s9547_s3 + $0x2e4] ss:$8 sps:$4 sm:$0xff]  }
 0x3b7   :  { %4273 = vmatprep.subr.bf16.mxu1 %v6736_v25  ;;  %v6785_v25 = vld [vmem:[%s9547_s3 + $0x280] ss:$8 sps:$4 sm:$0xff]  }
 0x3b8   :  { %4223 = vmatpush1.bf16.msra.mxu0 %v6737_v27  ;;  %v6786_v27 = vld [vmem:[%s9547_s3 + $0x294] ss:$8 sps:$4 sm:$0xff]  }
 0x3b9   :  { %4224 = vmatprep.subr.bf16.mxu0 %v6738_v37  ;;  %v6788_v37 = vld [vmem:[%s9547_s3 + $0x2f4] ss:$8 sps:$4 sm:$0xff]  }
 0x3ba   :  { %4274 = vmatpush1.bf16.msra.mxu1 %v6739_v31  ;;  %v6789_v31 = vld [vmem:[%s9547_s3 + $0x290] ss:$8 sps:$4 sm:$0xff]  }
 0x3bb   :  { %4360 = vmatprep.subr.bf16.mxu1 %v6740_v34  ;;  %v6790_v34 = vld [vmem:[%s9547_s3 + $0x2a4] ss:$8 sps:$4 sm:$0xff]  }
 0x3bc   :  { %4225 = vmatpush1.bf16.msra.mxu0 %v6741_v36  ;;  %v6792_v36 = vld [vmem:[%s9547_s3 + $0x304] ss:$8 sps:$4 sm:$0xff]  }
 0x3bd   :  { %6066 = vmatmul.mubr.msk.bf16.vlgmr.msra.gmra.mrb[84].mxu1 %vm824_vm2, %v4261_v35  ;;  %4313 = vmatprep.subr.bf16.mxu0 %v6742_v28  ;;  %v6791_v35 = vld [vmem:[%s9547_s3 + $0x2f0] ss:$8 sps:$4 sm:$0xff]   ;;  %v6793_v28 = vld [vmem:[%s9547_s3 + $0x2a0] ss:$8 sps:$4 sm:$0xff]  }
 0x3be   :  { %4361 = vmatpush1.bf16.msra.mxu1 %v6743_v29  ;;  %4392 = vmatprep.mubr.bf16.mxu1 %v7025_v33  ;;  %v6795_v29 = vld [vmem:[%s9547_s3 + $0x300] ss:$8 sps:$4 sm:$0xff]  }
 0x3bf   :  { %6065 = vmatmul.mubr.msk.bf16.vlgmr.msra.gmra.mrb[92].mxu0 %vm824_vm2, %v4212_v40  ;;  %4362 = vmatprep.subr.bf16.mxu1 %v6744_v39  ;;  %v6794_v40 = vld [vmem:[%s9547_s3 + $0x2b4] ss:$8 sps:$4 sm:$0xff]  }
 0x3c0   :  { %4314 = vmatpush1.bf16.msra.mxu0 %v6745_v44  ;;  %4345 = vmatprep.mubr.bf16.mxu0 %v7025_v33  ;;  %v6796_v39 = vld [vmem:[%s9547_s3 + $0x314] ss:$8 sps:$4 sm:$0xff]   ;;  %v6797_v44 = vld [vmem:[%s9547_s3 + $0x2b0] ss:$8 sps:$4 sm:$0xff]  }
 0x3c1   :  { %4315 = vmatprep.subr.bf16.mxu0 %v6746_v57  ;;  %v6798_v57 = vld [vmem:[%s9547_s3 + $0x2c4] ss:$8 sps:$4 sm:$0xff]  }
 0x3c2   :  { %4363 = vmatpush1.bf16.msra.mxu1 %v6747_v45  ;;  %v6799_v45 = vld [vmem:[%s9547_s3 + $0x310] ss:$8 sps:$4 sm:$0xff]  }
 0x3c3   :  { %4364 = vmatprep.subr.bf16.mxu1 %v6748_v47  ;;  %v6800_v47 = vld [vmem:[%s9547_s3 + $0x374] ss:$8 sps:$4 sm:$0xff]  }
 0x3c4   :  { %4316 = vmatpush1.bf16.msra.mxu0 %v6749_v49  ;;  %v4549_v49 = vpop.permute.xlu0 %4548 }
 0x3c5   :  { %4317 = vmatprep.subr.bf16.mxu0 %v6750_v50  ;;  %v6801_v50 = vld [vmem:[%s9547_s3 + $0x2c0] ss:$8 sps:$4 sm:$0xff]  }
 0x3c6   :  { %4365 = vmatpush1.bf16.msra.mxu1 %v6751_v51  ;;  %v6802_v51 = vld [vmem:[%s9547_s3 + $0x324] ss:$8 sps:$4 sm:$0xff]  }
 0x3c7   :  { %4366 = vmatprep.subr.bf16.mxu1 %v6752_v54  ;;  %v4501_v54 = vpop.permute.xlu1 %4500 }
 0x3c8   :  { %4318 = vmatpush1.bf16.msra.mxu0 %v6753_v58  ;;  %v6803_v58 = vld [vmem:[%s9547_s3 + $0x370] ss:$8 sps:$4 sm:$0xff]  }
 0x3c9   :  { %4319 = vmatprep.subr.bf16.mxu0 %v6754_v59  ;;  %v6804_v59 = vld [vmem:[%s9547_s3 + $0x384] ss:$8 sps:$4 sm:$0xff]  }
 0x3ca   :  { %4367 = vmatpush1.bf16.msra.mxu1 %v6755_v60  ;;  %v6805_v60 = vld [vmem:[%s9547_s3 + $0x320] ss:$8 sps:$4 sm:$0xff]  }
 0x3cb   :  { %4368 = vmatprep.subr.bf16.mxu1 %v6756_v62  ;;  %v6806_v62 = vld [vmem:[%s9547_s3 + $0x334] ss:$8 sps:$4 sm:$0xff]  }
 0x3cc   :  { %4320 = vmatpush1.bf16.msra.mxu0 %v6757_v13  ;;  %v6807_v13 = vld [vmem:[%s9547_s3 + $0x380] ss:$8 sps:$4 sm:$0xff]  }
 0x3cd   :  { %4321 = vmatprep.subr.bf16.mxu0 %v6758_v3  ;;  %v6808_v3 = vld [vmem:[%s9547_s3 + $0x394] ss:$8 sps:$4 sm:$0xff]  }
 0x3ce   :  { %4369 = vmatpush1.bf16.msra.mxu1 %v6759_v4  ;;  %v6809_v4 = vld [vmem:[%s9547_s3 + $0x330] ss:$8 sps:$4 sm:$0xff]  }
 0x3cf   :  { %4456 = vmatprep.subr.bf16.mxu1 %v6760_v5  ;;  %v6810_v5 = vld [vmem:[%s9547_s3 + $0x344] ss:$8 sps:$4 sm:$0xff]  }
 0x3d0   :  { %4322 = vmatpush1.bf16.msra.mxu0 %v6761_v19  ;;  %v6811_v19 = vld [vmem:[%s9547_s3 + $0x390] ss:$8 sps:$4 sm:$0xff]  }
 0x3d1   :  { %6068 = vmatmul.mubr.msk.bf16.vlgmr.msra.gmra.mrb[88].mxu1 %vm824_vm2, %v7521_v46  ;;  %4407 = vmatprep.subr.bf16.mxu0 %v6762_v23  ;;  %v6765_v46 = vld [vmem:[%s9547_s3 + $0x1e0] ss:$8 sps:$4 sm:$0xff]   ;;  %v6812_v23 = vld [vmem:[%s9547_s3 + $0x3a4] ss:$8 sps:$4 sm:$0xff]  }
 0x3d2   :  { %4457 = vmatpush1.bf16.msra.mxu1 %v6763_v6  ;;  %4488 = vmatprep.mubr.bf16.mxu1 %v7025_v33  ;;  %v6814_v6 = vld [vmem:[%s9547_s3 + $0x354] ss:$8 sps:$4 sm:$0xff]  }
 0x3d3   :  { %6067 = vmatmul.mubr.msk.bf16.vlgmr.msra.gmra.mrb[96].mxu0 %vm824_vm2, %v4309_v26  ;;  %4458 = vmatprep.subr.bf16.mxu1 %v6764_v7  ;;  %v6813_v26 = vld [vmem:[%s9547_s3 + $0x340] ss:$8 sps:$4 sm:$0xff]  }
 0x3d4   :  { %4408 = vmatpush1.bf16.msra.mxu0 %v6765_v46  ;;  %4439 = vmatprep.mubr.bf16.mxu0 %v7025_v33  ;;  %v6815_v7 = vld [vmem:[%s9547_s3 + $0x3a0] ss:$8 sps:$4 sm:$0xff]   ;;  %v6816_v46 = vld [vmem:[%s9547_s3 + $0x3b4] ss:$8 sps:$4 sm:$0xff]  }
 0x3d5   :  { %4409 = vmatprep.subr.bf16.mxu0 %v6766_v8  ;;  %v6817_v8 = vld [vmem:[%s9547_s3 + $0x350] ss:$8 sps:$4 sm:$0xff]  }
 0x3d6   :  { %4459 = vmatpush1.bf16.msra.mxu1 %v6767_v32  ;;  %v6818_v32 = vld [vmem:[%s9547_s3 + $0x364] ss:$8 sps:$4 sm:$0xff]  }
 0x3d7   :  { %4460 = vmatprep.subr.bf16.mxu1 %v6768_v9  ;;  %v6819_v9 = vld [vmem:[%s9547_s3 + $0x3b0] ss:$8 sps:$4 sm:$0xff]  }
 0x3d8   :  { %4410 = vmatpush1.bf16.msra.mxu0 %v6769_v10  ;;  %v6820_v10 = vld [vmem:[%s9547_s3 + $0x414] ss:$8 sps:$4 sm:$0xff]  }
 0x3d9   :  { %4411 = vmatprep.subr.bf16.mxu0 %v6770_v11  ;;  %v6821_v11 = vld [vmem:[%s9547_s3 + $0x360] ss:$8 sps:$4 sm:$0xff]  }
 0x3da   :  { %4461 = vmatpush1.bf16.msra.mxu1 %v6771_v12  ;;  %v6822_v12 = vld [vmem:[%s9547_s3 + $0x3c4] ss:$8 sps:$4 sm:$0xff]  }
 0x3db   :  { %4462 = vmatprep.subr.bf16.mxu1 %v6772_v14  ;;  %v6823_v14 = vld [vmem:[%s9547_s3 + $0x410] ss:$8 sps:$4 sm:$0xff]  }
 0x3dc   :  { %4412 = vmatpush1.bf16.msra.mxu0 %v6773_v16  ;;  %v6824_v16 = vld [vmem:[%s9547_s3 + $0x424] ss:$8 sps:$4 sm:$0xff]  }
 0x3dd   :  { %4413 = vmatprep.subr.bf16.mxu0 %v6774_v17  ;;  %v6826_v17 = vld [vmem:[%s9547_s3 + $0x3d4] ss:$8 sps:$4 sm:$0xff]  }
 0x3de   :  { %4463 = vmatpush1.bf16.msra.mxu1 %v6775_v41  ;;  %v6828_v41 = vld [vmem:[%s9547_s3 + $0x434] ss:$8 sps:$4 sm:$0xff]  }
 0x3df   :  { %4464 = vmatprep.subr.bf16.mxu1 %v6776_v63  ;;  %v6829_v63 = vld [vmem:[%s9547_s3 + $0x3d0] ss:$8 sps:$4 sm:$0xff]  }
 0x3e0   :  { %4414 = vmatpush1.bf16.msra.mxu0 %v6777_v18  ;;  %v6830_v18 = vld [vmem:[%s9547_s3 + $0x3e4] ss:$8 sps:$4 sm:$0xff]  }
 0x3e1   :  { %4415 = vmatprep.subr.bf16.mxu0 %v6778_v15  ;;  %v6831_v15 = vld [vmem:[%s9547_s3 + $0x430] ss:$8 sps:$4 sm:$0xff]  }
 0x3e2   :  { %4465 = vmatpush1.bf16.msra.mxu1 %v6779_v20  ;;  %v6832_v20 = vld [vmem:[%s9547_s3 + $0x444] ss:$8 sps:$4 sm:$0xff]  }
 0x3e3   :  { %4553 = vmatprep.subr.bf16.mxu1 %v6780_v38  ;;  %v6833_v38 = vld [vmem:[%s9547_s3 + $0x3e0] ss:$8 sps:$4 sm:$0xff]  }
 0x3e4   :  { %4416 = vmatpush1.bf16.msra.mxu0 %v6781_v22  ;;  %v6835_v22 = vld [vmem:[%s9547_s3 + $0x440] ss:$8 sps:$4 sm:$0xff]  }
 0x3e5   :  { %6070 = vmatmul.mubr.msk.bf16.vlgmr.msra.gmra.mrb[92].mxu1 %vm824_vm2, %v4452_v21  ;;  %4505 = vmatprep.subr.bf16.mxu0 %v6782_v24  ;;  %v6834_v21 = vld [vmem:[%s9547_s3 + $0x3f4] ss:$8 sps:$4 sm:$0xff]  }
 0x3e6   :  { %4554 = vmatpush1.bf16.msra.mxu1 %v6783_v43  ;;  %4585 = vmatprep.mubr.bf16.mxu1 %v7025_v33  ;;  %v6836_v24 = vld [vmem:[%s9547_s3 + $0x454] ss:$8 sps:$4 sm:$0xff]   ;;  %v6837_v43 = vld [vmem:[%s9547_s3 + $0x3f0] ss:$8 sps:$4 sm:$0xff]  }
 0x3e7   :  { %6069 = vmatmul.mubr.msk.bf16.vlgmr.msra.gmra.mrb[100].mxu0 %vm824_vm2, %v7526_v48  ;;  %4555 = vmatprep.subr.bf16.mxu1 %v6784_v30  ;;  %v6787_v48 = vld [vmem:[%s9547_s3 + $0x2e0] ss:$8 sps:$4 sm:$0xff]   ;;  %v6838_v30 = vld [vmem:[%s9547_s3 + $0x404] ss:$8 sps:$4 sm:$0xff]  }
 0x3e8   :  { %4506 = vmatpush1.bf16.msra.mxu0 %v6785_v25  ;;  %4537 = vmatprep.mubr.bf16.mxu0 %v7025_v33  ;;  %v6839_v25 = vld [vmem:[%s9547_s3 + $0x450] ss:$8 sps:$4 sm:$0xff]  }
 0x3e9   :  { %4507 = vmatprep.subr.bf16.mxu0 %v6786_v27  ;;  %v6840_v27 = vld [vmem:[%s9547_s3 + $0x4b4] ss:$8 sps:$4 sm:$0xff]  }
 0x3ea   :  { %4556 = vmatpush1.bf16.msra.mxu1 %v6787_v48  ;;  %v4749_v48 = vpop.permute.xlu0 %4748 }
 0x3eb   :  { %4557 = vmatprep.subr.bf16.mxu1 %v6788_v37  ;;  %v6841_v37 = vld [vmem:[%s9547_s3 + $0x400] ss:$8 sps:$4 sm:$0xff]  }
 0x3ec   :  { %4508 = vmatpush1.bf16.msra.mxu0 %v6789_v31  ;;  %v6842_v31 = vld [vmem:[%s9547_s3 + $0x464] ss:$8 sps:$4 sm:$0xff]  }
 0x3ed   :  { %4509 = vmatprep.subr.bf16.mxu0 %v6790_v34  ;;  %v4701_v34 = vpop.permute.xlu1 %4700 }
 0x3ee   :  { %4558 = vmatpush1.bf16.msra.mxu1 %v6791_v35  ;;  %v6843_v35 = vld [vmem:[%s9547_s3 + $0x4b0] ss:$8 sps:$4 sm:$0xff]  }
 0x3ef   :  { %4559 = vmatprep.subr.bf16.mxu1 %v6792_v36  ;;  %v6844_v36 = vld [vmem:[%s9547_s3 + $0x4c4] ss:$8 sps:$4 sm:$0xff]  }
 0x3f0   :  { %4510 = vmatpush1.bf16.msra.mxu0 %v6793_v28  ;;  %v6845_v28 = vld [vmem:[%s9547_s3 + $0x460] ss:$8 sps:$4 sm:$0xff]  }
 0x3f1   :  { %4511 = vmatprep.subr.bf16.mxu0 %v6794_v40  ;;  %v6846_v40 = vld [vmem:[%s9547_s3 + $0x474] ss:$8 sps:$4 sm:$0xff]  }
 0x3f2   :  { %4560 = vmatpush1.bf16.msra.mxu1 %v6795_v29  ;;  %v6847_v29 = vld [vmem:[%s9547_s3 + $0x4c0] ss:$8 sps:$4 sm:$0xff]  }
 0x3f3   :  { %4561 = vmatprep.subr.bf16.mxu1 %v6796_v39  ;;  %v6848_v39 = vld [vmem:[%s9547_s3 + $0x4d4] ss:$8 sps:$4 sm:$0xff]  }
 0x3f4   :  { %4512 = vmatpush1.bf16.msra.mxu0 %v6797_v44  ;;  %v6849_v44 = vld [vmem:[%s9547_s3 + $0x470] ss:$8 sps:$4 sm:$0xff]  }
 0x3f5   :  { %4513 = vmatprep.subr.bf16.mxu0 %v6798_v57  ;;  %v6850_v57 = vld [vmem:[%s9547_s3 + $0x484] ss:$8 sps:$4 sm:$0xff]  }
 0x3f6   :  { %4562 = vmatpush1.bf16.msra.mxu1 %v6799_v45  ;;  %v6851_v45 = vld [vmem:[%s9547_s3 + $0x4d0] ss:$8 sps:$4 sm:$0xff]  }
 0x3f7   :  { %4657 = vmatprep.subr.bf16.mxu1 %v6800_v47  ;;  %v6852_v47 = vld [vmem:[%s9547_s3 + $0x4e4] ss:$8 sps:$4 sm:$0xff]  }
 0x3f8   :  { %4514 = vmatpush1.bf16.msra.mxu0 %v6801_v50 }
 0x3f9   :  { %6072 = vmatmul.mubr.msk.bf16.vlgmr.msra.gmra.mrb[96].mxu1 %vm824_vm2, %v4549_v49  ;;  %4605 = vmatprep.subr.bf16.mxu0 %v6802_v51  ;;  %v6853_v49 = vld [vmem:[%s9547_s3 + $0x480] ss:$8 sps:$4 sm:$0xff]  }
 0x3fa   :  { %4658 = vmatpush1.bf16.msra.mxu1 %v6803_v58  ;;  %4689 = vmatprep.mubr.bf16.mxu1 %v7025_v33  ;;  %v6855_v58 = vld [vmem:[%s9547_s3 + $0x4e0] ss:$8 sps:$4 sm:$0xff]  }
 0x3fb   :  { %6071 = vmatmul.mubr.msk.bf16.vlgmr.msra.gmra.mrb[104].mxu0 %vm824_vm2, %v4501_v54  ;;  %4659 = vmatprep.subr.bf16.mxu1 %v6804_v59  ;;  %v6854_v54 = vld [vmem:[%s9547_s3 + $0x494] ss:$8 sps:$4 sm:$0xff]  }
 0x3fc   :  { %4606 = vmatpush1.bf16.msra.mxu0 %v6805_v60  ;;  %4637 = vmatprep.mubr.bf16.mxu0 %v7025_v33 }
 0x3fd   :  { %4607 = vmatprep.subr.bf16.mxu0 %v6806_v62 }
 0x3fe   :  { %4660 = vmatpush1.bf16.msra.mxu1 %v6807_v13 }
 0x3ff   :  { %4661 = vmatprep.subr.bf16.mxu1 %v6808_v3 }
 0x400   :  { %4608 = vmatpush1.bf16.msra.mxu0 %v6809_v4  ;;  %v6856_v4 = vld [vmem:[%s9547_s3 + $0x4f4] ss:$8 sps:$4 sm:$0xff]  }
 0x401   :  { %4609 = vmatprep.subr.bf16.mxu0 %v6810_v5  ;;  %v6857_v5 = vld [vmem:[%s9547_s3 + $0x490] ss:$8 sps:$4 sm:$0xff]  }
 0x402   :  { %4662 = vmatpush1.bf16.msra.mxu1 %v6811_v19 }
 0x403   :  { %4663 = vmatprep.subr.bf16.mxu1 %v6812_v23 }
 0x404   :  { %4610 = vmatpush1.bf16.msra.mxu0 %v6813_v26  ;;  %v6858_v26 = vld [vmem:[%s9547_s3 + $0x4a4] ss:$8 sps:$4 sm:$0xff]  }
 0x405   :  { %4611 = vmatprep.subr.bf16.mxu0 %v6814_v6  ;;  %v6859_v6 = vld [vmem:[%s9547_s3 + $0x4f0] ss:$8 sps:$4 sm:$0xff]  }
 0x406   :  { %4664 = vmatpush1.bf16.msra.mxu1 %v6815_v7  ;;  %v6860_v7 = vld [vmem:[%s9547_s3 + $0x554] ss:$8 sps:$4 sm:$0xff]  }
 0x407   :  { %4665 = vmatprep.subr.bf16.mxu1 %v6816_v46  ;;  %v6861_v46 = vld [vmem:[%s9547_s3 + $0x4a0] ss:$8 sps:$4 sm:$0xff]  }
 0x408   :  { %4612 = vmatpush1.bf16.msra.mxu0 %v6817_v8  ;;  %v6862_v8 = vld [vmem:[%s9547_s3 + $0x504] ss:$8 sps:$4 sm:$0xff]  }
 0x409   :  { %4613 = vmatprep.subr.bf16.mxu0 %v6818_v32  ;;  %v4797_v32 = vpop.permute.xlu1 %4796 }
 0x40a   :  { %4666 = vmatpush1.bf16.msra.mxu1 %v6819_v9  ;;  %v6863_v9 = vld [vmem:[%s9547_s3 + $0x550] ss:$8 sps:$4 sm:$0xff]  }
 0x40b   :  { %4753 = vmatprep.subr.bf16.mxu1 %v6820_v10  ;;  %v6864_v10 = vld [vmem:[%s9547_s3 + $0x564] ss:$8 sps:$4 sm:$0xff]  }
 0x40c   :  { %4614 = vmatpush1.bf16.msra.mxu0 %v6821_v11  ;;  %v6866_v11 = vld [vmem:[%s9547_s3 + $0x514] ss:$8 sps:$4 sm:$0xff]  }
 0x40d   :  { %6074 = vmatmul.mubr.msk.bf16.vlgmr.msra.gmra.mrb[100].mxu1 %vm824_vm2, %v7542_v56  ;;  %4705 = vmatprep.subr.bf16.mxu0 %v6822_v12  ;;  %v6825_v56 = vld [vmem:[%s9547_s3 + $0x3c0] ss:$8 sps:$4 sm:$0xff]  }
 0x40e   :  { %4754 = vmatpush1.bf16.msra.mxu1 %v6823_v14  ;;  %4785 = vmatprep.mubr.bf16.mxu1 %v7025_v33  ;;  %v6867_v12 = vld [vmem:[%s9547_s3 + $0x560] ss:$8 sps:$4 sm:$0xff]   ;;  %v6868_v14 = vld [vmem:[%s9547_s3 + $0x574] ss:$8 sps:$4 sm:$0xff]  }
 0x40f   :  { %6073 = vmatmul.mubr.msk.bf16.vlgmr.msra.gmra.mrb[108].mxu0 %vm824_vm2, %v7536_v53  ;;  %4755 = vmatprep.subr.bf16.mxu1 %v6824_v16  ;;  %v6827_v53 = vld [vmem:[%s9547_s3 + $0x420] ss:$8 sps:$4 sm:$0xff]   ;;  %v6869_v16 = vld [vmem:[%s9547_s3 + $0x510] ss:$8 sps:$4 sm:$0xff]  }
 0x410   :  { %4706 = vmatpush1.bf16.msra.mxu0 %v6825_v56  ;;  %4737 = vmatprep.mubr.bf16.mxu0 %v7025_v33  ;;  %v6870_v56 = vld [vmem:[%s9547_s3 + $0x524] ss:$8 sps:$4 sm:$0xff]  }
 0x411   :  { %4707 = vmatprep.subr.bf16.mxu0 %v6826_v17  ;;  %v6871_v17 = vld [vmem:[%s9547_s3 + $0x570] ss:$8 sps:$4 sm:$0xff]  }
 0x412   :  { %4756 = vmatpush1.bf16.msra.mxu1 %v6827_v53  ;;  %v6872_v53 = vld [vmem:[%s9547_s3 + $0x584] ss:$8 sps:$4 sm:$0xff]  }
 0x413   :  { %4757 = vmatprep.subr.bf16.mxu1 %v6828_v41  ;;  %v6873_v41 = vld [vmem:[%s9547_s3 + $0x520] ss:$8 sps:$4 sm:$0xff]  }
 0x414   :  { %4708 = vmatpush1.bf16.msra.mxu0 %v6829_v63  ;;  %v6874_v63 = vld [vmem:[%s9547_s3 + $0x534] ss:$8 sps:$4 sm:$0xff]  }
 0x415   :  { %4709 = vmatprep.subr.bf16.mxu0 %v6830_v18  ;;  %v6875_v18 = vld [vmem:[%s9547_s3 + $0x580] ss:$8 sps:$4 sm:$0xff]  }
 0x416   :  { %4758 = vmatpush1.bf16.msra.mxu1 %v6831_v15  ;;  %v6876_v15 = vld [vmem:[%s9547_s3 + $0x594] ss:$8 sps:$4 sm:$0xff]  }
 0x417   :  { %4759 = vmatprep.subr.bf16.mxu1 %v6832_v20  ;;  %v6877_v20 = vld [vmem:[%s9547_s3 + $0x530] ss:$8 sps:$4 sm:$0xff]  }
 0x418   :  { %4710 = vmatpush1.bf16.msra.mxu0 %v6833_v38  ;;  %v6878_v38 = vld [vmem:[%s9547_s3 + $0x544] ss:$8 sps:$4 sm:$0xff]  }
 0x419   :  { %4711 = vmatprep.subr.bf16.mxu0 %v6834_v21  ;;  %v6879_v21 = vld [vmem:[%s9547_s3 + $0x590] ss:$8 sps:$4 sm:$0xff]  }
 0x41a   :  { %4760 = vmatpush1.bf16.msra.mxu1 %v6835_v22  ;;  %v6880_v22 = vld [vmem:[%s9547_s3 + $0x5f4] ss:$8 sps:$4 sm:$0xff]  }
 0x41b   :  { %4761 = vmatprep.subr.bf16.mxu1 %v6836_v24  ;;  %v4949_v24 = vpop.permute.xlu0 %4948 }
 0x41c   :  { %4712 = vmatpush1.bf16.msra.mxu0 %v6837_v43  ;;  %v6881_v43 = vld [vmem:[%s9547_s3 + $0x540] ss:$8 sps:$4 sm:$0xff]  }
 0x41d   :  { %4713 = vmatprep.subr.bf16.mxu0 %v6838_v30  ;;  %v6882_v30 = vld [vmem:[%s9547_s3 + $0x5a4] ss:$8 sps:$4 sm:$0xff]  }
 0x41e   :  { %4762 = vmatpush1.bf16.msra.mxu1 %v6839_v25  ;;  %v6883_v25 = vld [vmem:[%s9547_s3 + $0x5f0] ss:$8 sps:$4 sm:$0xff]  }
 0x41f   :  { %4853 = vmatprep.subr.bf16.mxu1 %v6840_v27  ;;  %v6884_v27 = vld [vmem:[%s9547_s3 + $0x604] ss:$8 sps:$4 sm:$0xff]  }
 0x420   :  { %4714 = vmatpush1.bf16.msra.mxu0 %v6841_v37  ;;  %v6886_v37 = vld [vmem:[%s9547_s3 + $0x5b4] ss:$8 sps:$4 sm:$0xff]  }
 0x421   :  { %6076 = vmatmul.mubr.msk.bf16.vlgmr.msra.gmra.mrb[104].mxu1 %vm824_vm2, %v4749_v48  ;;  %4801 = vmatprep.subr.bf16.mxu0 %v6842_v31  ;;  %v6885_v48 = vld [vmem:[%s9547_s3 + $0x5a0] ss:$8 sps:$4 sm:$0xff]   ;;  %v6888_v31 = vld [vmem:[%s9547_s3 + $0x614] ss:$8 sps:$4 sm:$0xff]  }
 0x422   :  { %4854 = vmatpush1.bf16.msra.mxu1 %v6843_v35  ;;  %4885 = vmatprep.mubr.bf16.mxu1 %v7025_v33  ;;  %v6890_v35 = vld [vmem:[%s9547_s3 + $0x5c4] ss:$8 sps:$4 sm:$0xff]  }
 0x423   :  { %6075 = vmatmul.mubr.msk.bf16.vlgmr.msra.gmra.mrb[112].mxu0 %vm824_vm2, %v4701_v34  ;;  %4855 = vmatprep.subr.bf16.mxu1 %v6844_v36  ;;  %v6889_v34 = vld [vmem:[%s9547_s3 + $0x5b0] ss:$8 sps:$4 sm:$0xff]  }
 0x424   :  { %4802 = vmatpush1.bf16.msra.mxu0 %v6845_v28  ;;  %4833 = vmatprep.mubr.bf16.mxu0 %v7025_v33  ;;  %v6891_v36 = vld [vmem:[%s9547_s3 + $0x610] ss:$8 sps:$4 sm:$0xff]   ;;  %v6892_v28 = vld [vmem:[%s9547_s3 + $0x624] ss:$8 sps:$4 sm:$0xff]  }
 0x425   :  { %4803 = vmatprep.subr.bf16.mxu0 %v6846_v40 }
 0x426   :  { %4856 = vmatpush1.bf16.msra.mxu1 %v6847_v29  ;;  %v6893_v29 = vld [vmem:[%s9547_s3 + $0x5c0] ss:$8 sps:$4 sm:$0xff]  }
 0x427   :  { %4857 = vmatprep.subr.bf16.mxu1 %v6848_v39 }
 0x428   :  { %4804 = vmatpush1.bf16.msra.mxu0 %v6849_v44  ;;  %v6894_v44 = vld [vmem:[%s9547_s3 + $0x5d4] ss:$8 sps:$4 sm:$0xff]  }
 0x429   :  { %4805 = vmatprep.subr.bf16.mxu0 %v6850_v57 }
 0x42a   :  { %4858 = vmatpush1.bf16.msra.mxu1 %v6851_v45 }
 0x42b   :  { %4859 = vmatprep.subr.bf16.mxu1 %v6852_v47  ;;  %v6895_v47 = vld [vmem:[%s9547_s3 + $0x620] ss:$8 sps:$4 sm:$0xff]  }
 0x42c   :  { %4806 = vmatpush1.bf16.msra.mxu0 %v6853_v49  ;;  %v3728_v50 = vpop.f32.mrb[68].mxu1 }
 0x42d   :  { %v3730_v51 = vpop.f32.mrb[69].mxu1  ;;  %4807 = vmatprep.subr.bf16.mxu0 %v6854_v54  ;;  %v6896_v54 = vld [vmem:[%s9547_s3 + $0x634] ss:$8 sps:$4 sm:$0xff]  }
 0x42e   :  { %4860 = vmatpush1.bf16.msra.mxu1 %v6855_v58  ;;  %v3626_v59 = vpop.f32.mrb[80].mxu0  ;;  %v3731_v60 = vpop.f32.mrb[70].mxu1 }
 0x42f   :  { %v8981_v62 = vadd.f32 %v3728_v50, %v3626_v59  ;;  %v3628_v13 = vpop.f32.mrb[81].mxu0  ;;  %v3732_v3 = vpop.f32.mrb[71].mxu1  ;;  %4861 = vmatprep.subr.bf16.mxu1 %v6856_v4  ;;  %v6897_v59 = vld [vmem:[%s9547_s3 + $0x5d0] ss:$8 sps:$4 sm:$0xff]   ;;  %v6900_v4 = vld [vmem:[%s9547_s3 + $0x694] ss:$8 sps:$4 sm:$0xff]  }
 0x430   :  { %4808 = vmatpush1.bf16.msra.mxu0 %v6857_v5  ;;  %v3629_v19 = vpop.f32.mrb[82].mxu0  ;;  %v6898_v13 = vld [vmem:[%s9547_s3 + $0x5e4] ss:$8 sps:$4 sm:$0xff]   ;;  %v6899_v3 = vld [vmem:[%s9547_s3 + $0x630] ss:$8 sps:$4 sm:$0xff]   ;;  %v5045_v5 = vpop.permute.xlu0 %5044 }
 0x431   :  { %v3630_v23 = vpop.f32.mrb[83].mxu0  ;;  %4809 = vmatprep.subr.bf16.mxu0 %v6858_v26  ;;  %v6901_v19 = vld [vmem:[%s9547_s3 + $0x5e0] ss:$8 sps:$4 sm:$0xff]   ;;  %v4997_v26 = vpop.permute.xlu1 %4996 }
 0x432   :  { %4862 = vmatpush1.bf16.msra.mxu1 %v6859_v6  ;;  %v6902_v23 = vld [vmem:[%s9547_s3 + $0x644] ss:$8 sps:$4 sm:$0xff]   ;;  %v6903_v6 = vld [vmem:[%s9547_s3 + $0x690] ss:$8 sps:$4 sm:$0xff]  }
 0x433   :  { %4953 = vmatprep.subr.bf16.mxu1 %v6860_v7  ;;  %v6904_v7 = vld [vmem:[%s9547_s3 + $0x6a4] ss:$8 sps:$4 sm:$0xff]  }
 0x434   :  { %4810 = vmatpush1.bf16.msra.mxu0 %v6861_v46  ;;  %v6905_v46 = vld [vmem:[%s9547_s3 + $0x640] ss:$8 sps:$4 sm:$0xff]  }
 0x435   :  { %6078 = vmatmul.mubr.msk.bf16.vlgmr.msra.gmra.mrb[108].mxu1 %vm824_vm2, %v7549_v61  ;;  %4905 = vmatprep.subr.bf16.mxu0 %v6862_v8  ;;  %v6865_v61 = vld [vmem:[%s9547_s3 + $0x500] ss:$8 sps:$4 sm:$0xff]   ;;  %v6906_v8 = vld [vmem:[%s9547_s3 + $0x654] ss:$8 sps:$4 sm:$0xff]  }
 0x436   :  { %4954 = vmatpush1.bf16.msra.mxu1 %v6863_v9  ;;  %4985 = vmatprep.mubr.bf16.mxu1 %v7025_v33  ;;  %v6908_v9 = vld [vmem:[%s9547_s3 + $0x6b4] ss:$8 sps:$4 sm:$0xff]  }
 0x437   :  { %6077 = vmatmul.mubr.msk.bf16.vlgmr.msra.gmra.mrb[116].mxu0 %vm824_vm2, %v4797_v32  ;;  %4955 = vmatprep.subr.bf16.mxu1 %v6864_v10  ;;  %v6907_v32 = vld [vmem:[%s9547_s3 + $0x6a0] ss:$8 sps:$4 sm:$0xff]   ;;  %v6909_v10 = vld [vmem:[%s9547_s3 + $0x650] ss:$8 sps:$4 sm:$0xff]  }
 0x438   :  { %4906 = vmatpush1.bf16.msra.mxu0 %v6865_v61  ;;  %4937 = vmatprep.mubr.bf16.mxu0 %v7025_v33  ;;  %v6910_v61 = vld [vmem:[%s9547_s3 + $0x664] ss:$8 sps:$4 sm:$0xff]  }
 0x439   :  { %4907 = vmatprep.subr.bf16.mxu0 %v6866_v11  ;;  %v6911_v11 = vld [vmem:[%s9547_s3 + $0x6b0] ss:$8 sps:$4 sm:$0xff]  }
 0x43a   :  { %4956 = vmatpush1.bf16.msra.mxu1 %v6867_v12  ;;  %v6912_v12 = vld [vmem:[%s9547_s3 + $0x6c4] ss:$8 sps:$4 sm:$0xff]  }
 0x43b   :  { %4957 = vmatprep.subr.bf16.mxu1 %v6868_v14 }
 0x43c   :  { %4908 = vmatpush1.bf16.msra.mxu0 %v6869_v16  ;;  %v6913_v16 = vld [vmem:[%s9547_s3 + $0x660] ss:$8 sps:$4 sm:$0xff]  }
 0x43d   :  { %4909 = vmatprep.subr.bf16.mxu0 %v6870_v56 }
 0x43e   :  { %4958 = vmatpush1.bf16.msra.mxu1 %v6871_v17  ;;  %v6914_v17 = vld [vmem:[%s9547_s3 + $0x674] ss:$8 sps:$4 sm:$0xff]  }
 0x43f   :  { %4959 = vmatprep.subr.bf16.mxu1 %v6872_v53 }
 0x440   :  { %4910 = vmatpush1.bf16.msra.mxu0 %v6873_v41  ;;  %v6915_v41 = vld [vmem:[%s9547_s3 + $0x6c0] ss:$8 sps:$4 sm:$0xff]  }
 0x441   :  { %4911 = vmatprep.subr.bf16.mxu0 %v6874_v63 }
 0x442   :  { %4960 = vmatpush1.bf16.msra.mxu1 %v6875_v18  ;;  %v6916_v18 = vld [vmem:[%s9547_s3 + $0x6d4] ss:$8 sps:$4 sm:$0xff]  }
 0x443   :  { %4961 = vmatprep.subr.bf16.mxu1 %v6876_v15  ;;  %v6917_v15 = vld [vmem:[%s9547_s3 + $0x670] ss:$8 sps:$4 sm:$0xff]  }
 0x444   :  { %4912 = vmatpush1.bf16.msra.mxu0 %v6877_v20  ;;  %v6918_v20 = vld [vmem:[%s9547_s3 + $0x684] ss:$8 sps:$4 sm:$0xff]  }
 0x445   :  { %4913 = vmatprep.subr.bf16.mxu0 %v6878_v38  ;;  %v6919_v38 = vld [vmem:[%s9547_s3 + $0x6d0] ss:$8 sps:$4 sm:$0xff]  }
 0x446   :  { %4962 = vmatpush1.bf16.msra.mxu1 %v6879_v21  ;;  %v6920_v21 = vld [vmem:[%s9547_s3 + $0x734] ss:$8 sps:$4 sm:$0xff]  }
 0x447   :  { %5049 = vmatprep.subr.bf16.mxu1 %v6880_v22  ;;  %v6921_v22 = vld [vmem:[%s9547_s3 + $0x680] ss:$8 sps:$4 sm:$0xff]  }
 0x448   :  { %4914 = vmatpush1.bf16.msra.mxu0 %v6881_v43  ;;  %v6923_v43 = vld [vmem:[%s9547_s3 + $0x730] ss:$8 sps:$4 sm:$0xff]  }
 0x449   :  { %6080 = vmatmul.mubr.msk.bf16.vlgmr.msra.gmra.mrb[112].mxu1 %vm824_vm2, %v4949_v24  ;;  %5001 = vmatprep.subr.bf16.mxu0 %v6882_v30  ;;  %v6922_v24 = vld [vmem:[%s9547_s3 + $0x6e4] ss:$8 sps:$4 sm:$0xff]   ;;  %v6926_v30 = vld [vmem:[%s9547_s3 + $0x6f4] ss:$8 sps:$4 sm:$0xff]  }
 0x44a   :  { %5050 = vmatpush1.bf16.msra.mxu1 %v6883_v25  ;;  %5081 = vmatprep.mubr.bf16.mxu1 %v7025_v33  ;;  %v6928_v25 = vld [vmem:[%s9547_s3 + $0x754] ss:$8 sps:$4 sm:$0xff]  }
 0x44b   :  { %6079 = vmatmul.mubr.msk.bf16.vlgmr.msra.gmra.mrb[120].mxu0 %vm824_vm2, %v7554_v0  ;;  %5051 = vmatprep.subr.bf16.mxu1 %v6884_v27  ;;  %v6887_v0 = vld [vmem:[%s9547_s3 + $0x600] ss:$8 sps:$4 sm:$0xff]   ;;  %v6929_v27 = vld [vmem:[%s9547_s3 + $0x6f0] ss:$8 sps:$4 sm:$0xff]  }
 0x44c   :  { %5002 = vmatpush1.bf16.msra.mxu0 %v6885_v48  ;;  %5033 = vmatprep.mubr.bf16.mxu0 %v7025_v33  ;;  %v6930_v48 = vld [vmem:[%s9547_s3 + $0x704] ss:$8 sps:$4 sm:$0xff]  }
 0x44d   :  { %5003 = vmatprep.subr.bf16.mxu0 %v6886_v37  ;;  %v6931_v37 = vld [vmem:[%s9547_s3 + $0x750] ss:$8 sps:$4 sm:$0xff]  }
 0x44e   :  { %5052 = vmatpush1.bf16.msra.mxu1 %v6887_v0  ;;  %v6932_v0 = vld [vmem:[%s9547_s3 + $0x764] ss:$8 sps:$4 sm:$0xff]  }
 0x44f   :  { %5053 = vmatprep.subr.bf16.mxu1 %v6888_v31 }
 0x450   :  { %5004 = vmatpush1.bf16.msra.mxu0 %v6889_v34  ;;  %v6933_v34 = vld [vmem:[%s9547_s3 + $0x700] ss:$8 sps:$4 sm:$0xff]  }
 0x451   :  { %5005 = vmatprep.subr.bf16.mxu0 %v6890_v35 }
 0x452   :  { %5054 = vmatpush1.bf16.msra.mxu1 %v6891_v36 }
 0x453   :  { %5055 = vmatprep.subr.bf16.mxu1 %v6892_v28  ;;  %v6934_v28 = vld [vmem:[%s9547_s3 + $0x714] ss:$8 sps:$4 sm:$0xff]  }
 0x454   :  { %v3983_v40 = vpop.f32.mrb[72].mxu1  ;;  %5006 = vmatpush1.bf16.msra.mxu0 %v6893_v29 }
 0x455   :  { %v3985_v39 = vpop.f32.mrb[73].mxu1  ;;  %5007 = vmatprep.subr.bf16.mxu0 %v6894_v44  ;;  %v6935_v44 = vld [vmem:[%s9547_s3 + $0x760] ss:$8 sps:$4 sm:$0xff]  }
 0x456   :  { %v3856_v57 = vpop.f32.mrb[84].mxu0  ;;  %v3986_v45 = vpop.f32.mrb[74].mxu1  ;;  %5056 = vmatpush1.bf16.msra.mxu1 %v6895_v47 }
 0x457   :  { %v3862_v49 = vadd.f32 %v3856_v57, %v8981_v62  ;;  %v3858_v50 = vpop.f32.mrb[85].mxu0  ;;  %v3987_v51 = vpop.f32.mrb[75].mxu1  ;;  %5057 = vmatprep.subr.bf16.mxu1 %v6896_v54 }
 0x458   :  { %v3859_v58 = vpop.f32.mrb[86].mxu0  ;;  %5008 = vmatpush1.bf16.msra.mxu0 %v6897_v59  ;;  %v6937_v51 = vld [vmem:[%s9547_s3 + $0x710] ss:$8 sps:$4 sm:$0xff]  }
 0x459   :  { %v3860_v60 = vpop.f32.mrb[87].mxu0  ;;  %5009 = vmatprep.subr.bf16.mxu0 %v6898_v13  ;;  %v9123_v62 = vadd.f32 %v3983_v40, %v3862_v49  ;;  %v6936_v49 = vld [vmem:[%s9547_s3 + $0x774] ss:$8 sps:$4 sm:$0xff]   ;;  %v6938_v58 = vld [vmem:[%s9547_s3 + $0x724] ss:$8 sps:$4 sm:$0xff]  }
 0x45a   :  { %5058 = vmatpush1.bf16.msra.mxu1 %v6899_v3  ;;  %v6939_v59 = vld [vmem:[%s9547_s3 + $0x770] ss:$8 sps:$4 sm:$0xff]   ;;  %v5235_v60 = vpop.permute.xlu0 %5234  ;;  %v6940_v13 = vld [vmem:[%s9547_s3 + $0x720] ss:$8 sps:$4 sm:$0xff]   ;;  %v5187_v3 = vpop.permute.xlu1 %5186 }
 0x45b   :  { %5143 = vmatprep.subr.bf16.mxu1 %v6900_v4  ;;  %v6942_v4 = vld [vmem:[%s9549_s5 + $0x50] sm:$0xff]  }
 0x45c   :  { %5010 = vmatpush1.bf16.msra.mxu0 %v6901_v19  ;;  %v6944_v19 = vld [vmem:[%s9547_s3 + $0x794] ss:$8 sps:$4 sm:$0xff]  }
 0x45d   :  { %6082 = vmatmul.mubr.msk.bf16.vlgmr.msra.gmra.mrb[116].mxu1 %vm824_vm2, %v5045_v5  ;;  %5096 = vmatprep.subr.bf16.mxu0 %v6902_v23  ;;  %v6943_v5 = vld [vmem:[%s9547_s3 + $0x780] ss:$8 sps:$4 sm:$0xff]   ;;  %v6945_v23 = vld [vmem:[%s9549_s5 + $0x58] sm:$0xff]  }
 0x45e   :  { %5144 = vmatpush1.bf16.msra.mxu1 %v6903_v6  ;;  %5175 = vmatprep.mubr.bf16.mxu1 %v7025_v33  ;;  %v6947_v6 = vld [vmem:[%s9547_s3 + $0x7a4] ss:$8 sps:$4 sm:$0xff]  }
 0x45f   :  { %6081 = vmatmul.mubr.msk.bf16.vlgmr.msra.gmra.mrb[124].mxu0 %vm824_vm2, %v4997_v26  ;;  %5145 = vmatprep.subr.bf16.mxu1 %v6904_v7  ;;  %v6946_v26 = vld [vmem:[%s9547_s3 + $0x790] ss:$8 sps:$4 sm:$0xff]   ;;  %v6948_v7 = vld [vmem:[%s9549_s5 + $0x60] sm:$0xff]  }
 0x460   :  { %5097 = vmatpush1.bf16.msra.mxu0 %v6905_v46  ;;  %5128 = vmatprep.mubr.bf16.mxu0 %v7025_v33 }
 0x461   :  { %5098 = vmatprep.subr.bf16.mxu0 %v6906_v8  ;;  %v6949_v8 = vld [vmem:[%s9547_s3 + $0x7a0] ss:$8 sps:$4 sm:$0xff]  }
 0x462   :  { %5146 = vmatpush1.bf16.msra.mxu1 %v6907_v32 }
 0x463   :  { %5147 = vmatprep.subr.bf16.mxu1 %v6908_v9  ;;  %v6950_v9 = vld [vmem:[%s9547_s3 + $0x7b4] ss:$8 sps:$4 sm:$0xff]  }
 0x464   :  { %5099 = vmatpush1.bf16.msra.mxu0 %v6909_v10 }
 0x465   :  { %5100 = vmatprep.subr.bf16.mxu0 %v6910_v61 }
 0x466   :  { %5148 = vmatpush1.bf16.msra.mxu1 %v6911_v11  ;;  %v6951_v11 = vld [vmem:[%s9549_s5 + $0x68] sm:$0xff]  }
 0x467   :  { %5149 = vmatprep.subr.bf16.mxu1 %v6912_v12 }
 0x468   :  { %v4159_v14 = vpop.f32.mrb[76].mxu1  ;;  %5101 = vmatpush1.bf16.msra.mxu0 %v6913_v16 }
 0x469   :  { %v4161_v56 = vpop.f32.mrb[77].mxu1  ;;  %5102 = vmatprep.subr.bf16.mxu0 %v6914_v17 }
 0x46a   :  { %v4163_v53 = vpop.f32.mrb[78].mxu1  ;;  %5150 = vmatpush1.bf16.msra.mxu1 %v6915_v41 }
 0x46b   :  { %v4164_v63 = vpop.f32.mrb[79].mxu1  ;;  %5151 = vmatprep.subr.bf16.mxu1 %v6916_v18  ;;  %v6952_v53 = vld [vmem:[%s9547_s3 + $0x7b0] ss:$8 sps:$4 sm:$0xff]  }
 0x46c   :  { %5103 = vmatpush1.bf16.msra.mxu0 %v6917_v15  ;;  %v6953_v63 = vld [vmem:[%s9547_s3 + $0x7c4] ss:$8 sps:$4 sm:$0xff]  }
 0x46d   :  { %5104 = vmatprep.subr.bf16.mxu0 %v6918_v20  ;;  %v6954_v20 = vld [vmem:[%s9549_s5 + $0x70] sm:$0xff]  }
 0x46e   :  { %5152 = vmatpush1.bf16.msra.mxu1 %v6919_v38  ;;  %v6955_v38 = vld [vmem:[%s9547_s3 + $0x7c0] ss:$8 sps:$4 sm:$0xff]  }
 0x46f   :  { %5239 = vmatprep.subr.bf16.mxu1 %v6920_v21  ;;  %v5283_v21 = vpop.permute.xlu1 %5282 }
 0x470   :  { %5105 = vmatpush1.bf16.msra.mxu0 %v6921_v22  ;;  %v6956_v22 = vld [vmem:[%s9549_s5 + $0x78] sm:$0xff]  }
 0x471   :  { %6084 = vmatmul.mubr.msk.bf16.vlgmr.msra.gmra.mrb[120].mxu1 %vm824_vm2, %v5139_v2  ;;  %5191 = vmatprep.subr.bf16.mxu0 %v6922_v24  ;;  %v6925_v2 = vld [vmem:[%s9547_s3 + $0x6e0] ss:$8 sps:$4 sm:$0xff]  }
 0x472   :  { %5240 = vmatpush1.bf16.msra.mxu1 %v6923_v43  ;;  %5271 = vmatprep.mubr.bf16.mxu1 %v7025_v33  ;;  %v6957_v24 = vld [vmem:[%s9549_s5] sm:$0xff]  }
 0x473   :  { %6083 = vmatmul.mubr.msk.bf16.vlgmr.msra.gmra.mrb[128].mxu0 %vm824_vm2, %v7561_v1  ;;  %5241 = vmatprep.subr.bf16.mxu1 %v6924_v42  ;;  %v6927_v1 = vld [vmem:[%s9547_s3 + $0x740] ss:$8 sps:$4 sm:$0xff]  }
 0x474   :  { %5192 = vmatpush1.bf16.msra.mxu0 %v6925_v2  ;;  %5223 = vmatprep.mubr.bf16.mxu0 %v7025_v33  ;;  %v6958_v43 = vld [vmem:[%s9549_s5 + $0x80] sm:$0xff]   ;;  %v6959_v42 = vld [vmem:[%s9549_s5 + $0x8] sm:$0xff]  }
 0x475   :  { %5193 = vmatprep.subr.bf16.mxu0 %v6926_v30  ;;  %v6960_v2 = vld [vmem:[%s9549_s5 + $0x88] sm:$0xff]  }
 0x476   :  { %5242 = vmatpush1.bf16.msra.mxu1 %v6927_v1  ;;  %v6961_v1 = vld [vmem:[%s9549_s5 + $0x10] sm:$0xff]  }
 0x477   :  { %5243 = vmatprep.subr.bf16.mxu1 %v6928_v25 }
 0x478   :  { %5194 = vmatpush1.bf16.msra.mxu0 %v6929_v27 }
 0x479   :  { %5195 = vmatprep.subr.bf16.mxu0 %v6930_v48 }
 0x47a   :  { %5244 = vmatpush1.bf16.msra.mxu1 %v6931_v37  ;;  %v6962_v37 = vld [vmem:[%s9549_s5 + $0x90] sm:$0xff]  }
 0x47b   :  { %5245 = vmatprep.subr.bf16.mxu1 %v6932_v0 }
 0x47c   :  { %v4203_v31 = vpop.f32.mrb[80].mxu1  ;;  %5196 = vmatpush1.bf16.msra.mxu0 %v6933_v34 }
 0x47d   :  { %v4204_v35 = vadd.f32 %v4203_v31, %v4159_v14  ;;  %v4205_v36 = vpop.f32.mrb[81].mxu1  ;;  %5197 = vmatprep.subr.bf16.mxu0 %v6934_v28  ;;  %v6963_v28 = vld [vmem:[%s9549_s5 + $0x18] sm:$0xff]  }
 0x47e   :  { %v4206_v40 = vadd.f32 %v4205_v36, %v4161_v56  ;;  %v4110_v29 = vpop.f32.mrb[88].mxu0  ;;  %v4207_v39 = vpop.f32.mrb[82].mxu1  ;;  %5246 = vmatpush1.bf16.msra.mxu1 %v6935_v44  ;;  %v6964_v44 = vld [vmem:[%s9549_s5 + $0x98] sm:$0xff]  }
 0x47f   :  { %v9248_v57 = vadd.f32 %v4110_v29, %v9123_v62  ;;  %v4112_v45 = vpop.f32.mrb[89].mxu0  ;;  %v4208_v47 = vpop.f32.mrb[83].mxu1  ;;  %5247 = vmatprep.subr.bf16.mxu1 %v6936_v49  ;;  %v6941_v62 = vld [vmem:[%s9547_s3 + $0x784] ss:$8 sps:$4 sm:$0xff]   ;;  %v6967_v49 = vld [vmem:[%s9549_s5 + $0x30] sm:$0xff]  }
 0x480   :  { %v4113_v50 = vpop.f32.mrb[90].mxu0  ;;  %5198 = vmatpush1.bf16.msra.mxu0 %v6937_v51  ;;  %v6965_v45 = vld [vmem:[%s9549_s5 + $0x20] sm:$0xff]   ;;  %v6966_v47 = vld [vmem:[%s9549_s5 + $0x28] sm:$0xff]   ;;  %v6968_v51 = vld [vmem:[%s9549_s5 + $0x38] sm:$0xff]  }
 0x481   :  { %v4114_v54 = vpop.f32.mrb[91].mxu0  ;;  %5199 = vmatprep.subr.bf16.mxu0 %v6938_v58 }
 0x482   :  { %5248 = vmatpush1.bf16.msra.mxu1 %v6939_v59 }
 0x483   :  { %5346 = vmatprep.subr.bf16.mxu1 %v7025_v33 }
 0x484   :  { %5200 = vmatpush1.bf16.msra.mxu0 %v6940_v13 }
 0x485   :  { %6086 = vmatmul.mubr.msk.bf16.vlgmr.msra.gmra.mrb[124].mxu1 %vm824_vm2, %v5235_v60  ;;  %5287 = vmatprep.subr.bf16.mxu0 %v6941_v62 }
 0x486   :  { %5347 = vmatpush1.bf16.msra.mxu1 %v6942_v4 }
 0x487   :  { %6085 = vmatmul.mubr.msk.bf16.vlgmr.msra.gmra.mrb[132].mxu0 %vm824_vm2, %v5187_v3  ;;  %5348 = vmatprep.subr.bf16.mxu1 %v7025_v33 }
 0x488   :  { %5288 = vmatpush1.bf16.msra.mxu0 %v6943_v5  ;;  %5319 = vmatprep.mubr.bf16.mxu0 %v7025_v33  ;;  %v6969_v5 = vld [vmem:[%s9549_s5 + $0x40] sm:$0xff]  }
 0x489   :  { %5289 = vmatprep.subr.bf16.mxu0 %v6944_v19 }
 0x48a   :  { %5349 = vmatpush1.bf16.msra.mxu1 %v6945_v23 }
 0x48b   :  { %5350 = vmatprep.subr.bf16.mxu1 %v7025_v33 }
 0x48c   :  { %5290 = vmatpush1.bf16.msra.mxu0 %v6946_v26 }
 0x48d   :  { %5291 = vmatprep.subr.bf16.mxu0 %v6947_v6  ;;  %v6970_v6 = vld [vmem:[%s9549_s5 + $0x48] sm:$0xff]  }
 0x48e   :  { %5351 = vmatpush1.bf16.msra.mxu1 %v6948_v7 }
 0x48f   :  { %5352 = vmatprep.subr.bf16.mxu1 %v7025_v33 }
 0x490   :  { %v4299_v46 = vpop.f32.mrb[84].mxu1  ;;  %5292 = vmatpush1.bf16.msra.mxu0 %v6949_v8 }
 0x491   :  { %v4301_v32 = vpop.f32.mrb[85].mxu1  ;;  %5293 = vmatprep.subr.bf16.mxu0 %v6950_v9 }
 0x492   :  { %v4250_v10 = vpop.f32.mrb[92].mxu0  ;;  %v4303_v61 = vpop.f32.mrb[86].mxu1  ;;  %5353 = vmatpush1.bf16.msra.mxu1 %v6951_v11 }
 0x493   :  { %v4257_v12 = vadd.f32 %v4250_v10, %v4204_v35  ;;  %v4252_v14 = vpop.f32.mrb[93].mxu0  ;;  %v4304_v16 = vpop.f32.mrb[87].mxu1  ;;  %5354 = vmatprep.subr.bf16.mxu1 %v7025_v33 }
 0x494   :  { %v4258_v56 = vadd.f32 %v4252_v14, %v4206_v40  ;;  %v4254_v17 = vpop.f32.mrb[94].mxu0  ;;  %5294 = vmatpush1.bf16.msra.mxu0 %v6952_v53 }
 0x495   :  { %v4255_v41 = vpop.f32.mrb[95].mxu0  ;;  %5295 = vmatprep.subr.bf16.mxu0 %v6953_v63  ;;  %v4306_v18 = vadd.f32 %v4299_v46, %v4257_v12 }
 0x496   :  { %v4307_v15 = vadd.f32 %v4301_v32, %v4258_v56  ;;  %5355 = vmatpush1.bf16.msra.mxu1 %v6954_v20 }
 0x497   :  { %5356 = vmatprep.subr.bf16.mxu1 %v7025_v33 }
 0x498   :  { %5296 = vmatpush1.bf16.msra.mxu0 %v6955_v38 }
 0x499   :  { %5388 = vmatprep.subr.bf16.mxu0 %v7025_v33 }
 0x49a   :  { %5357 = vmatpush1.bf16.msra.mxu1 %v6956_v22 }
 0x49b   :  { %6087 = vmatmul.mubr.msk.bf16.vlgmr.msra.gmra.mrb[136].mxu0 %vm824_vm2, %v5283_v21  ;;  %5358 = vmatprep.subr.bf16.mxu1 %v7025_v33 }
 0x49c   :  { %5389 = vmatpush1.bf16.msra.mxu0 %v6957_v24 }
 0x49d   :  { %5390 = vmatprep.subr.bf16.mxu0 %v7025_v33 }
 0x49e   :  { %5359 = vmatpush1.bf16.msra.mxu1 %v6958_v43 }
 0x49f   :  { %5360 = vmatprep.subr.bf16.mxu1 %v7025_v33 }
 0x4a0   :  { %5391 = vmatpush1.bf16.msra.mxu0 %v6959_v42 }
 0x4a1   :  { %5392 = vmatprep.subr.bf16.mxu0 %v7025_v33 }
 0x4a2   :  { %5361 = vmatpush1.bf16.msra.mxu1 %v6960_v2 }
 0x4a3   :  { %5362 = vmatprep.subr.bf16.mxu1 %v7025_v33 }
 0x4a4   :  { %v4394_v30 = vpop.f32.mrb[88].mxu1  ;;  %5393 = vmatpush1.bf16.msra.mxu0 %v6961_v1 }
 0x4a5   :  { %v4396_v25 = vpop.f32.mrb[89].mxu1  ;;  %5394 = vmatprep.subr.bf16.mxu0 %v7025_v33 }
 0x4a6   :  { %v4347_v27 = vpop.f32.mrb[96].mxu0  ;;  %v4398_v48 = vpop.f32.mrb[90].mxu1  ;;  %5363 = vmatpush1.bf16.msra.mxu1 %v6962_v37 }
 0x4a7   :  { %v4354_v0 = vadd.f32 %v4347_v27, %v4306_v18  ;;  %v4349_v31 = vpop.f32.mrb[97].mxu0  ;;  %v4399_v34 = vpop.f32.mrb[91].mxu1  ;;  %5364 = vmatprep.subr.bf16.mxu1 %v7025_v33 }
 0x4a8   :  { %v4355_v35 = vadd.f32 %v4349_v31, %v4307_v15  ;;  %v4351_v36 = vpop.f32.mrb[98].mxu0  ;;  %5395 = vmatpush1.bf16.msra.mxu0 %v6963_v28 }
 0x4a9   :  { %v4352_v40 = vpop.f32.mrb[99].mxu0  ;;  %v4401_v29 = vadd.f32 %v4394_v30, %v4354_v0  ;;  %5396 = vmatprep.subr.bf16.mxu0 %v7025_v33 }
 0x4aa   :  { %v4402_v39 = vadd.f32 %v4396_v25, %v4355_v35  ;;  %5365 = vmatpush1.bf16.msra.mxu1 %v6964_v44 }
 0x4ab   :  { %5436 = vmatprep.subr.bf16.mxu1 %v7025_v33 }
 0x4ac   :  { %5397 = vmatpush1.bf16.msra.mxu0 %v6965_v45 }
 0x4ad   :  { %5398 = vmatprep.subr.bf16.mxu0 %v7025_v33 }
 0x4b0   :  { %5399 = vmatpush1.bf16.msra.mxu0 %v6966_v47 }
 0x4b1   :  { %5400 = vmatprep.subr.bf16.mxu0 %v7025_v33 }
 0x4b4   :  { %5401 = vmatpush1.bf16.msra.mxu0 %v6967_v49 }
 0x4b5   :  { %5402 = vmatprep.subr.bf16.mxu0 %v7025_v33 }
 0x4b8   :  { %v4490_v50 = vpop.f32.mrb[92].mxu1  ;;  %5403 = vmatpush1.bf16.msra.mxu0 %v6968_v51 }
 0x4b9   :  { %v4492_v54 = vpop.f32.mrb[93].mxu1  ;;  %5404 = vmatprep.subr.bf16.mxu0 %v7025_v33 }
 0x4ba   :  { %v4441_v58 = vpop.f32.mrb[100].mxu0  ;;  %v4494_v59 = vpop.f32.mrb[94].mxu1 }
 0x4bb   :  { %v4448_v60 = vadd.f32 %v4441_v58, %v4401_v29  ;;  %v4443_v13 = vpop.f32.mrb[101].mxu0  ;;  %v4495_v62 = vpop.f32.mrb[95].mxu1 }
 0x4bc   :  { %v4449_v3 = vadd.f32 %v4443_v13, %v4402_v39  ;;  %v4445_v4 = vpop.f32.mrb[102].mxu0  ;;  %5405 = vmatpush1.bf16.msra.mxu0 %v6969_v5 }
 0x4bd   :  { %v4446_v19 = vpop.f32.mrb[103].mxu0  ;;  %v4497_v23 = vadd.f32 %v4490_v50, %v4448_v60  ;;  %5406 = vmatprep.subr.bf16.mxu0 %v7025_v33 }
 0x4be   :  { %v4498_v26 = vadd.f32 %v4492_v54, %v4449_v3 }
 0x4c0   :  { %5407 = vmatpush1.bf16.msra.mxu0 %v6970_v6 }
 0x4c1   :  { %5483 = vmatprep.subr.bf16.mxu0 %v7025_v33 }
 0x4cc   :  { %v4587_v7 = vpop.f32.mrb[96].mxu1 }
 0x4cd   :  { %v4589_v46 = vpop.f32.mrb[97].mxu1 }
 0x4ce   :  { %v4539_v8 = vpop.f32.mrb[104].mxu0  ;;  %v4591_v32 = vpop.f32.mrb[98].mxu1 }
 0x4cf   :  { %v4546_v9 = vadd.f32 %v4539_v8, %v4497_v23  ;;  %v4541_v10 = vpop.f32.mrb[105].mxu0  ;;  %v4592_v61 = vpop.f32.mrb[99].mxu1 }
 0x4d0   :  { %v4547_v11 = vadd.f32 %v4541_v10, %v4498_v26  ;;  %v4543_v12 = vpop.f32.mrb[106].mxu0 }
 0x4d1   :  { %v4544_v14 = vpop.f32.mrb[107].mxu0  ;;  %v4594_v16 = vadd.f32 %v4587_v7, %v4546_v9 }
 0x4d2   :  { %v4595_v56 = vadd.f32 %v4589_v46, %v4547_v11 }
 0x4e0   :  { %v4691_v17 = vpop.f32.mrb[100].mxu1 }
 0x4e1   :  { %v4693_v53 = vpop.f32.mrb[101].mxu1 }
 0x4e2   :  { %v4639_v41 = vpop.f32.mrb[108].mxu0  ;;  %v4695_v63 = vpop.f32.mrb[102].mxu1 }
 0x4e3   :  { %v4646_v18 = vadd.f32 %v4639_v41, %v4594_v16  ;;  %v4641_v15 = vpop.f32.mrb[109].mxu0  ;;  %v4696_v20 = vpop.f32.mrb[103].mxu1 }
 0x4e4   :  { %v4647_v38 = vadd.f32 %v4641_v15, %v4595_v56  ;;  %v4643_v21 = vpop.f32.mrb[110].mxu0 }
 0x4e5   :  { %v4644_v22 = vpop.f32.mrb[111].mxu0  ;;  %v4698_v24 = vadd.f32 %v4691_v17, %v4646_v18 }
 0x4e6   :  { %v4699_v43 = vadd.f32 %v4693_v53, %v4647_v38 }
 0x4f4   :  { %v4787_v42 = vpop.f32.mrb[104].mxu1 }
 0x4f5   :  { %v4789_v2 = vpop.f32.mrb[105].mxu1 }
 0x4f6   :  { %v4739_v30 = vpop.f32.mrb[112].mxu0  ;;  %v4791_v1 = vpop.f32.mrb[106].mxu1 }
 0x4f7   :  { %v4746_v25 = vadd.f32 %v4739_v30, %v4698_v24  ;;  %v4741_v27 = vpop.f32.mrb[113].mxu0  ;;  %v4792_v48 = vpop.f32.mrb[107].mxu1 }
 0x4f8   :  { %v4747_v37 = vadd.f32 %v4741_v27, %v4699_v43  ;;  %v4743_v0 = vpop.f32.mrb[114].mxu0 }
 0x4f9   :  { %v4744_v31 = vpop.f32.mrb[115].mxu0  ;;  %v4794_v34 = vadd.f32 %v4787_v42, %v4746_v25 }
 0x4fa   :  { %v4795_v35 = vadd.f32 %v4789_v2, %v4747_v37 }
 0x508   :  { %v4887_v36 = vpop.f32.mrb[108].mxu1 }
 0x509   :  { %v4889_v28 = vpop.f32.mrb[109].mxu1 }
 0x50a   :  { %v4835_v40 = vpop.f32.mrb[116].mxu0  ;;  %v4891_v29 = vpop.f32.mrb[110].mxu1 }
 0x50b   :  { %v4842_v39 = vadd.f32 %v4835_v40, %v4794_v34  ;;  %v4837_v44 = vpop.f32.mrb[117].mxu0  ;;  %v4892_v45 = vpop.f32.mrb[111].mxu1 }
 0x50c   :  { %v4843_v47 = vadd.f32 %v4837_v44, %v4795_v35  ;;  %v4839_v49 = vpop.f32.mrb[118].mxu0 }
 0x50d   :  { %v4840_v50 = vpop.f32.mrb[119].mxu0  ;;  %v4894_v51 = vadd.f32 %v4887_v36, %v4842_v39 }
 0x50e   :  { %v4895_v54 = vadd.f32 %v4889_v28, %v4843_v47 }
 0x51c   :  { %v4987_v58 = vpop.f32.mrb[112].mxu1 }
 0x51d   :  { %v4989_v59 = vpop.f32.mrb[113].mxu1 }
 0x51e   :  { %v4939_v60 = vpop.f32.mrb[120].mxu0  ;;  %v4991_v13 = vpop.f32.mrb[114].mxu1 }
 0x51f   :  { %v4946_v62 = vadd.f32 %v4939_v60, %v4894_v51  ;;  %v4941_v3 = vpop.f32.mrb[121].mxu0  ;;  %v4992_v4 = vpop.f32.mrb[115].mxu1  ;;  %v6972_v13 = vld [vmem:[%s9549_s5 + $0xa0] sm:$0xff]  }
 0x520   :  { %v4947_v5 = vadd.f32 %v4941_v3, %v4895_v54  ;;  %v4943_v19 = vpop.f32.mrb[122].mxu0  ;;  %v6974_v3 = vld [vmem:[%s9549_s5 + $0xa8] sm:$0xff]   ;;  %v6975_v4 = vld [vmem:[%s9549_s5 + $0x100] sm:$0xff]  }
 0x521   :  { %v4944_v23 = vpop.f32.mrb[123].mxu0  ;;  %v4994_v26 = vadd.f32 %v4987_v58, %v4946_v62  ;;  %v6973_v62 = vld [vmem:[%s9549_s5 + $0xf8] sm:$0xff]   ;;  %v6977_v19 = vld [vmem:[%s9549_s5 + $0x108] sm:$0xff]  }
 0x522   :  { %v4995_v6 = vadd.f32 %v4989_v59, %v4947_v5  ;;  %v6976_v5 = vld [vmem:[%s9549_s5 + $0xb0] sm:$0xff]   ;;  %v6978_v23 = vld [vmem:[%s9549_s5 + $0xb8] sm:$0xff]  }
 0x530   :  { %v5083_v7 = vpop.f32.mrb[116].mxu1 }
 0x531   :  { %v5085_v46 = vpop.f32.mrb[117].mxu1 }
 0x532   :  { %v5035_v8 = vpop.f32.mrb[124].mxu0  ;;  %v5087_v32 = vpop.f32.mrb[118].mxu1 }
 0x533   :  { %v5042_v9 = vadd.f32 %v5035_v8, %v4994_v26  ;;  %v5037_v10 = vpop.f32.mrb[125].mxu0  ;;  %v5088_v61 = vpop.f32.mrb[119].mxu1  ;;  %v6979_v26 = vld [vmem:[%s9549_s5 + $0x110] sm:$0xff]   ;;  %v6983_v8 = vld [vmem:[%s9549_s5 + $0x120] sm:$0xff]  }
 0x534   :  { %v5043_v11 = vadd.f32 %v5037_v10, %v4995_v6  ;;  %v5039_v12 = vpop.f32.mrb[126].mxu0  ;;  %v6980_v6 = vld [vmem:[%s9549_s5 + $0xc0] sm:$0xff]   ;;  %v6984_v32 = vld [vmem:[%s9549_s5 + $0xd0] sm:$0xff]   ;;  %v6986_v10 = vld [vmem:[%s9549_s5 + $0xd8] sm:$0xff]  }
 0x535   :  { %v5040_v14 = vpop.f32.mrb[127].mxu0  ;;  %v5090_v16 = vadd.f32 %v5083_v7, %v5042_v9  ;;  %v6981_v7 = vld [vmem:[%s9549_s5 + $0x118] sm:$0xff]   ;;  %v6985_v9 = vld [vmem:[%s9549_s5 + $0x128] sm:$0xff]   ;;  %v6987_v61 = vld [vmem:[%s9549_s5 + $0x130] sm:$0xff]  }
 0x536   :  { %v5091_v56 = vadd.f32 %v5085_v46, %v5043_v11  ;;  %v6982_v46 = vld [vmem:[%s9549_s5 + $0xc8] sm:$0xff]   ;;  %v6988_v11 = vld [vmem:[%s9549_s5 + $0xe0] sm:$0xff]   ;;  %v6989_v12 = vld [vmem:[%s9549_s5 + $0x138] sm:$0xff]  }
 0x544   :  { %v5177_v17 = vpop.f32.mrb[120].mxu1 }
 0x545   :  { %v5179_v53 = vpop.f32.mrb[121].mxu1 }
 0x546   :  { %v5130_v41 = vpop.f32.mrb[128].mxu0  ;;  %v5181_v63 = vpop.f32.mrb[122].mxu1 }
 0x547   :  { %v5137_v18 = vadd.f32 %v5130_v41, %v5090_v16  ;;  %v5132_v15 = vpop.f32.mrb[129].mxu0  ;;  %v5182_v20 = vpop.f32.mrb[123].mxu1  ;;  %v6990_v16 = vld [vmem:[%s9549_s5 + $0xe8] sm:$0xff]   ;;  %v6993_v63 = vld [vmem:[%s9549_s5 + $0x150] sm:$0xff]  }
 0x548   :  { %v5138_v38 = vadd.f32 %v5132_v15, %v5091_v56  ;;  %v5134_v21 = vpop.f32.mrb[130].mxu0  ;;  %v6992_v41 = vld [vmem:[%s9549_s5 + $0x148] sm:$0xff]   ;;  %v6995_v15 = vld [vmem:[%s9549_s5 + $0x160] sm:$0xff]  }
 0x549   :  { %v5135_v22 = vpop.f32.mrb[131].mxu0  ;;  %v5184_v24 = vadd.f32 %v5177_v17, %v5137_v18  ;;  %v6994_v18 = vld [vmem:[%s9549_s5 + $0x158] sm:$0xff]   ;;  %v6996_v20 = vld [vmem:[%s9549_s5 + $0x168] sm:$0xff]  }
 0x54a   :  { %v5185_v43 = vadd.f32 %v5179_v53, %v5138_v38  ;;  %v6991_v53 = vld [vmem:[%s9549_s5 + $0x140] sm:$0xff]   ;;  %v6997_v38 = vld [vmem:[%s9549_s5 + $0x170] sm:$0xff]   ;;  %v6998_v21 = vld [vmem:[%s9549_s5 + $0x178] sm:$0xff]  }
 0x54b   :  { %v6999_v22 = vld [vmem:[%s9549_s5 + $0x180] sm:$0xff]  }
 0x558   :  { %v5273_v42 = vpop.f32.mrb[124].mxu1 }
 0x559   :  { %v5275_v2 = vpop.f32.mrb[125].mxu1 }
 0x55a   :  { %v5225_v30 = vpop.f32.mrb[132].mxu0  ;;  %v5277_v1 = vpop.f32.mrb[126].mxu1 }
 0x55b   :  { %v5232_v25 = vadd.f32 %v5225_v30, %v5184_v24  ;;  %v5227_v27 = vpop.f32.mrb[133].mxu0  ;;  %v5278_v48 = vpop.f32.mrb[127].mxu1  ;;  %v7000_v24 = vld [vmem:[%s9549_s5 + $0x188] sm:$0xff]  }
 0x55c   :  { %v5233_v37 = vadd.f32 %v5227_v27, %v5185_v43  ;;  %v5229_v0 = vpop.f32.mrb[134].mxu0 }
 0x55d   :  { %v5230_v31 = vpop.f32.mrb[135].mxu0  ;;  %v5280_v34 = vadd.f32 %v5273_v42, %v5232_v25  ;;  %v6699_v42 = vld [vmem:[%s9551_s7] sm:$0xff]  }
 0x55e   :  { %v5281_v35 = vadd.f32 %v5275_v2, %v5233_v37  ;;  %v7028_v2 = vmov 0.0  }
 0x56e   :  { %v5321_v36 = vpop.f32.mrb[136].mxu0 }
 0x56f   :  { %v5328_v28 = vadd.f32 %v5321_v36, %v5280_v34  ;;  %v5323_v40 = vpop.f32.mrb[137].mxu0 }
 0x570   :  { %v5329_v29 = vadd.f32 %v5323_v40, %v5281_v35  ;;  %v5325_v39 = vpop.f32.mrb[138].mxu0 }
 0x571   :  { %v5330_v44 = vadd.f32 %v5328_v28, %v8339_v52  ;;  %v5326_v45 = vpop.f32.mrb[139].mxu0  ;;  %v6971_v52 = vld [vmem:[%s9549_s5 + $0xf0] sm:$0xff]  }
 0x572   :  { %v5331_v47 = vadd.f32 %v5329_v29, %v8341_v55 }
 0x573   :  { %v5332_v49 = vmax.f32 %v5330_v44, 0.0 }
 0x574   :  { %v5333_v50 = vmax.f32 %v5331_v47, 0.0 }
 0x575   :  { %v9383_v51 = vpack.c.bf16 %v5332_v49, %v5332_v49 }
 0x576   :  { %v9385_v54 = vpack.c.bf16 %v5333_v50, %v5333_v50  ;;  %v4117_v50 = vld [vmem:[%s9550_s6] sm:$0x1]  ;;  %s7030_s6 = smov [#allocation2]  }
 0x577   :  { %v5337_v59 = vshrl.u32 %v9383_v51, 16  ;;  %v5430_v56 = vrot.slane %v9383_v51, 1  ;;  %v5524_v43 = vrot.slane %v9383_v51, 2  ;;  %s5652_s0 = sshll.u32 %s7030_s6, 4  ;;  %s5653_s0 = int_to_ptr.vmem [resolvable:$true] %s5652_s0 }
 0x578   :  { %6089 = vmatprep.mubr.msk.bf16.mxu0 %vm3588_vm3, %v9385_v54  ;;  %v5340_v58 = vshrl.u32 %v9385_v54, 16  ;;  %v5431_v55 = vrot.slane %v9385_v54, 1  ;;  %v5525_v17 = vrot.slane %v9385_v54, 2  ;;  %s7001_s26 = scalar_lea.vmem %s5653_s0, 32  ;;  %p7006_p1 = scmp.lt.s32.totalorder %s5653_s0, %s5653_s0 }
 0x579   :  { %5421 = vmatmul.mubr.bf16.vlgmr.msra.gmra.mrb[140].mxu0 %v9383_v51  ;;  %v5477_v14 = vrot.slane %v5337_v59, 1  ;;  %p7002_p0 = scmp.ne.s32.totalorder %s5653_s0, %s7001_s26  ;;  %p7007_p2 = scmp.lt.s32.totalorder %s7001_s26, %s7001_s26 }
 0x57a   :  { %5484 = vmatpush1.bf16.msra.mxu0 %v6971_v52  ;;  %6088 = vmatprep.mubr.msk.bf16.mxu1 %vm3588_vm3, %v5340_v58  ;;  %v5478_v60 = vrot.slane %v5340_v58, 1  ;;  %v4118_v52 = vadd.f32 %v4117_v50, %v9248_v57 }
 0x57b   :  { %5379 = vmatmul.mubr.bf16.vlgmr.msra.gmra.mrb[128].mxu1 %v5337_v59  ;;  %5485 = vmatprep.subr.bf16.mxu0 %v7025_v33  ;;  %p7008_p3 = por %p7007_p2, %p7006_p1 }
 0x57c   :  { %5437 = vmatpush1.bf16.msra.mxu1 %v6972_v13  ;;  %6090 = vmatprep.mubr.msk.bf16.mxu1 %vm3588_vm3, %v5431_v55 }
 0x57d   :  { %6091 = vmatprep.mubr.msk.bf16.mxu0 %vm3588_vm3, %v5478_v60  ;;  %5438 = vmatprep.subr.bf16.mxu1 %v7025_v33  ;;  %p7009_p4 = pnand %p7008_p3, %p7002_p0 }
 0x57e   :  { %5486 = vmatpush1.bf16.msra.mxu0 %v6973_v62  ;;  %v4119_v62 = vmax.f32 %v4118_v52, 0.0 }
 0x57f   :  { %5487 = vmatprep.subr.bf16.mxu0 %v7025_v33 }
 0x580   :  { %5439 = vmatpush1.bf16.msra.mxu1 %v6974_v3 }
 0x581   :  { %5440 = vmatprep.subr.bf16.mxu1 %v7025_v33 }
 0x582   :  { %5488 = vmatpush1.bf16.msra.mxu0 %v6975_v4 }
 0x583   :  { %5489 = vmatprep.subr.bf16.mxu0 %v7025_v33 }
 0x584   :  { %5441 = vmatpush1.bf16.msra.mxu1 %v6976_v5 }
 0x585   :  { %5442 = vmatprep.subr.bf16.mxu1 %v7025_v33 }
 0x586   :  { %5490 = vmatpush1.bf16.msra.mxu0 %v6977_v19  ;;  %v6093_v19 = vld [vmem:[%s9552_s8] ss:$0 sm:$0xff] }
 0x587   :  { %5491 = vmatprep.subr.bf16.mxu0 %v7025_v33 }
 0x588   :  { %5443 = vmatpush1.bf16.msra.mxu1 %v6978_v23 }
 0x589   :  { %5444 = vmatprep.subr.bf16.mxu1 %v7025_v33 }
 0x58a   :  { %5492 = vmatpush1.bf16.msra.mxu0 %v6979_v26 }
 0x58b   :  { %5493 = vmatprep.subr.bf16.mxu0 %v7025_v33 }
 0x58c   :  { %5445 = vmatpush1.bf16.msra.mxu1 %v6980_v6 }
 0x58d   :  { %5446 = vmatprep.subr.bf16.mxu1 %v7025_v33 }
 0x58e   :  { %5494 = vmatpush1.bf16.msra.mxu0 %v6981_v7 }
 0x58f   :  { %5495 = vmatprep.subr.bf16.mxu0 %v7025_v33 }
 0x590   :  { %5447 = vmatpush1.bf16.msra.mxu1 %v6982_v46 }
 0x591   :  { %5448 = vmatprep.subr.bf16.mxu1 %v7025_v33 }
 0x592   :  { %5496 = vmatpush1.bf16.msra.mxu0 %v6983_v8 }
 0x593   :  { %5497 = vmatprep.subr.bf16.mxu0 %v7025_v33 }
 0x594   :  { %5449 = vmatpush1.bf16.msra.mxu1 %v6984_v32 }
 0x595   :  { %5450 = vmatprep.subr.bf16.mxu1 %v7025_v33 }
 0x596   :  { %5498 = vmatpush1.bf16.msra.mxu0 %v6985_v9 }
 0x597   :  { %5499 = vmatprep.subr.bf16.mxu0 %v7025_v33 }
 0x598   :  { %5451 = vmatpush1.bf16.msra.mxu1 %v6986_v10 }
 0x599   :  { %5452 = vmatprep.subr.bf16.mxu1 %v7025_v33 }
 0x59a   :  { %5500 = vmatpush1.bf16.msra.mxu0 %v6987_v61 }
 0x59b   :  { %5501 = vmatprep.subr.bf16.mxu0 %v7025_v33 }
 0x59c   :  { %5453 = vmatpush1.bf16.msra.mxu1 %v6988_v11 }
 0x59d   :  { %5454 = vmatprep.subr.bf16.mxu1 %v7025_v33 }
 0x59e   :  { %5502 = vmatpush1.bf16.msra.mxu0 %v6989_v12 }
 0x5a0   :  { %5455 = vmatpush1.bf16.msra.mxu1 %v6990_v16 }
 0x5a1   :  { %5516 = vmatmul.mubr.bf16.vlgmr.msra.gmra.mrb[144].mxu0 %v5477_v14  ;;  %5530 = vmatprep.subr.bf16.mxu1 %v7025_v33 }
 0x5a3   :  { %5469 = vmatmul.mubr.bf16.vlgmr.msra.gmra.mrb[132].mxu1 %v5430_v56 }
 0x5a4   :  { %5531 = vmatpush1.bf16.msra.mxu1 %v6991_v53  ;;  %6092 = vmatprep.mubr.msk.bf16.mxu1 %vm3588_vm3, %v5525_v17 }
 0x5a5   :  { %5532 = vmatprep.subr.bf16.mxu1 %v7025_v33 }
 0x5a8   :  { %5533 = vmatpush1.bf16.msra.mxu1 %v6992_v41 }
 0x5a9   :  { %5534 = vmatprep.subr.bf16.mxu1 %v7025_v33 }
 0x5ac   :  { %5535 = vmatpush1.bf16.msra.mxu1 %v6993_v63 }
 0x5ad   :  { %5536 = vmatprep.subr.bf16.mxu1 %v7025_v33 }
 0x5b0   :  { %5537 = vmatpush1.bf16.msra.mxu1 %v6994_v18 }
 0x5b1   :  { %5538 = vmatprep.subr.bf16.mxu1 %v7025_v33 }
 0x5b4   :  { %5539 = vmatpush1.bf16.msra.mxu1 %v6995_v15 }
 0x5b5   :  { %5540 = vmatprep.subr.bf16.mxu1 %v7025_v33 }
 0x5b8   :  { %5541 = vmatpush1.bf16.msra.mxu1 %v6996_v20 }
 0x5b9   :  { %5542 = vmatprep.subr.bf16.mxu1 %v7025_v33 }
 0x5bc   :  { %5543 = vmatpush1.bf16.msra.mxu1 %v6997_v38 }
 0x5bd   :  { %5544 = vmatprep.subr.bf16.mxu1 %v7025_v33 }
 0x5c0   :  { %5545 = vmatpush1.bf16.msra.mxu1 %v6998_v21 }
 0x5c1   :  { %5546 = vmatprep.subr.bf16.mxu1 %v7025_v33 }
 0x5c4   :  { %5547 = vmatpush1.bf16.msra.mxu1 %v6999_v22 }
 0x5c5   :  { %5548 = vmatprep.subr.bf16.mxu1 %v7025_v33  ;;  %v6700_v33 = vld [vmem:[%s9551_s7 + $0x8] sm:$0xff]  }
 0x5c8   :  { %5549 = vmatpush1.bf16.msra.mxu1 %v7000_v24 }
 0x5c9   :  { %6180 = vmatprep.subr.bf16.mxu1 %v7028_v2 }
 0x5cb   :  { %5563 = vmatmul.mubr.bf16.vlgmr.msra.gmra.mrb[136].mxu1 %v5524_v43 }
 0x5cc   :  { %6181 = vmatpush3.bf16.msra.mxu1 %v6699_v42  ;;  %6184 = vmatprep.mubr.msk.bf16.mxu1 %vm7029_vm4, %v7028_v2 }
 0x5cd   :  { %6182 = vmatprep.subr.bf16.mxu1 %v7028_v2 }
 0x5d0   :  { %6183 = vmatpush3.bf16.msra.mxu1 %v6700_v33 }
 0x64c   :  { %v5422_v30 = vpop.f32.mrb[140].mxu0 }
 0x64d   :  { %v5424_v1 = vpop.f32.mrb[141].mxu0 }
 0x64e   :  { %v5380_v25 = vpop.f32.mrb[128].mxu1  ;;  %v5425_v27 = vpop.f32.mrb[142].mxu0 }
 0x64f   :  { %v5423_v48 = vadd.f32 %v5422_v30, %v5380_v25  ;;  %v5382_v37 = vpop.f32.mrb[129].mxu1  ;;  %v5426_v0 = vpop.f32.mrb[143].mxu0 }
 0x650   :  { %v5383_v31 = vpop.f32.mrb[130].mxu1 }
 0x651   :  { %v5384_v34 = vpop.f32.mrb[131].mxu1 }
 0x674   :  { %v5517_v35 = vpop.f32.mrb[144].mxu0 }
 0x675   :  { %v5519_v36 = vpop.f32.mrb[145].mxu0 }
 0x676   :  { %v5470_v28 = vpop.f32.mrb[132].mxu1  ;;  %v5520_v40 = vpop.f32.mrb[146].mxu0 }
 0x677   :  { %v5476_v29 = vadd.f32 %v5470_v28, %v5423_v48  ;;  %v5472_v39 = vpop.f32.mrb[133].mxu1  ;;  %v5521_v44 = vpop.f32.mrb[147].mxu0 }
 0x678   :  { %v5473_v45 = vpop.f32.mrb[134].mxu1 }
 0x679   :  { %v5474_v47 = vpop.f32.mrb[135].mxu1  ;;  %v5523_v49 = vadd.f32 %v5517_v35, %v5476_v29 }
 0x69e   :  { %v5564_v51 = vpop.f32.mrb[136].mxu1 }
 0x69f   :  { %v5570_v54 = vadd.f32 %v5564_v51, %v5523_v49  ;;  %v5566_v58 = vpop.f32.mrb[137].mxu1 }
 0x6a0   :  { %v5567_v59 = vpop.f32.mrb[138].mxu1 }
 0x6a1   :  { %v5571_v55 = vadd.f32 %v5570_v54, %v4117_v50  ;;  %v5568_v60 = vpop.f32.mrb[139].mxu1 }
 0x6a3   :  { %v5572_v13 = vmax.f32 %v5571_v55, 0.0 }
 0x6a5   :  { %v5574_v3 = vrot.slane %v5572_v13, 7 }
 0x6a7   :  { %v5577_v4 = vsel %vm5576_vm5, %v4119_v62, %v5574_v3 }
 0x6a8   :  { %v5578_v5 = vpack.c.bf16 %v5577_v4, %v5577_v4 }
 0x6aa   :  { %6185 = vmatmul.mubr.msk.bf16.vlgmr.msra.gmra.mrb[140].mxu1 %vm3588_vm3, %v5578_v5 }
 0x77d   :  { %v5639_v23 = vpop.f32.mrb[140].mxu1 }
 0x77e   :  { %v5640_v26 = vadd.f32 %v6093_v19, %v5639_v23  ;;  %v6186_v6 = vpop.f32.mrb[141].mxu1 }
 0x77f   :  { %v5642_v57 = vpop.f32.mrb[142].mxu1 }
 0x780   :  { %5645 = vst [vmem:[#allocation2] sm:$0x3] %v5640_v26  ;;  %v6187_v7 = vpop.f32.mrb[143].mxu1 }
 0x781   :  { %7012 = shalt.err (!%p7009_p4)
}
 0x782   :  { %s7013_s8 = scalar_lea.hbm %s9553_s9, 32 }
 0x783   :  { %p7014_p5 = scmp.ne.s32.totalorder %s9553_s9, %s7013_s8  ;;  %p7017_p6 = scmp.lt.u32.totalorder %s7013_s8, %s9553_s9 }
 0x785   :  { %p7019_p7 = pnand %p7017_p6, %p7014_p5 }
 0x787   :  { %7022 = shalt.err (!%p7019_p7)
}
 0x788   :  { %5655 = dma.vmem_to_hbm [thread:$0]  %s5653_s0, 32, %s9553_s9, [#allocation3]  }
 0x789   :  { %7023 = dma.done.wait [#allocation3], 32  }
 0x78a   :  { %7024 = vsyncadd [#allocation3], 4294967264 }
 0x78b   :  { %5659 = vsyncpa [#allocation3], 1 }

</bundles_post_ra>
